<compile_context>
chip_gen: v7x
topology: tpu7x:2x2x1
jax: 0.10.0
libtpu: 0.0.40
codegen_flags: <defaults>
</compile_context>

<pallas_src>
import numpy as np

import jax
import jax.numpy as jnp
from jax import lax
from jax.experimental import pallas as pl
from jax.experimental.pallas import tpu as pltpu

NUM_CLASSES = 10
BATCH_BLOCK = 8          # samples per grid step


# ---------------------------------------------------------------------------
# Fused Pallas kernel: conv1 -> relu -> pool1 -> conv2 -> relu -> pool2 -> fc
# (B samples per grid step; everything stays in VMEM)
# ---------------------------------------------------------------------------
def _fused_convnet_kernel(
        x_ref,                                    # (B, 28, 28)  f32
        t1_ref, b1_ref,                           # (140, 448) bf16, (1, 448) f32
        sre1_ref, sro1_ref, sce1_ref, sco1_ref,   # pool1 selection matrices (bf16)
        t2_ref, b2_ref,                           # (5, 224, 448) bf16, (1, 448) f32
        sre2_ref, sro2_ref, sce2_ref, sco2_ref,   # pool2 selection matrices (bf16)
        w5_ref, b5_ref,                           # (7, 224, 128) bf16, (1, 128) f32
        out_ref,                                  # (B, 128)     f32
        im1_ref, p1pad_ref, p2all_ref):           # VMEM scratch
    f32 = jnp.float32
    bf16 = jnp.bfloat16
    B = x_ref.shape[0]

    # ---- zero ONLY the H-padding halo sub-blocks, once per grid step --------
    # (everything else in the scratches is fully rewritten for every sample)
    im1_ref[0:2, 0:28] = jnp.zeros((2, 28), f32)        # kh=0 halo rows
    im1_ref[0:1, 28:56] = jnp.zeros((1, 28), f32)       # kh=1 halo row
    im1_ref[27:28, 84:112] = jnp.zeros((1, 28), f32)    # kh=3 halo row
    im1_ref[26:28, 112:140] = jnp.zeros((2, 28), f32)   # kh=4 halo rows
    p1pad_ref[0:2, :] = jnp.zeros((2, 224), bf16)       # conv2 top halo
    p1pad_ref[16:18, :] = jnp.zeros((2, 224), bf16)     # conv2 bottom halo

    def per_sample(b, carry):
        # ---- layer1: Conv2d(1,16,k=5,p=2) + ReLU as ONE K=140 GEMM ---------
        # (H,W*C) layout; kw shift + W padding folded into the pre-concatenated
        # Toeplitz weights; kh shift + H padding folded into the im2col LHS.
        xs = x_ref[b]                                     # (28, 28) f32
        im1_ref[2:28, 0:28] = xs[0:26, :]                 # kh = 0
        im1_ref[1:28, 28:56] = xs[0:27, :]                # kh = 1
        im1_ref[0:28, 56:84] = xs                         # kh = 2
        im1_ref[0:27, 84:112] = xs[1:28, :]               # kh = 3
        im1_ref[0:26, 112:140] = xs[2:28, :]              # kh = 4
        acc1 = jnp.dot(im1_ref[...].astype(bf16),         # single cast of LHS
                       t1_ref[...], preferred_element_type=f32)
        y1 = jnp.maximum(acc1 + b1_ref[...], 0.0).astype(bf16)   # (28, 448)

        # ---- layer2: MaxPool2d(2,2) via exact 0/1 selection matmuls (bf16) --
        rmax = jnp.maximum(
            jnp.dot(sre1_ref[...], y1, preferred_element_type=f32),
            jnp.dot(sro1_ref[...], y1, preferred_element_type=f32)).astype(bf16)
        p1 = jnp.maximum(
            jnp.dot(rmax, sce1_ref[...], preferred_element_type=f32),
            jnp.dot(rmax, sco1_ref[...], preferred_element_type=f32))  # (14, 224)

        # ---- layer3: Conv2d(16,32,k=5,p=2) + ReLU (5 kh GEMMs, K=224) -------
        # bf16 padded-input scratch: cast once at the write, not per kh slice.
        p1pad_ref[2:16, :] = p1.astype(bf16)
        acc2 = jnp.dot(p1pad_ref[0:14, :], t2_ref[0], preferred_element_type=f32)
        for kh in range(1, 5):
            acc2 = acc2 + jnp.dot(p1pad_ref[kh:kh + 14, :], t2_ref[kh],
                                  preferred_element_type=f32)
        y2 = jnp.maximum(acc2 + b2_ref[...], 0.0).astype(bf16)   # (14, 448)

        # ---- layer4: MaxPool2d(2,2) ------------------------------------------
        rmax2 = jnp.maximum(
            jnp.dot(sre2_ref[...], y2, preferred_element_type=f32),
            jnp.dot(sro2_ref[...], y2, preferred_element_type=f32)).astype(bf16)
        p2 = jnp.maximum(
            jnp.dot(rmax2, sce2_ref[...], preferred_element_type=f32),
            jnp.dot(rmax2, sco2_ref[...], preferred_element_type=f32))  # (7, 224)

        p2all_ref[b] = p2          # stash pooled features for the batched FC
        return carry

    lax.fori_loop(0, B, per_sample, 0)

    # ---- layer5: Linear(7*7*32, 10) batched over the B samples --------------
    # 7 chained GEMMs of (B,224)x(224,128); output lane-padded to 128.
    acc5 = jnp.dot(p2all_ref[:, 0, :].astype(bf16), w5_ref[0],
                   preferred_element_type=f32)
    for h in range(1, 7):
        acc5 = acc5 + jnp.dot(p2all_ref[:, h, :].astype(bf16), w5_ref[h],
                              preferred_element_type=f32)
    out_ref[...] = acc5 + b5_ref[...]


# ---------------------------------------------------------------------------
# Host-side, once-at-init weight repacking (layout-only work)
# ---------------------------------------------------------------------------
def _conv_row_toeplitz(w, width, pad):
    """w: (Cout, Cin, KH, KW) -> T: (KH, width*Cin, width*Cout).

    T[kh, wi*Cin + ci, wo*Cout + co] = w[co, ci, kh, wi - wo + pad] when the
    kernel tap is in range — the kw shift and W zero-padding are folded in.
    """
    w = np.asarray(w, np.float32)
    cout, cin, kh_sz, kw_sz = w.shape
    t = np.zeros((kh_sz, width * cin, width * cout), np.float32)
    for kh in range(kh_sz):
        for kw in range(kw_sz):
            blk = w[:, :, kh, kw].T                      # (Cin, Cout)
            for wo in range(width):
                wi = wo + kw - pad
                if 0 <= wi < width:
                    t[kh, wi * cin:(wi + 1) * cin,
                      wo * cout:(wo + 1) * cout] = blk
    return t


def _row_select(h):
    """(h//2, h) 0/1 matrices selecting even / odd rows."""
    se = np.zeros((h // 2, h), np.float32)
    so = np.zeros((h // 2, h), np.float32)
    for i in range(h // 2):
        se[i, 2 * i] = 1.0
        so[i, 2 * i + 1] = 1.0
    return se, so


def _col_select(w, c):
    """(w*c, (w//2)*c) 0/1 matrices selecting even / odd width-groups."""
    pe = np.zeros((w * c, (w // 2) * c), np.float32)
    po = np.zeros((w * c, (w // 2) * c), np.float32)
    for w2 in range(w // 2):
        for ch in range(c):
            pe[(2 * w2) * c + ch, w2 * c + ch] = 1.0
            po[(2 * w2 + 1) * c + ch, w2 * c + ch] = 1.0
    return pe, po


def _pack_fc(w5, b5):
    """Permute FC rows from torch NCHW-flatten order to the kernel's (h, w, c)
    layout and zero-pad the class dim to 128 lanes."""
    w5 = np.asarray(w5, np.float32)                      # (nclass, 1568)
    nclass = w5.shape[0]
    assert nclass <= 128
    w5p = np.zeros((7, 7 * 32, 128), np.float32)
    for h in range(7):
        for w_ in range(7):
            for c in range(32):
                w5p[h, w_ * 32 + c, :nclass] = w5[:, c * 49 + h * 7 + w_]
    b5p = np.zeros((1, 128), np.float32)
    b5p[0, :nclass] = np.asarray(b5, np.float32)
    return w5p, b5p


def prepack_params(params):
    """PyTorch-layout params -> kernel operands (done once, host-side).
    Conv Toeplitz / pooling selection / FC weights are stored in bf16 (exact
    for the 0/1 selection matrices); biases stay f32."""
    w1, b1, w2, b2, w5, b5 = params
    bf = jnp.bfloat16
    # conv1 Toeplitz pre-concatenated along kh -> single K=140 GEMM
    t1 = _conv_row_toeplitz(w1, width=28, pad=2).reshape(5 * 28, 28 * 16)
    t2 = _conv_row_toeplitz(w2, width=14, pad=2)          # (5, 224, 448)
    b1row = np.tile(np.asarray(b1, np.float32), 28)[None, :]   # (1, 448)
    b2row = np.tile(np.asarray(b2, np.float32), 14)[None, :]   # (1, 448)
    sre1, sro1 = _row_select(28)                          # (14, 28)
    sce1, sco1 = _col_select(28, 16)                      # (448, 224)
    sre2, sro2 = _row_select(14)                          # (7, 14)
    sce2, sco2 = _col_select(14, 32)                      # (448, 224)
    w5p, b5p = _pack_fc(w5, b5)                           # (7, 224, 128), (1, 128)
    return (
        jnp.asarray(t1, bf), jnp.asarray(b1row),
        jnp.asarray(sre1, bf), jnp.asarray(sro1, bf),
        jnp.asarray(sce1, bf), jnp.asarray(sco1, bf),
        jnp.asarray(t2, bf), jnp.asarray(b2row),
        jnp.asarray(sre2, bf), jnp.asarray(sro2, bf),
        jnp.asarray(sce2, bf), jnp.asarray(sco2, bf),
        jnp.asarray(w5p, bf), jnp.asarray(b5p),
    )


# ---------------------------------------------------------------------------
# Forward pass: one fused pallas_call, batch-blocked grid
# ---------------------------------------------------------------------------
def convnet_forward(x, packed, batch_block=BATCH_BLOCK):
    n = x.shape[0]
    x3 = x.reshape(n, 28, 28).astype(jnp.float32)

    B = min(batch_block, n) if n > 0 else 1
    n_pad = ((n + B - 1) // B) * B
    if n_pad != n:
        x3 = jnp.pad(x3, ((0, n_pad - n), (0, 0), (0, 0)))

    in_specs = [pl.BlockSpec((B, 28, 28), lambda i: (i, 0, 0))]
    for arr in packed:   # weights: full-array blocks, constant index_map (VMEM-resident)
        in_specs.append(pl.BlockSpec(arr.shape, lambda i, _nd=arr.ndim: (0,) * _nd))

    out = pl.pallas_call(
        _fused_convnet_kernel,
        out_shape=jax.ShapeDtypeStruct((n_pad, 128), jnp.float32),
        grid=(n_pad // B,),
        in_specs=in_specs,
        out_specs=pl.BlockSpec((B, 128), lambda i: (i, 0)),
        scratch_shapes=[
            pltpu.VMEM((28, 140), jnp.float32),      # conv1 im2col LHS (K fused)
            pltpu.VMEM((18, 224), jnp.bfloat16),     # H-padded conv2 input (bf16)
            pltpu.VMEM((B, 7, 224), jnp.float32),    # pooled features for batched FC
        ],
        compiler_params=pltpu.CompilerParams(
            dimension_semantics=("parallel",),
            vmem_limit_bytes=32 * 1024 * 1024,
        ),
    )(x3, *packed)

    return out[:n, :NUM_CLASSES]


# ---------------------------------------------------------------------------
# Params (PyTorch layout) + pure-JAX reference for a sanity check
# ---------------------------------------------------------------------------
def init_params(key, num_classes=NUM_CLASSES):
    ks = jax.random.split(key, 6)
    w1 = 0.10 * jax.random.normal(ks[0], (16, 1, 5, 5), jnp.float32)
    b1 = 0.10 * jax.random.normal(ks[1], (16,), jnp.float32)
    w2 = 0.05 * jax.random.normal(ks[2], (32, 16, 5, 5), jnp.float32)
    b2 = 0.05 * jax.random.normal(ks[3], (32,), jnp.float32)
    w5 = 0.02 * jax.random.normal(ks[4], (num_classes, 7 * 7 * 32), jnp.float32)
    b5 = 0.02 * jax.random.normal(ks[5], (num_classes,), jnp.float32)
    return (w1, b1, w2, b2, w5, b5)


def _reference_forward(x, params):
    """Plain-JAX (f32) reference matching the PyTorch module."""
    w1, b1, w2, b2, w5, b5 = params

    def conv_relu(h, w, b):
        y = lax.conv_general_dilated(h, w, window_strides=(1, 1),
                                     padding=((2, 2), (2, 2)),
                                     dimension_numbers=("NCHW", "OIHW", "NCHW"))
        return jnp.maximum(y + b[None, :, None, None], 0.0)

    def pool(h):
        return jnp.maximum(
            jnp.maximum(h[:, :, 0::2, 0::2], h[:, :, 0::2, 1::2]),
            jnp.maximum(h[:, :, 1::2, 0::2], h[:, :, 1::2, 1::2]))

    out = pool(conv_relu(x, w1, b1))
    out = pool(conv_relu(out, w2, b2))
    flat = out.reshape(out.shape[0], -1)
    return flat @ w5.T + b5


if __name__ == "__main__":
    key = jax.random.PRNGKey(0)
    k_x, k_p = jax.random.split(key)
    # Linear(7*7*32, 10) fixes the spatial input at 28x28 with Cin=1.
    x = jax.random.normal(k_x, (2, 1, 28, 28), jnp.float32)
    params = init_params(k_p)
    packed = prepack_params(params)          # layout-only repack, once

    fwd = jax.jit(convnet_forward)
    logits = fwd(x, packed)
    jax.block_until_ready(logits)
    assert logits.shape == (2, NUM_CLASSES) and logits.dtype == jnp.float32

    # Sanity check vs. f32 reference (kernel GEMMs run with bf16 operands).
    ref = _reference_forward(x, params)
    max_err = float(jnp.max(jnp.abs(logits - ref)))
    assert max_err < 0.1, f"max |pallas - reference| = {max_err}"

    print("KERNEL_OK")
</pallas_src>

<mosaic_0001>
module attributes {stable_mosaic.version = 11 : i64} {
  func.func @_fused_convnet_kernel(%arg0: i32, %arg1: memref<2x28x28xf32, #tpu.memory_space<vmem>>, %arg2: memref<140x448xbf16, #tpu.memory_space<vmem>>, %arg3: memref<1x448xf32, #tpu.memory_space<vmem>>, %arg4: memref<14x28xbf16, #tpu.memory_space<vmem>>, %arg5: memref<14x28xbf16, #tpu.memory_space<vmem>>, %arg6: memref<448x224xbf16, #tpu.memory_space<vmem>>, %arg7: memref<448x224xbf16, #tpu.memory_space<vmem>>, %arg8: memref<5x224x448xbf16, #tpu.memory_space<vmem>>, %arg9: memref<1x448xf32, #tpu.memory_space<vmem>>, %arg10: memref<7x14xbf16, #tpu.memory_space<vmem>>, %arg11: memref<7x14xbf16, #tpu.memory_space<vmem>>, %arg12: memref<448x224xbf16, #tpu.memory_space<vmem>>, %arg13: memref<448x224xbf16, #tpu.memory_space<vmem>>, %arg14: memref<7x224x128xbf16, #tpu.memory_space<vmem>>, %arg15: memref<1x128xf32, #tpu.memory_space<vmem>>, %arg16: memref<2x128xf32, #tpu.memory_space<vmem>>, %arg17: memref<28x140xf32, #tpu.memory_space<vmem>>, %arg18: memref<18x224xbf16, #tpu.memory_space<vmem>>, %arg19: memref<2x7x224xf32, #tpu.memory_space<vmem>>) attributes {dimension_semantics = [#tpu.dimension_semantics<parallel>], iteration_bounds = array<i64: 1>, scalar_prefetch = 0 : i64, scratch_operands = 3 : i64, tpu.core_type = #tpu.core_type<tc>, window_params = [{transform_indices = @transform_0, window_bounds = array<i64: 2, 28, 28>}, {pipeline_mode = #tpu.pipeline_mode<synchronous>, transform_indices = @transform_1, window_bounds = array<i64: 140, 448>}, {pipeline_mode = #tpu.pipeline_mode<synchronous>, transform_indices = @transform_2, window_bounds = array<i64: 1, 448>}, {pipeline_mode = #tpu.pipeline_mode<synchronous>, transform_indices = @transform_3, window_bounds = array<i64: 14, 28>}, {pipeline_mode = #tpu.pipeline_mode<synchronous>, transform_indices = @transform_4, window_bounds = array<i64: 14, 28>}, {pipeline_mode = #tpu.pipeline_mode<synchronous>, transform_indices = @transform_5, window_bounds = array<i64: 448, 224>}, {pipeline_mode = #tpu.pipeline_mode<synchronous>, transform_indices = @transform_6, window_bounds = array<i64: 448, 224>}, {pipeline_mode = #tpu.pipeline_mode<synchronous>, transform_indices = @transform_7, window_bounds = array<i64: 5, 224, 448>}, {pipeline_mode = #tpu.pipeline_mode<synchronous>, transform_indices = @transform_8, window_bounds = array<i64: 1, 448>}, {pipeline_mode = #tpu.pipeline_mode<synchronous>, transform_indices = @transform_9, window_bounds = array<i64: 7, 14>}, {pipeline_mode = #tpu.pipeline_mode<synchronous>, transform_indices = @transform_10, window_bounds = array<i64: 7, 14>}, {pipeline_mode = #tpu.pipeline_mode<synchronous>, transform_indices = @transform_11, window_bounds = array<i64: 448, 224>}, {pipeline_mode = #tpu.pipeline_mode<synchronous>, transform_indices = @transform_12, window_bounds = array<i64: 448, 224>}, {pipeline_mode = #tpu.pipeline_mode<synchronous>, transform_indices = @transform_13, window_bounds = array<i64: 7, 224, 128>}, {pipeline_mode = #tpu.pipeline_mode<synchronous>, transform_indices = @transform_14, window_bounds = array<i64: 1, 128>}, {transform_indices = @transform_15, window_bounds = array<i64: 2, 128>}]} {
    %cst = arith.constant 0.000000e+00 : f32
    %0 = vector.broadcast %cst : f32 to vector<2x28xf32>
    %c0 = arith.constant 0 : index
    %c0_0 = arith.constant 0 : index
    %1 = vector.load %arg17[%c0, %c0_0] : memref<28x140xf32, #tpu.memory_space<vmem>>, vector<2x28xf32>
    tpu.vector_store %arg17[%c0, %c0_0], %0 {strides = array<i32>} : memref<28x140xf32, #tpu.memory_space<vmem>>, vector<2x28xf32>,
    %cst_1 = arith.constant 0.000000e+00 : f32
    %2 = vector.broadcast %cst_1 : f32 to vector<1x28xf32>
    %c0_2 = arith.constant 0 : index
    %c28 = arith.constant 28 : index
    %3 = vector.load %arg17[%c0_2, %c28] : memref<28x140xf32, #tpu.memory_space<vmem>>, vector<1x28xf32>
    tpu.vector_store %arg17[%c0_2, %c28], %2 {strides = array<i32>} : memref<28x140xf32, #tpu.memory_space<vmem>>, vector<1x28xf32>,
    %cst_3 = arith.constant 0.000000e+00 : f32
    %4 = vector.broadcast %cst_3 : f32 to vector<1x28xf32>
    %c27 = arith.constant 27 : index
    %c84 = arith.constant 84 : index
    %5 = vector.load %arg17[%c27, %c84] : memref<28x140xf32, #tpu.memory_space<vmem>>, vector<1x28xf32>
    tpu.vector_store %arg17[%c27, %c84], %4 {strides = array<i32>} : memref<28x140xf32, #tpu.memory_space<vmem>>, vector<1x28xf32>,
    %cst_4 = arith.constant 0.000000e+00 : f32
    %6 = vector.broadcast %cst_4 : f32 to vector<2x28xf32>
    %c26 = arith.constant 26 : index
    %c112 = arith.constant 112 : index
    %7 = vector.load %arg17[%c26, %c112] : memref<28x140xf32, #tpu.memory_space<vmem>>, vector<2x28xf32>
    tpu.vector_store %arg17[%c26, %c112], %6 {strides = array<i32>} : memref<28x140xf32, #tpu.memory_space<vmem>>, vector<2x28xf32>,
    %cst_5 = arith.constant 0.000000e+00 : bf16
    %8 = vector.broadcast %cst_5 : bf16 to vector<2x224xbf16>
    %c0_6 = arith.constant 0 : index
    %c0_7 = arith.constant 0 : index
    %9 = vector.load %arg18[%c0_6, %c0_7] : memref<18x224xbf16, #tpu.memory_space<vmem>>, vector<2x224xbf16>
    tpu.vector_store %arg18[%c0_6, %c0_7], %8 {strides = array<i32>} : memref<18x224xbf16, #tpu.memory_space<vmem>>, vector<2x224xbf16>,
    %cst_8 = arith.constant 0.000000e+00 : bf16
    %10 = vector.broadcast %cst_8 : bf16 to vector<2x224xbf16>
    %c16 = arith.constant 16 : index
    %c0_9 = arith.constant 0 : index
    %11 = vector.load %arg18[%c16, %c0_9] : memref<18x224xbf16, #tpu.memory_space<vmem>>, vector<2x224xbf16>
    tpu.vector_store %arg18[%c16, %c0_9], %10 {strides = array<i32>} : memref<18x224xbf16, #tpu.memory_space<vmem>>, vector<2x224xbf16>,
    %c0_i32 = arith.constant 0 : i32
    %c2_i32 = arith.constant 2 : i32
    %12 = arith.addi %c0_i32, %c2_i32 : i32
    %c1_i32 = arith.constant 1 : i32
    scf.for %arg20 = %c0_i32 to %12 step %c1_i32  : i32 {
      %65 = arith.index_cast %arg20 : i32 to index
      %c0_58 = arith.constant 0 : index
      %c0_59 = arith.constant 0 : index
      %66 = vector.load %arg1[%65, %c0_58, %c0_59] : memref<2x28x28xf32, #tpu.memory_space<vmem>>, vector<1x28x28xf32>
      %67 = vector.shape_cast %66 : vector<1x28x28xf32> to vector<28x28xf32>
      %68 = vector.extract_strided_slice %67 {offsets = [0, 0], sizes = [26, 28], strides = [1, 1]} : vector<28x28xf32> to vector<26x28xf32>
      %c2_60 = arith.constant 2 : index
      %c0_61 = arith.constant 0 : index
      %69 = vector.load %arg17[%c2_60, %c0_61] : memref<28x140xf32, #tpu.memory_space<vmem>>, vector<26x28xf32>
      tpu.vector_store %arg17[%c2_60, %c0_61], %68 {strides = array<i32>} : memref<28x140xf32, #tpu.memory_space<vmem>>, vector<26x28xf32>,
      %70 = vector.extract_strided_slice %67 {offsets = [0, 0], sizes = [27, 28], strides = [1, 1]} : vector<28x28xf32> to vector<27x28xf32>
      %c1_62 = arith.constant 1 : index
      %c28_63 = arith.constant 28 : index
      %71 = vector.load %arg17[%c1_62, %c28_63] : memref<28x140xf32, #tpu.memory_space<vmem>>, vector<27x28xf32>
      tpu.vector_store %arg17[%c1_62, %c28_63], %70 {strides = array<i32>} : memref<28x140xf32, #tpu.memory_space<vmem>>, vector<27x28xf32>,
      %c0_64 = arith.constant 0 : index
      %c56 = arith.constant 56 : index
      %72 = vector.load %arg17[%c0_64, %c56] : memref<28x140xf32, #tpu.memory_space<vmem>>, vector<28x28xf32>
      tpu.vector_store %arg17[%c0_64, %c56], %67 {strides = array<i32>} : memref<28x140xf32, #tpu.memory_space<vmem>>, vector<28x28xf32>,
      %73 = vector.extract_strided_slice %67 {offsets = [1, 0], sizes = [27, 28], strides = [1, 1]} : vector<28x28xf32> to vector<27x28xf32>
      %c0_65 = arith.constant 0 : index
      %c84_66 = arith.constant 84 : index
      %74 = vector.load %arg17[%c0_65, %c84_66] : memref<28x140xf32, #tpu.memory_space<vmem>>, vector<27x28xf32>
      tpu.vector_store %arg17[%c0_65, %c84_66], %73 {strides = array<i32>} : memref<28x140xf32, #tpu.memory_space<vmem>>, vector<27x28xf32>,
      %75 = vector.extract_strided_slice %67 {offsets = [2, 0], sizes = [26, 28], strides = [1, 1]} : vector<28x28xf32> to vector<26x28xf32>
      %c0_67 = arith.constant 0 : index
      %c112_68 = arith.constant 112 : index
      %76 = vector.load %arg17[%c0_67, %c112_68] : memref<28x140xf32, #tpu.memory_space<vmem>>, vector<26x28xf32>
      tpu.vector_store %arg17[%c0_67, %c112_68], %75 {strides = array<i32>} : memref<28x140xf32, #tpu.memory_space<vmem>>, vector<26x28xf32>,
      %c0_69 = arith.constant 0 : index
      %c0_70 = arith.constant 0 : index
      %77 = vector.load %arg17[%c0_69, %c0_70] : memref<28x140xf32, #tpu.memory_space<vmem>>, vector<28x140xf32>
      %78 = arith.truncf %77 : vector<28x140xf32> to vector<28x140xbf16>
      %c0_71 = arith.constant 0 : index
      %c0_72 = arith.constant 0 : index
      %79 = vector.load %arg2[%c0_71, %c0_72] : memref<140x448xbf16, #tpu.memory_space<vmem>>, vector<140x448xbf16>
      %cst_73 = arith.constant dense<0.000000e+00> : vector<28x448xf32>
      %80 = tpu.matmul %78, %79, %cst_73 {dimension_numbers = #tpu.dot_dimension_numbers<[1], [0], [0], [1], [0, 0, 1, 1], [], []>} : vector<28x140xbf16>, vector<140x448xbf16>, vector<28x448xf32> -> vector<28x448xf32>
      %c0_74 = arith.constant 0 : index
      %c0_75 = arith.constant 0 : index
      %81 = vector.load %arg3[%c0_74, %c0_75] : memref<1x448xf32, #tpu.memory_space<vmem>>, vector<1x448xf32>
      %82 = vector.broadcast %81 : vector<1x448xf32> to vector<28x448xf32>
      %83 = arith.addf %80, %82 : vector<28x448xf32>
      %cst_76 = arith.constant 0.000000e+00 : f32
      %84 = vector.broadcast %cst_76 : f32 to vector<28x448xf32>
      %85 = arith.maximumf %83, %84 : vector<28x448xf32>
      %86 = arith.truncf %85 : vector<28x448xf32> to vector<28x448xbf16>
      %c0_77 = arith.constant 0 : index
      %c0_78 = arith.constant 0 : index
      %87 = vector.load %arg4[%c0_77, %c0_78] : memref<14x28xbf16, #tpu.memory_space<vmem>>, vector<14x28xbf16>
      %cst_79 = arith.constant dense<0.000000e+00> : vector<14x448xf32>
      %88 = tpu.matmul %87, %86, %cst_79 {dimension_numbers = #tpu.dot_dimension_numbers<[1], [0], [0], [1], [0, 0, 1, 1], [], []>} : vector<14x28xbf16>, vector<28x448xbf16>, vector<14x448xf32> -> vector<14x448xf32>
      %c0_80 = arith.constant 0 : index
      %c0_81 = arith.constant 0 : index
      %89 = vector.load %arg5[%c0_80, %c0_81] : memref<14x28xbf16, #tpu.memory_space<vmem>>, vector<14x28xbf16>
      %cst_82 = arith.constant dense<0.000000e+00> : vector<14x448xf32>
      %90 = tpu.matmul %89, %86, %cst_82 {dimension_numbers = #tpu.dot_dimension_numbers<[1], [0], [0], [1], [0, 0, 1, 1], [], []>} : vector<14x28xbf16>, vector<28x448xbf16>, vector<14x448xf32> -> vector<14x448xf32>
      %91 = arith.maximumf %88, %90 : vector<14x448xf32>
      %92 = arith.truncf %91 : vector<14x448xf32> to vector<14x448xbf16>
      %c0_83 = arith.constant 0 : index
      %c0_84 = arith.constant 0 : index
      %93 = vector.load %arg6[%c0_83, %c0_84] : memref<448x224xbf16, #tpu.memory_space<vmem>>, vector<448x224xbf16>
      %cst_85 = arith.constant dense<0.000000e+00> : vector<14x224xf32>
      %94 = tpu.matmul %92, %93, %cst_85 {dimension_numbers = #tpu.dot_dimension_numbers<[1], [0], [0], [1], [0, 0, 1, 1], [], []>} : vector<14x448xbf16>, vector<448x224xbf16>, vector<14x224xf32> -> vector<14x224xf32>
      %c0_86 = arith.constant 0 : index
      %c0_87 = arith.constant 0 : index
      %95 = vector.load %arg7[%c0_86, %c0_87] : memref<448x224xbf16, #tpu.memory_space<vmem>>, vector<448x224xbf16>
      %cst_88 = arith.constant dense<0.000000e+00> : vector<14x224xf32>
      %96 = tpu.matmul %92, %95, %cst_88 {dimension_numbers = #tpu.dot_dimension_numbers<[1], [0], [0], [1], [0, 0, 1, 1], [], []>} : vector<14x448xbf16>, vector<448x224xbf16>, vector<14x224xf32> -> vector<14x224xf32>
      %97 = arith.maximumf %94, %96 : vector<14x224xf32>
      %98 = arith.truncf %97 : vector<14x224xf32> to vector<14x224xbf16>
      %c2_89 = arith.constant 2 : index
      %c0_90 = arith.constant 0 : index
      %99 = vector.load %arg18[%c2_89, %c0_90] : memref<18x224xbf16, #tpu.memory_space<vmem>>, vector<14x224xbf16>
      tpu.vector_store %arg18[%c2_89, %c0_90], %98 {strides = array<i32>} : memref<18x224xbf16, #tpu.memory_space<vmem>>, vector<14x224xbf16>,
      %c0_91 = arith.constant 0 : index
      %c0_92 = arith.constant 0 : index
      %100 = vector.load %arg18[%c0_91, %c0_92] : memref<18x224xbf16, #tpu.memory_space<vmem>>, vector<14x224xbf16>
      %c0_93 = arith.constant 0 : index
      %c0_94 = arith.constant 0 : index
      %c0_95 = arith.constant 0 : index
      %101 = vector.load %arg8[%c0_93, %c0_94, %c0_95] : memref<5x224x448xbf16, #tpu.memory_space<vmem>>, vector<1x224x448xbf16>
      %102 = vector.shape_cast %101 : vector<1x224x448xbf16> to vector<224x448xbf16>
      %cst_96 = arith.constant dense<0.000000e+00> : vector<14x448xf32>
      %103 = tpu.matmul %100, %102, %cst_96 {dimension_numbers = #tpu.dot_dimension_numbers<[1], [0], [0], [1], [0, 0, 1, 1], [], []>} : vector<14x224xbf16>, vector<224x448xbf16>, vector<14x448xf32> -> vector<14x448xf32>
      %c1_97 = arith.constant 1 : index
      %c0_98 = arith.constant 0 : index
      %104 = vector.load %arg18[%c1_97, %c0_98] : memref<18x224xbf16, #tpu.memory_space<vmem>>, vector<14x224xbf16>
      %c1_99 = arith.constant 1 : index
      %c0_100 = arith.constant 0 : index
      %c0_101 = arith.constant 0 : index
      %105 = vector.load %arg8[%c1_99, %c0_100, %c0_101] : memref<5x224x448xbf16, #tpu.memory_space<vmem>>, vector<1x224x448xbf16>
      %106 = vector.shape_cast %105 : vector<1x224x448xbf16> to vector<224x448xbf16>
      %cst_102 = arith.constant dense<0.000000e+00> : vector<14x448xf32>
      %107 = tpu.matmul %104, %106, %cst_102 {dimension_numbers = #tpu.dot_dimension_numbers<[1], [0], [0], [1], [0, 0, 1, 1], [], []>} : vector<14x224xbf16>, vector<224x448xbf16>, vector<14x448xf32> -> vector<14x448xf32>
      %108 = arith.addf %103, %107 : vector<14x448xf32>
      %c2_103 = arith.constant 2 : index
      %c0_104 = arith.constant 0 : index
      %109 = vector.load %arg18[%c2_103, %c0_104] : memref<18x224xbf16, #tpu.memory_space<vmem>>, vector<14x224xbf16>
      %c2_105 = arith.constant 2 : index
      %c0_106 = arith.constant 0 : index
      %c0_107 = arith.constant 0 : index
      %110 = vector.load %arg8[%c2_105, %c0_106, %c0_107] : memref<5x224x448xbf16, #tpu.memory_space<vmem>>, vector<1x224x448xbf16>
      %111 = vector.shape_cast %110 : vector<1x224x448xbf16> to vector<224x448xbf16>
      %cst_108 = arith.constant dense<0.000000e+00> : vector<14x448xf32>
      %112 = tpu.matmul %109, %111, %cst_108 {dimension_numbers = #tpu.dot_dimension_numbers<[1], [0], [0], [1], [0, 0, 1, 1], [], []>} : vector<14x224xbf16>, vector<224x448xbf16>, vector<14x448xf32> -> vector<14x448xf32>
      %113 = arith.addf %108, %112 : vector<14x448xf32>
      %c3_109 = arith.constant 3 : index
      %c0_110 = arith.constant 0 : index
      %114 = vector.load %arg18[%c3_109, %c0_110] : memref<18x224xbf16, #tpu.memory_space<vmem>>, vector<14x224xbf16>
      %c3_111 = arith.constant 3 : index
      %c0_112 = arith.constant 0 : index
      %c0_113 = arith.constant 0 : index
      %115 = vector.load %arg8[%c3_111, %c0_112, %c0_113] : memref<5x224x448xbf16, #tpu.memory_space<vmem>>, vector<1x224x448xbf16>
      %116 = vector.shape_cast %115 : vector<1x224x448xbf16> to vector<224x448xbf16>
      %cst_114 = arith.constant dense<0.000000e+00> : vector<14x448xf32>
      %117 = tpu.matmul %114, %116, %cst_114 {dimension_numbers = #tpu.dot_dimension_numbers<[1], [0], [0], [1], [0, 0, 1, 1], [], []>} : vector<14x224xbf16>, vector<224x448xbf16>, vector<14x448xf32> -> vector<14x448xf32>
      %118 = arith.addf %113, %117 : vector<14x448xf32>
      %c4_115 = arith.constant 4 : index
      %c0_116 = arith.constant 0 : index
      %119 = vector.load %arg18[%c4_115, %c0_116] : memref<18x224xbf16, #tpu.memory_space<vmem>>, vector<14x224xbf16>
      %c4_117 = arith.constant 4 : index
      %c0_118 = arith.constant 0 : index
      %c0_119 = arith.constant 0 : index
      %120 = vector.load %arg8[%c4_117, %c0_118, %c0_119] : memref<5x224x448xbf16, #tpu.memory_space<vmem>>, vector<1x224x448xbf16>
      %121 = vector.shape_cast %120 : vector<1x224x448xbf16> to vector<224x448xbf16>
      %cst_120 = arith.constant dense<0.000000e+00> : vector<14x448xf32>
      %122 = tpu.matmul %119, %121, %cst_120 {dimension_numbers = #tpu.dot_dimension_numbers<[1], [0], [0], [1], [0, 0, 1, 1], [], []>} : vector<14x224xbf16>, vector<224x448xbf16>, vector<14x448xf32> -> vector<14x448xf32>
      %123 = arith.addf %118, %122 : vector<14x448xf32>
      %c0_121 = arith.constant 0 : index
      %c0_122 = arith.constant 0 : index
      %124 = vector.load %arg9[%c0_121, %c0_122] : memref<1x448xf32, #tpu.memory_space<vmem>>, vector<1x448xf32>
      %125 = vector.broadcast %124 : vector<1x448xf32> to vector<14x448xf32>
      %126 = arith.addf %123, %125 : vector<14x448xf32>
      %cst_123 = arith.constant 0.000000e+00 : f32
      %127 = vector.broadcast %cst_123 : f32 to vector<14x448xf32>
      %128 = arith.maximumf %126, %127 : vector<14x448xf32>
      %129 = arith.truncf %128 : vector<14x448xf32> to vector<14x448xbf16>
      %c0_124 = arith.constant 0 : index
      %c0_125 = arith.constant 0 : index
      %130 = vector.load %arg10[%c0_124, %c0_125] : memref<7x14xbf16, #tpu.memory_space<vmem>>, vector<7x14xbf16>
      %cst_126 = arith.constant dense<0.000000e+00> : vector<7x448xf32>
      %131 = tpu.matmul %130, %129, %cst_126 {dimension_numbers = #tpu.dot_dimension_numbers<[1], [0], [0], [1], [0, 0, 1, 1], [], []>} : vector<7x14xbf16>, vector<14x448xbf16>, vector<7x448xf32> -> vector<7x448xf32>
      %c0_127 = arith.constant 0 : index
      %c0_128 = arith.constant 0 : index
      %132 = vector.load %arg11[%c0_127, %c0_128] : memref<7x14xbf16, #tpu.memory_space<vmem>>, vector<7x14xbf16>
      %cst_129 = arith.constant dense<0.000000e+00> : vector<7x448xf32>
      %133 = tpu.matmul %132, %129, %cst_129 {dimension_numbers = #tpu.dot_dimension_numbers<[1], [0], [0], [1], [0, 0, 1, 1], [], []>} : vector<7x14xbf16>, vector<14x448xbf16>, vector<7x448xf32> -> vector<7x448xf32>
      %134 = arith.maximumf %131, %133 : vector<7x448xf32>
      %135 = arith.truncf %134 : vector<7x448xf32> to vector<7x448xbf16>
      %c0_130 = arith.constant 0 : index
      %c0_131 = arith.constant 0 : index
      %136 = vector.load %arg12[%c0_130, %c0_131] : memref<448x224xbf16, #tpu.memory_space<vmem>>, vector<448x224xbf16>
      %cst_132 = arith.constant dense<0.000000e+00> : vector<7x224xf32>
      %137 = tpu.matmul %135, %136, %cst_132 {dimension_numbers = #tpu.dot_dimension_numbers<[1], [0], [0], [1], [0, 0, 1, 1], [], []>} : vector<7x448xbf16>, vector<448x224xbf16>, vector<7x224xf32> -> vector<7x224xf32>
      %c0_133 = arith.constant 0 : index
      %c0_134 = arith.constant 0 : index
      %138 = vector.load %arg13[%c0_133, %c0_134] : memref<448x224xbf16, #tpu.memory_space<vmem>>, vector<448x224xbf16>
      %cst_135 = arith.constant dense<0.000000e+00> : vector<7x224xf32>
      %139 = tpu.matmul %135, %138, %cst_135 {dimension_numbers = #tpu.dot_dimension_numbers<[1], [0], [0], [1], [0, 0, 1, 1], [], []>} : vector<7x448xbf16>, vector<448x224xbf16>, vector<7x224xf32> -> vector<7x224xf32>
      %140 = arith.maximumf %137, %139 : vector<7x224xf32>
      %141 = arith.index_cast %arg20 : i32 to index
      %c0_136 = arith.constant 0 : index
      %c0_137 = arith.constant 0 : index
      %142 = vector.load %arg19[%141, %c0_136, %c0_137] : memref<2x7x224xf32, #tpu.memory_space<vmem>>, vector<1x7x224xf32>
      %143 = vector.shape_cast %142 : vector<1x7x224xf32> to vector<7x224xf32>
      %144 = vector.shape_cast %140 : vector<7x224xf32> to vector<1x7x224xf32>
      tpu.vector_store %arg19[%141, %c0_136, %c0_137], %144 {strides = array<i32>} : memref<2x7x224xf32, #tpu.memory_space<vmem>>, vector<1x7x224xf32>,
    }
    %c2_i32_10 = arith.constant 2 : i32
    %c0_11 = arith.constant 0 : index
    %c0_12 = arith.constant 0 : index
    %c0_13 = arith.constant 0 : index
    %13 = vector.load %arg19[%c0_11, %c0_12, %c0_13] : memref<2x7x224xf32, #tpu.memory_space<vmem>>, vector<2x1x224xf32>
    %14 = vector.shape_cast %13 : vector<2x1x224xf32> to vector<2x224xf32>
    %15 = arith.truncf %14 : vector<2x224xf32> to vector<2x224xbf16>
    %c0_14 = arith.constant 0 : index
    %c0_15 = arith.constant 0 : index
    %c0_16 = arith.constant 0 : index
    %16 = vector.load %arg14[%c0_14, %c0_15, %c0_16] : memref<7x224x128xbf16, #tpu.memory_space<vmem>>, vector<1x224x128xbf16>
    %17 = vector.shape_cast %16 : vector<1x224x128xbf16> to vector<224x128xbf16>
    %cst_17 = arith.constant dense<0.000000e+00> : vector<2x128xf32>
    %18 = tpu.matmul %15, %17, %cst_17 {dimension_numbers = #tpu.dot_dimension_numbers<[1], [0], [0], [1], [0, 0, 1, 1], [], []>} : vector<2x224xbf16>, vector<224x128xbf16>, vector<2x128xf32> -> vector<2x128xf32>
    %c0_18 = arith.constant 0 : index
    %c1 = arith.constant 1 : index
    %c0_19 = arith.constant 0 : index
    %19 = vector.load %arg19[%c0_18, %c1, %c0_19] : memref<2x7x224xf32, #tpu.memory_space<vmem>>, vector<2x1x224xf32>
    %20 = vector.shape_cast %19 : vector<2x1x224xf32> to vector<2x224xf32>
    %21 = arith.truncf %20 : vector<2x224xf32> to vector<2x224xbf16>
    %c1_20 = arith.constant 1 : index
    %c0_21 = arith.constant 0 : index
    %c0_22 = arith.constant 0 : index
    %22 = vector.load %arg14[%c1_20, %c0_21, %c0_22] : memref<7x224x128xbf16, #tpu.memory_space<vmem>>, vector<1x224x128xbf16>
    %23 = vector.shape_cast %22 : vector<1x224x128xbf16> to vector<224x128xbf16>
    %cst_23 = arith.constant dense<0.000000e+00> : vector<2x128xf32>
    %24 = tpu.matmul %21, %23, %cst_23 {dimension_numbers = #tpu.dot_dimension_numbers<[1], [0], [0], [1], [0, 0, 1, 1], [], []>} : vector<2x224xbf16>, vector<224x128xbf16>, vector<2x128xf32> -> vector<2x128xf32>
    %25 = arith.addf %18, %24 : vector<2x128xf32>
    %c0_24 = arith.constant 0 : index
    %c2 = arith.constant 2 : index
    %c0_25 = arith.constant 0 : index
    %26 = vector.load %arg19[%c0_24, %c2, %c0_25] : memref<2x7x224xf32, #tpu.memory_space<vmem>>, vector<2x1x224xf32>
    %27 = vector.shape_cast %26 : vector<2x1x224xf32> to vector<2x224xf32>
    %28 = arith.truncf %27 : vector<2x224xf32> to vector<2x224xbf16>
    %c2_26 = arith.constant 2 : index
    %c0_27 = arith.constant 0 : index
    %c0_28 = arith.constant 0 : index
    %29 = vector.load %arg14[%c2_26, %c0_27, %c0_28] : memref<7x224x128xbf16, #tpu.memory_space<vmem>>, vector<1x224x128xbf16>
    %30 = vector.shape_cast %29 : vector<1x224x128xbf16> to vector<224x128xbf16>
    %cst_29 = arith.constant dense<0.000000e+00> : vector<2x128xf32>
    %31 = tpu.matmul %28, %30, %cst_29 {dimension_numbers = #tpu.dot_dimension_numbers<[1], [0], [0], [1], [0, 0, 1, 1], [], []>} : vector<2x224xbf16>, vector<224x128xbf16>, vector<2x128xf32> -> vector<2x128xf32>
    %32 = arith.addf %25, %31 : vector<2x128xf32>
    %c0_30 = arith.constant 0 : index
    %c3 = arith.constant 3 : index
    %c0_31 = arith.constant 0 : index
    %33 = vector.load %arg19[%c0_30, %c3, %c0_31] : memref<2x7x224xf32, #tpu.memory_space<vmem>>, vector<2x1x224xf32>
    %34 = vector.shape_cast %33 : vector<2x1x224xf32> to vector<2x224xf32>
    %35 = arith.truncf %34 : vector<2x224xf32> to vector<2x224xbf16>
    %c3_32 = arith.constant 3 : index
    %c0_33 = arith.constant 0 : index
    %c0_34 = arith.constant 0 : index
    %36 = vector.load %arg14[%c3_32, %c0_33, %c0_34] : memref<7x224x128xbf16, #tpu.memory_space<vmem>>, vector<1x224x128xbf16>
    %37 = vector.shape_cast %36 : vector<1x224x128xbf16> to vector<224x128xbf16>
    %cst_35 = arith.constant dense<0.000000e+00> : vector<2x128xf32>
    %38 = tpu.matmul %35, %37, %cst_35 {dimension_numbers = #tpu.dot_dimension_numbers<[1], [0], [0], [1], [0, 0, 1, 1], [], []>} : vector<2x224xbf16>, vector<224x128xbf16>, vector<2x128xf32> -> vector<2x128xf32>
    %39 = arith.addf %32, %38 : vector<2x128xf32>
    %c0_36 = arith.constant 0 : index
    %c4 = arith.constant 4 : index
    %c0_37 = arith.constant 0 : index
    %40 = vector.load %arg19[%c0_36, %c4, %c0_37] : memref<2x7x224xf32, #tpu.memory_space<vmem>>, vector<2x1x224xf32>
    %41 = vector.shape_cast %40 : vector<2x1x224xf32> to vector<2x224xf32>
    %42 = arith.truncf %41 : vector<2x224xf32> to vector<2x224xbf16>
    %c4_38 = arith.constant 4 : index
    %c0_39 = arith.constant 0 : index
    %c0_40 = arith.constant 0 : index
    %43 = vector.load %arg14[%c4_38, %c0_39, %c0_40] : memref<7x224x128xbf16, #tpu.memory_space<vmem>>, vector<1x224x128xbf16>
    %44 = vector.shape_cast %43 : vector<1x224x128xbf16> to vector<224x128xbf16>
    %cst_41 = arith.constant dense<0.000000e+00> : vector<2x128xf32>
    %45 = tpu.matmul %42, %44, %cst_41 {dimension_numbers = #tpu.dot_dimension_numbers<[1], [0], [0], [1], [0, 0, 1, 1], [], []>} : vector<2x224xbf16>, vector<224x128xbf16>, vector<2x128xf32> -> vector<2x128xf32>
    %46 = arith.addf %39, %45 : vector<2x128xf32>
    %c0_42 = arith.constant 0 : index
    %c5 = arith.constant 5 : index
    %c0_43 = arith.constant 0 : index
    %47 = vector.load %arg19[%c0_42, %c5, %c0_43] : memref<2x7x224xf32, #tpu.memory_space<vmem>>, vector<2x1x224xf32>
    %48 = vector.shape_cast %47 : vector<2x1x224xf32> to vector<2x224xf32>
    %49 = arith.truncf %48 : vector<2x224xf32> to vector<2x224xbf16>
    %c5_44 = arith.constant 5 : index
    %c0_45 = arith.constant 0 : index
    %c0_46 = arith.constant 0 : index
    %50 = vector.load %arg14[%c5_44, %c0_45, %c0_46] : memref<7x224x128xbf16, #tpu.memory_space<vmem>>, vector<1x224x128xbf16>
    %51 = vector.shape_cast %50 : vector<1x224x128xbf16> to vector<224x128xbf16>
    %cst_47 = arith.constant dense<0.000000e+00> : vector<2x128xf32>
    %52 = tpu.matmul %49, %51, %cst_47 {dimension_numbers = #tpu.dot_dimension_numbers<[1], [0], [0], [1], [0, 0, 1, 1], [], []>} : vector<2x224xbf16>, vector<224x128xbf16>, vector<2x128xf32> -> vector<2x128xf32>
    %53 = arith.addf %46, %52 : vector<2x128xf32>
    %c0_48 = arith.constant 0 : index
    %c6 = arith.constant 6 : index
    %c0_49 = arith.constant 0 : index
    %54 = vector.load %arg19[%c0_48, %c6, %c0_49] : memref<2x7x224xf32, #tpu.memory_space<vmem>>, vector<2x1x224xf32>
    %55 = vector.shape_cast %54 : vector<2x1x224xf32> to vector<2x224xf32>
    %56 = arith.truncf %55 : vector<2x224xf32> to vector<2x224xbf16>
    %c6_50 = arith.constant 6 : index
    %c0_51 = arith.constant 0 : index
    %c0_52 = arith.constant 0 : index
    %57 = vector.load %arg14[%c6_50, %c0_51, %c0_52] : memref<7x224x128xbf16, #tpu.memory_space<vmem>>, vector<1x224x128xbf16>
    %58 = vector.shape_cast %57 : vector<1x224x128xbf16> to vector<224x128xbf16>
    %cst_53 = arith.constant dense<0.000000e+00> : vector<2x128xf32>
    %59 = tpu.matmul %56, %58, %cst_53 {dimension_numbers = #tpu.dot_dimension_numbers<[1], [0], [0], [1], [0, 0, 1, 1], [], []>} : vector<2x224xbf16>, vector<224x128xbf16>, vector<2x128xf32> -> vector<2x128xf32>
    %60 = arith.addf %53, %59 : vector<2x128xf32>
    %c0_54 = arith.constant 0 : index
    %c0_55 = arith.constant 0 : index
    %61 = vector.load %arg15[%c0_54, %c0_55] : memref<1x128xf32, #tpu.memory_space<vmem>>, vector<1x128xf32>
    %62 = vector.broadcast %61 : vector<1x128xf32> to vector<2x128xf32>
    %63 = arith.addf %60, %62 : vector<2x128xf32>
    %c0_56 = arith.constant 0 : index
    %c0_57 = arith.constant 0 : index
    %64 = vector.load %arg16[%c0_56, %c0_57] : memref<2x128xf32, #tpu.memory_space<vmem>>, vector<2x128xf32>
    tpu.vector_store %arg16[%c0_56, %c0_57], %63 {strides = array<i32>} : memref<2x128xf32, #tpu.memory_space<vmem>>, vector<2x128xf32>,
    return
  }
  func.func @transform_0(%arg0: i32) -> (i32, i32, i32) {
    %c0_i32 = arith.constant 0 : i32
    %c0_i32_0 = arith.constant 0 : i32
    %c0_i32_1 = arith.constant 0 : i32
    return %arg0, %c0_i32, %c0_i32_0 : i32, i32, i32
  }
  func.func @transform_1(%arg0: i32) -> (i32, i32) {
    %c0_i32 = arith.constant 0 : i32
    %c0_i32_0 = arith.constant 0 : i32
    %c0_i32_1 = arith.constant 0 : i32
    return %c0_i32, %c0_i32_0 : i32, i32
  }
  func.func @transform_2(%arg0: i32) -> (i32, i32) {
    %c0_i32 = arith.constant 0 : i32
    %c0_i32_0 = arith.constant 0 : i32
    %c0_i32_1 = arith.constant 0 : i32
    return %c0_i32, %c0_i32_0 : i32, i32
  }
  func.func @transform_3(%arg0: i32) -> (i32, i32) {
    %c0_i32 = arith.constant 0 : i32
    %c0_i32_0 = arith.constant 0 : i32
    %c0_i32_1 = arith.constant 0 : i32
    return %c0_i32, %c0_i32_0 : i32, i32
  }
  func.func @transform_4(%arg0: i32) -> (i32, i32) {
    %c0_i32 = arith.constant 0 : i32
    %c0_i32_0 = arith.constant 0 : i32
    %c0_i32_1 = arith.constant 0 : i32
    return %c0_i32, %c0_i32_0 : i32, i32
  }
  func.func @transform_5(%arg0: i32) -> (i32, i32) {
    %c0_i32 = arith.constant 0 : i32
    %c0_i32_0 = arith.constant 0 : i32
    %c0_i32_1 = arith.constant 0 : i32
    return %c0_i32, %c0_i32_0 : i32, i32
  }
  func.func @transform_6(%arg0: i32) -> (i32, i32) {
    %c0_i32 = arith.constant 0 : i32
    %c0_i32_0 = arith.constant 0 : i32
    %c0_i32_1 = arith.constant 0 : i32
    return %c0_i32, %c0_i32_0 : i32, i32
  }
  func.func @transform_7(%arg0: i32) -> (i32, i32, i32) {
    %c0_i32 = arith.constant 0 : i32
    %c0_i32_0 = arith.constant 0 : i32
    %c0_i32_1 = arith.constant 0 : i32
    %c0_i32_2 = arith.constant 0 : i32
    return %c0_i32, %c0_i32_0, %c0_i32_1 : i32, i32, i32
  }
  func.func @transform_8(%arg0: i32) -> (i32, i32) {
    %c0_i32 = arith.constant 0 : i32
    %c0_i32_0 = arith.constant 0 : i32
    %c0_i32_1 = arith.constant 0 : i32
    return %c0_i32, %c0_i32_0 : i32, i32
  }
  func.func @transform_9(%arg0: i32) -> (i32, i32) {
    %c0_i32 = arith.constant 0 : i32
    %c0_i32_0 = arith.constant 0 : i32
    %c0_i32_1 = arith.constant 0 : i32
    return %c0_i32, %c0_i32_0 : i32, i32
  }
  func.func @transform_10(%arg0: i32) -> (i32, i32) {
    %c0_i32 = arith.constant 0 : i32
    %c0_i32_0 = arith.constant 0 : i32
    %c0_i32_1 = arith.constant 0 : i32
    return %c0_i32, %c0_i32_0 : i32, i32
  }
  func.func @transform_11(%arg0: i32) -> (i32, i32) {
    %c0_i32 = arith.constant 0 : i32
    %c0_i32_0 = arith.constant 0 : i32
    %c0_i32_1 = arith.constant 0 : i32
    return %c0_i32, %c0_i32_0 : i32, i32
  }
  func.func @transform_12(%arg0: i32) -> (i32, i32) {
    %c0_i32 = arith.constant 0 : i32
    %c0_i32_0 = arith.constant 0 : i32
    %c0_i32_1 = arith.constant 0 : i32
    return %c0_i32, %c0_i32_0 : i32, i32
  }
  func.func @transform_13(%arg0: i32) -> (i32, i32, i32) {
    %c0_i32 = arith.constant 0 : i32
    %c0_i32_0 = arith.constant 0 : i32
    %c0_i32_1 = arith.constant 0 : i32
    %c0_i32_2 = arith.constant 0 : i32
    return %c0_i32, %c0_i32_0, %c0_i32_1 : i32, i32, i32
  }
  func.func @transform_14(%arg0: i32) -> (i32, i32) {
    %c0_i32 = arith.constant 0 : i32
    %c0_i32_0 = arith.constant 0 : i32
    %c0_i32_1 = arith.constant 0 : i32
    return %c0_i32, %c0_i32_0 : i32, i32
  }
  func.func @transform_15(%arg0: i32) -> (i32, i32) {
    %c0_i32 = arith.constant 0 : i32
    %c0_i32_0 = arith.constant 0 : i32
    return %arg0, %c0_i32 : i32, i32
  }
}

</mosaic_0001>

<bundles_post_ra>
// kernel: convnet_forward.1
= control target key start
LH: loop header
LB: loop body
LE: loop exit
PB: predicated region body
PF: predicated region fallthrough
CT: control target
= control target key end

     0   :  { %20 = vsyncpa [#allocation6], 0  ;;  %s9455_s0 = inlined_call_operand.vmem [shape: f32[2,28,28], index: 0, kind: input, shape index: {}]   ;;  %s9456_s1 = inlined_call_operand.hbm [shape: bf16[140,448], index: 1, kind: input, shape index: {}]   ;;  %s9457_s2 = inlined_call_operand.hbm [shape: f32[1,448], index: 2, kind: input, shape index: {}]   ;;  %s9458_s3 = inlined_call_operand.hbm [shape: bf16[14,28], index: 3, kind: input, shape index: {}]   ;;  %s9459_s4 = inlined_call_operand.hbm [shape: bf16[14,28], index: 4, kind: input, shape index: {}]   ;;  %s9460_s5 = inlined_call_operand.hbm [shape: bf16[448,224], index: 5, kind: input, shape index: {}]   ;;  %s9461_s6 = inlined_call_operand.hbm [shape: bf16[448,224], index: 6, kind: input, shape index: {}]   ;;  %s9462_s7 = inlined_call_operand.hbm [shape: bf16[5,224,448], index: 7, kind: input, shape index: {}]   ;;  %s9463_s8 = inlined_call_operand.hbm [shape: f32[1,448], index: 8, kind: input, shape index: {}]   ;;  %s9464_s9 = inlined_call_operand.hbm [shape: bf16[7,14], index: 9, kind: input, shape index: {}]   ;;  %s9465_s10 = inlined_call_operand.hbm [shape: bf16[7,14], index: 10, kind: input, shape index: {}]   ;;  %s9466_s11 = inlined_call_operand.hbm [shape: bf16[448,224], index: 11, kind: input, shape index: {}]   ;;  %s9467_s12 = inlined_call_operand.hbm [shape: bf16[448,224], index: 12, kind: input, shape index: {}]   ;;  %s9468_s13 = inlined_call_operand.hbm [shape: bf16[7,224,128], index: 13, kind: input, shape index: {}]   ;;  %s9469_s14 = inlined_call_operand.hbm [shape: f32[1,128], index: 14, kind: input, shape index: {}]   ;;  %s9470_s15 = inlined_call_operand.hbm [shape: f32[2,128], index: 15, kind: output, shape index: {}]  }
   0x1   :  { %21 = vsyncpa [#allocation9], 0 }
   0x2   :  { %22 = vsyncpa [#allocation12], 0 }
   0x3   :  { %23 = vsyncpa [#allocation15], 0 }
   0x4   :  { %24 = vsyncpa [#allocation18], 0 }
   0x5   :  { %25 = vsyncpa [#allocation21], 0 }
   0x6   :  { %26 = vsyncpa [#allocation24], 0 }
   0x7   :  { %27 = vsyncpa [#allocation27], 0 }
   0x8   :  { %28 = vsyncpa [#allocation7], 0  ;;  %s8714_s18 = smov [#allocation8]   ;;  %s8358_s22 = scalar_lea.hbm %s9457_s2, 64 }
   0x9   :  { %s49_s19 = sshll.u32 %s8714_s18, 4  ;;  %p8359_p0 = scmp.ne.s32.totalorder %s9457_s2, %s8358_s22  ;;  %s50_s19 = int_to_ptr.vmem [resolvable:$true] %s49_s19 }
   0xa   :  { %p8362_p1 = scmp.lt.u32.totalorder %s8358_s22, %s9457_s2 }
   0xc   :  { %p8364_p2 = pnand %p8362_p1, %p8359_p0 }
   0xe   :  { %8367 = shalt.err (!%p8364_p2)
}
   0xf   :  { %s8368_s27 = scalar_lea.vmem %s50_s19, 64  ;;  %p8373_p4 = scmp.lt.s32.totalorder %s50_s19, %s50_s19 }
  0x10   :  { %p8369_p3 = scmp.ne.s32.totalorder %s50_s19, %s8368_s27  ;;  %p8374_p5 = scmp.lt.s32.totalorder %s8368_s27, %s8368_s27 }
  0x12   :  { %p8375_p6 = por %p8374_p5, %p8373_p4 }
  0x14   :  { %p8376_p7 = pnand %p8375_p6, %p8369_p3 }
  0x16   :  { %8379 = shalt.err (!%p8376_p7)
}
  0x17   :  { %52 = dma.hbm_to_vmem [thread:$0]  %s9457_s2, 64, %s50_s19, [#allocation9]  }
  0x18   :  { %s8715_s30 = smov [#allocation11]   ;;  %s8380_s20 = scalar_lea.hbm %s9459_s4, 128 }
  0x19   :  { %s70_s16 = sshll.u32 %s8715_s30, 4  ;;  %p8381_p8 = scmp.ne.s32.totalorder %s9459_s4, %s8380_s20  ;;  %s71_s16 = int_to_ptr.vmem [resolvable:$true] %s70_s16 }
  0x1a   :  { %p8384_p9 = scmp.lt.u32.totalorder %s8380_s20, %s9459_s4 }
  0x1c   :  { %p8386_p10 = pnand %p8384_p9, %p8381_p8 }
  0x1e   :  { %8389 = shalt.err (!%p8386_p10)
}
  0x1f   :  { %s8390_s25 = scalar_lea.vmem %s71_s16, 128  ;;  %p8395_p12 = scmp.lt.s32.totalorder %s71_s16, %s71_s16 }
  0x20   :  { %p8391_p11 = scmp.ne.s32.totalorder %s71_s16, %s8390_s25  ;;  %p8396_p13 = scmp.lt.s32.totalorder %s8390_s25, %s8390_s25 }
  0x22   :  { %p8397_p0 = por %p8396_p13, %p8395_p12 }
  0x24   :  { %p8398_p1 = pnand %p8397_p0, %p8391_p11 }
  0x26   :  { %8401 = shalt.err (!%p8398_p1)
}
  0x27   :  { %s8716_s2 = smov 64   ;;  %s8717_s19 = smov 4  }
  0x28   :  { %76 = dma.hbm_to_vmem [thread:$0]  %s9459_s4, 128, %s71_s16, [#allocation12], %s8716_s2, %s8716_s2, %s8717_s19  }
  0x29   :  { %s8718_s28 = smov [#allocation14]   ;;  %s8719_s30 = smov [#allocation17]  }
  0x2a   :  { %s94_s29 = sshll.u32 %s8718_s28, 4  ;;  %s119_s17 = sshll.u32 %s8719_s30, 4  ;;  %s95_s29 = int_to_ptr.vmem [resolvable:$true] %s94_s29  ;;  %s120_s17 = int_to_ptr.vmem [resolvable:$true] %s119_s17 }
  0x2b   :  { %s8402_s21 = scalar_lea.hbm %s9461_s6, 7168 }
  0x2c   :  { %p8403_p2 = scmp.ne.s32.totalorder %s9461_s6, %s8402_s21  ;;  %p8406_p3 = scmp.lt.u32.totalorder %s8402_s21, %s9461_s6 }
  0x2e   :  { %p8408_p4 = pnand %p8406_p3, %p8403_p2 }
  0x30   :  { %8411 = shalt.err (!%p8408_p4)
}
  0x31   :  { %s8412_s4 = scalar_lea.vmem %s95_s29, 7168  ;;  %p8417_p6 = scmp.lt.s32.totalorder %s95_s29, %s95_s29 }
  0x32   :  { %p8413_p5 = scmp.ne.s32.totalorder %s95_s29, %s8412_s4  ;;  %p8418_p7 = scmp.lt.s32.totalorder %s8412_s4, %s8412_s4 }
  0x34   :  { %p8419_p8 = por %p8418_p7, %p8417_p6 }
  0x36   :  { %p8420_p9 = pnand %p8419_p8, %p8413_p5 }
  0x38   :  { %8423 = shalt.err (!%p8420_p9)
}
  0x39   :  { %s8720_s16 = smov 128   ;;  %s8721_s26 = smov 8  }
  0x3a   :  { %100 = dma.hbm_to_vmem [thread:$0]  %s9461_s6, 7168, %s95_s29, [#allocation15], %s8720_s16, %s8720_s16, %s8721_s26  }
  0x3b   :  { %s8424_s20 = scalar_lea.hbm %s9463_s8, 64 }
  0x3c   :  { %p8425_p10 = scmp.ne.s32.totalorder %s9463_s8, %s8424_s20  ;;  %p8428_p11 = scmp.lt.u32.totalorder %s8424_s20, %s9463_s8 }
  0x3e   :  { %p8430_p12 = pnand %p8428_p11, %p8425_p10 }
  0x40   :  { %8433 = shalt.err (!%p8430_p12)
}
  0x41   :  { %s8434_s25 = scalar_lea.vmem %s120_s17, 64  ;;  %p8439_p0 = scmp.lt.s32.totalorder %s120_s17, %s120_s17 }
  0x42   :  { %p8435_p13 = scmp.ne.s32.totalorder %s120_s17, %s8434_s25  ;;  %p8440_p1 = scmp.lt.s32.totalorder %s8434_s25, %s8434_s25 }
  0x44   :  { %p8441_p2 = por %p8440_p1, %p8439_p0 }
  0x46   :  { %p8442_p3 = pnand %p8441_p2, %p8435_p13 }
  0x48   :  { %8445 = shalt.err (!%p8442_p3)
}
  0x49   :  { %122 = dma.hbm_to_vmem [thread:$0]  %s9463_s8, 64, %s120_s17, [#allocation18]  }
  0x4a   :  { %s8722_s4 = smov [#allocation20]   ;;  %s8723_s28 = smov [#allocation23]  }
  0x4b   :  { %s139_s27 = sshll.u32 %s8722_s4, 4  ;;  %s160_s30 = sshll.u32 %s8723_s28, 4  ;;  %s140_s27 = int_to_ptr.vmem [resolvable:$true] %s139_s27  ;;  %s8876_s30 = int_to_ptr.vmem [resolvable:$true] %s160_s30 }
  0x4c   :  { %s8446_s21 = scalar_lea.hbm %s9465_s10, 64 }
  0x4d   :  { %p8447_p4 = scmp.ne.s32.totalorder %s9465_s10, %s8446_s21  ;;  %p8450_p5 = scmp.lt.u32.totalorder %s8446_s21, %s9465_s10 }
  0x4f   :  { %p8452_p6 = pnand %p8450_p5, %p8447_p4 }
  0x51   :  { %8455 = shalt.err (!%p8452_p6)
}
  0x52   :  { %s8456_s8 = scalar_lea.vmem %s140_s27, 64  ;;  %p8461_p8 = scmp.lt.s32.totalorder %s140_s27, %s140_s27 }
  0x53   :  { %p8457_p7 = scmp.ne.s32.totalorder %s140_s27, %s8456_s8  ;;  %p8462_p9 = scmp.lt.s32.totalorder %s8456_s8, %s8456_s8 }
  0x55   :  { %p8463_p10 = por %p8462_p9, %p8461_p8 }
  0x57   :  { %p8464_p11 = pnand %p8463_p10, %p8457_p7 }
  0x59   :  { %8467 = shalt.err (!%p8464_p11)
}
  0x5a   :  { %142 = dma.hbm_to_vmem [thread:$0]  %s9465_s10, 64, %s140_s27, [#allocation21]  }
  0x5b   :  { %s8468_s28 = scalar_lea.hbm %s9467_s12, 7168 }
  0x5c   :  { %p8469_p12 = scmp.ne.s32.totalorder %s9467_s12, %s8468_s28  ;;  %p8472_p13 = scmp.lt.u32.totalorder %s8468_s28, %s9467_s12 }
  0x5e   :  { %p8474_p0 = pnand %p8472_p13, %p8469_p12 }
  0x60   :  { %8477 = shalt.err (!%p8474_p0)
}
  0x61   :  { %s8478_s23 = scalar_lea.vmem %s8876_s30, 7168  ;;  %p8483_p2 = scmp.lt.s32.totalorder %s8876_s30, %s8876_s30 }
  0x62   :  { %p8479_p1 = scmp.ne.s32.totalorder %s8876_s30, %s8478_s23  ;;  %p8484_p3 = scmp.lt.s32.totalorder %s8478_s23, %s8478_s23 }
  0x64   :  { %p8485_p4 = por %p8484_p3, %p8483_p2 }
  0x66   :  { %p8486_p5 = pnand %p8485_p4, %p8479_p1 }
  0x68   :  { %8489 = shalt.err (!%p8486_p5)
}
  0x69   :  { %166 = dma.hbm_to_vmem [thread:$0]  %s9467_s12, 7168, %s8876_s30, [#allocation24], %s8720_s16, %s8720_s16, %s8721_s26  }
  0x6a   :  { %s8724_s24 = smov [#allocation5]   ;;  %s8490_s6 = scalar_lea.hbm %s9456_s1, 4608 }
  0x6b   :  { %s36_s25 = sshll.u32 %s8724_s24, 4  ;;  %p8491_p6 = scmp.ne.s32.totalorder %s9456_s1, %s8490_s6  ;;  %s37_s25 = int_to_ptr.vmem [resolvable:$true] %s36_s25 }
  0x6c   :  { %p8494_p7 = scmp.lt.u32.totalorder %s8490_s6, %s9456_s1 }
  0x6e   :  { %p8496_p8 = pnand %p8494_p7, %p8491_p6 }
  0x70   :  { %8499 = shalt.err (!%p8496_p8)
}
  0x71   :  { %s8500_s20 = scalar_lea.vmem %s37_s25, 4608  ;;  %p8505_p10 = scmp.lt.s32.totalorder %s37_s25, %s37_s25 }
  0x72   :  { %p8501_p9 = scmp.ne.s32.totalorder %s37_s25, %s8500_s20  ;;  %p8506_p11 = scmp.lt.s32.totalorder %s8500_s20, %s8500_s20 }
  0x74   :  { %p8507_p12 = por %p8506_p11, %p8505_p10 }
  0x76   :  { %p8508_p13 = pnand %p8507_p12, %p8501_p9 }
  0x78   :  { %8511 = shalt.err (!%p8508_p13)
}
  0x79   :  { %s8725_s12 = smov 256   ;;  %s8726_s30 = smov 16  }
  0x7a   :  { %42 = dma.hbm_to_vmem [thread:$0]  %s9456_s1, 4608, %s37_s25, [#allocation6], %s8725_s12, %s8725_s12, %s8726_s30  }
  0x7b   :  { %s8727_s23 = smov [#allocation10]   ;;  %s8728_s27 = smov [#allocation13]  }
  0x7c   :  { %s58_s10 = sshll.u32 %s8727_s23, 4  ;;  %s82_s24 = sshll.u32 %s8728_s27, 4  ;;  %s59_s10 = int_to_ptr.vmem [resolvable:$true] %s58_s10  ;;  %s83_s24 = int_to_ptr.vmem [resolvable:$true] %s82_s24 }
  0x7d   :  { %s8512_s6 = scalar_lea.hbm %s9458_s3, 128 }
  0x7e   :  { %p8513_p0 = scmp.ne.s32.totalorder %s9458_s3, %s8512_s6  ;;  %p8516_p1 = scmp.lt.u32.totalorder %s8512_s6, %s9458_s3 }
  0x80   :  { %p8518_p2 = pnand %p8516_p1, %p8513_p0 }
  0x82   :  { %8521 = shalt.err (!%p8518_p2)
}
  0x83   :  { %s8522_s1 = scalar_lea.vmem %s59_s10, 128  ;;  %p8527_p4 = scmp.lt.s32.totalorder %s59_s10, %s59_s10 }
  0x84   :  { %p8523_p3 = scmp.ne.s32.totalorder %s59_s10, %s8522_s1  ;;  %p8528_p5 = scmp.lt.s32.totalorder %s8522_s1, %s8522_s1 }
  0x86   :  { %p8529_p6 = por %p8528_p5, %p8527_p4 }
  0x88   :  { %p8530_p7 = pnand %p8529_p6, %p8523_p3 }
  0x8a   :  { %8533 = shalt.err (!%p8530_p7)
}
  0x8b   :  { %64 = dma.hbm_to_vmem [thread:$0]  %s9458_s3, 128, %s59_s10, [#allocation9], %s8716_s2, %s8716_s2, %s8717_s19  }
  0x8c   :  { %s8534_s23 = scalar_lea.hbm %s9460_s5, 7168 }
  0x8d   :  { %p8535_p8 = scmp.ne.s32.totalorder %s9460_s5, %s8534_s23  ;;  %p8538_p9 = scmp.lt.u32.totalorder %s8534_s23, %s9460_s5 }
  0x8f   :  { %p8540_p10 = pnand %p8538_p9, %p8535_p8 }
  0x91   :  { %8543 = shalt.err (!%p8540_p10)
}
  0x92   :  { %s8544_s29 = scalar_lea.vmem %s83_s24, 7168  ;;  %p8549_p12 = scmp.lt.s32.totalorder %s83_s24, %s83_s24 }
  0x93   :  { %p8545_p11 = scmp.ne.s32.totalorder %s83_s24, %s8544_s29  ;;  %p8550_p13 = scmp.lt.s32.totalorder %s8544_s29, %s8544_s29 }
  0x95   :  { %p8551_p0 = por %p8550_p13, %p8549_p12 }
  0x97   :  { %p8552_p1 = pnand %p8551_p0, %p8545_p11 }
  0x99   :  { %8555 = shalt.err (!%p8552_p1)
}
  0x9a   :  { %88 = dma.hbm_to_vmem [thread:$0]  %s9460_s5, 7168, %s83_s24, [#allocation12], %s8720_s16, %s8720_s16, %s8721_s26  }
  0x9b   :  { %s8729_s4 = smov [#allocation16]   ;;  %s8730_s18 = smov [#allocation19]  }
  0x9c   :  { %s106_s28 = sshll.u32 %s8729_s4, 4  ;;  %s129_s1 = sshll.u32 %s8730_s18, 4  ;;  %s107_s28 = int_to_ptr.vmem [resolvable:$true] %s106_s28  ;;  %s130_s1 = int_to_ptr.vmem [resolvable:$true] %s129_s1 }
  0x9d   :  { %s8556_s21 = scalar_lea.hbm %s9462_s7, 35840 }
  0x9e   :  { %p8557_p2 = scmp.ne.s32.totalorder %s9462_s7, %s8556_s21  ;;  %p8560_p3 = scmp.lt.u32.totalorder %s8556_s21, %s9462_s7 }
  0xa0   :  { %p8562_p4 = pnand %p8560_p3, %p8557_p2 }
  0xa2   :  { %8565 = shalt.err (!%p8562_p4)
}
  0xa3   :  { %s8566_s5 = scalar_lea.vmem %s107_s28, 35840  ;;  %p8571_p6 = scmp.lt.s32.totalorder %s107_s28, %s107_s28 }
  0xa4   :  { %p8567_p5 = scmp.ne.s32.totalorder %s107_s28, %s8566_s5  ;;  %p8572_p7 = scmp.lt.s32.totalorder %s8566_s5, %s8566_s5 }
  0xa6   :  { %p8573_p8 = por %p8572_p7, %p8571_p6 }
  0xa8   :  { %p8574_p9 = pnand %p8573_p8, %p8567_p5 }
  0xaa   :  { %8577 = shalt.err (!%p8574_p9)
}
  0xab   :  { %112 = dma.hbm_to_vmem [thread:$0]  %s9462_s7, 35840, %s107_s28, [#allocation15], %s8725_s12, %s8725_s12, %s8726_s30  }
  0xac   :  { %s8578_s3 = scalar_lea.hbm %s9464_s9, 64 }
  0xad   :  { %p8579_p10 = scmp.ne.s32.totalorder %s9464_s9, %s8578_s3  ;;  %p8582_p11 = scmp.lt.u32.totalorder %s8578_s3, %s9464_s9 }
  0xaf   :  { %p8584_p12 = pnand %p8582_p11, %p8579_p10 }
  0xb1   :  { %8587 = shalt.err (!%p8584_p12)
}
  0xb2   :  { %s8588_s20 = scalar_lea.vmem %s130_s1, 64  ;;  %p8593_p0 = scmp.lt.s32.totalorder %s130_s1, %s130_s1 }
  0xb3   :  { %p8589_p13 = scmp.ne.s32.totalorder %s130_s1, %s8588_s20  ;;  %p8594_p1 = scmp.lt.s32.totalorder %s8588_s20, %s8588_s20 }
  0xb5   :  { %p8595_p2 = por %p8594_p1, %p8593_p0 }
  0xb7   :  { %p8596_p3 = pnand %p8595_p2, %p8589_p13 }
  0xb9   :  { %8599 = shalt.err (!%p8596_p3)
}
  0xba   :  { %132 = dma.hbm_to_vmem [thread:$0]  %s9464_s9, 64, %s130_s1, [#allocation18]  }
  0xbb   :  { %s8731_s30 = smov [#allocation22]   ;;  %s8732_s21 = smov [#allocation25]  }
  0xbc   :  { %s148_s28 = sshll.u32 %s8731_s30, 4  ;;  %s172_s22 = sshll.u32 %s8732_s21, 4  ;;  %s149_s28 = int_to_ptr.vmem [resolvable:$true] %s148_s28  ;;  %s173_s22 = int_to_ptr.vmem [resolvable:$true] %s172_s22 }
  0xbd   :  { %s8600_s8 = scalar_lea.hbm %s9466_s11, 7168 }
  0xbe   :  { %p8601_p4 = scmp.ne.s32.totalorder %s9466_s11, %s8600_s8  ;;  %p8604_p5 = scmp.lt.u32.totalorder %s8600_s8, %s9466_s11 }
  0xc0   :  { %p8606_p6 = pnand %p8604_p5, %p8601_p4 }
  0xc2   :  { %8609 = shalt.err (!%p8606_p6)
}
  0xc3   :  { %s8610_s9 = scalar_lea.vmem %s149_s28, 7168  ;;  %p8615_p8 = scmp.lt.s32.totalorder %s149_s28, %s149_s28 }
  0xc4   :  { %p8611_p7 = scmp.ne.s32.totalorder %s149_s28, %s8610_s9  ;;  %p8616_p9 = scmp.lt.s32.totalorder %s8610_s9, %s8610_s9 }
  0xc6   :  { %p8617_p10 = por %p8616_p9, %p8615_p8 }
  0xc8   :  { %p8618_p11 = pnand %p8617_p10, %p8611_p7 }
  0xca   :  { %8621 = shalt.err (!%p8618_p11)
}
  0xcb   :  { %154 = dma.hbm_to_vmem [thread:$0]  %s9466_s11, 7168, %s149_s28, [#allocation21], %s8720_s16, %s8720_s16, %s8721_s26  }
  0xcc   :  { %s8622_s4 = scalar_lea.hbm %s9468_s13, 12544 }
  0xcd   :  { %p8623_p12 = scmp.ne.s32.totalorder %s9468_s13, %s8622_s4  ;;  %p8626_p13 = scmp.lt.u32.totalorder %s8622_s4, %s9468_s13 }
  0xcf   :  { %p8628_p0 = pnand %p8626_p13, %p8623_p12 }
  0xd1   :  { %8631 = shalt.err (!%p8628_p0)
}
  0xd2   :  { %s8632_s12 = scalar_lea.vmem %s173_s22, 12544  ;;  %p8637_p2 = scmp.lt.s32.totalorder %s173_s22, %s173_s22 }
  0xd3   :  { %p8633_p1 = scmp.ne.s32.totalorder %s173_s22, %s8632_s12  ;;  %p8638_p3 = scmp.lt.s32.totalorder %s8632_s12, %s8632_s12 }
  0xd5   :  { %p8639_p4 = por %p8638_p3, %p8637_p2 }
  0xd7   :  { %p8640_p5 = pnand %p8639_p4, %p8633_p1 }
  0xd9   :  { %8643 = shalt.err (!%p8640_p5)
}
  0xda   :  { %178 = dma.hbm_to_vmem [thread:$0]  %s9468_s13, 12544, %s173_s22, [#allocation24], %s8716_s2, %s8716_s2, %s8717_s19  }
  0xdb   :  { %s8733_s26 = smov [#allocation26]   ;;  %s8644_s23 = scalar_lea.hbm %s9469_s14, 16 }
  0xdc   :  { %s185_s30 = sshll.u32 %s8733_s26, 4  ;;  %p8645_p6 = scmp.ne.s32.totalorder %s9469_s14, %s8644_s23  ;;  %s186_s30 = int_to_ptr.vmem [resolvable:$true] %s185_s30 }
  0xdd   :  { %p8648_p7 = scmp.lt.u32.totalorder %s8644_s23, %s9469_s14 }
  0xdf   :  { %p8650_p8 = pnand %p8648_p7, %p8645_p6 }
  0xe1   :  { %8653 = shalt.err (!%p8650_p8)
}
  0xe2   :  { %s8654_s17 = scalar_lea.vmem %s186_s30, 16  ;;  %s8658_s13 = scalar_lea.vmem %s186_s30, 32 }
  0xe3   :  { %p8655_p9 = scmp.ne.s32.totalorder %s186_s30, %s8654_s17  ;;  %p8659_p10 = scmp.lt.s32.totalorder %s186_s30, %s186_s30 }
  0xe4   :  { %p8660_p11 = scmp.lt.s32.totalorder %s8658_s13, %s8654_s17 }
  0xe6   :  { %p8661_p12 = por %p8660_p11, %p8659_p10 }
  0xe8   :  { %p8662_p13 = pnand %p8661_p12, %p8655_p9 }
  0xea   :  { %8665 = shalt.err (!%p8662_p13)
}
  0xeb   :  { %188 = dma.hbm_to_vmem [thread:$0]  %s9469_s14, 16, %s186_s30, [#allocation27]  }
  0xec   :  { %8692 = dma.done.wait [#allocation6], 4608  }
  0xed   :  { %8693 = vsyncadd [#allocation6], 4294962688 }
  0xee   :  { %8694 = dma.done.wait [#allocation9], 192  }
  0xef   :  { %8695 = vsyncadd [#allocation9], 4294967104 }
  0xf0   :  { %8696 = dma.done.wait [#allocation12], 7296  }
  0xf1   :  { %8697 = vsyncadd [#allocation12], 4294960000 }
  0xf2   :  { %8698 = dma.done.wait [#allocation15], 43008  }
  0xf3   :  { %8699 = vsyncadd [#allocation15], 4294924288 }
  0xf4   :  { %8700 = dma.done.wait [#allocation18], 128  }
  0xf5   :  { %8701 = vsyncadd [#allocation18], 4294967168 }
  0xf6   :  { %8702 = dma.done.wait [#allocation21], 7232  }
  0xf7   :  { %8703 = vsyncadd [#allocation21], 4294960064 }
  0xf8   :  { %8704 = dma.done.wait [#allocation24], 19712  }
  0xf9   :  { %8705 = vsyncadd [#allocation24], 4294947584 }
  0xfa   :  { %8706 = dma.done.wait [#allocation27], 16  }
  0xfb   :  { %8707 = vsyncadd [#allocation27], 4294967280  ;;  %vm232_vm0 = vcmask 222208   ;;  %vm236_vm1 = vcmask 909984   ;;  %vm234_vm2 = vcmask 450784   ;;  %v8734_v0 = vmov 0.0  }
  0xfc   :  { %233 = vst.msk [vmem:[#allocation2] sm:$0x3] %vm232_vm0, %v8734_v0  ;;  %vm238_vm3 = vcmask 1044354   ;;  %vm240_vm4 = vcmask 93186   ;;  %vm242_vm5 = vcmask 1040384   ;;  %vm243_vm6 = vcmask 782340  }
  0xfd   :  { %237 = vst.msk [vmem:[#allocation2 + $0x33] sm:$0x1] %vm236_vm1, %v8734_v0  ;;  %vm244_vm7 = vmor %vm243_vm6, %vm242_vm5  ;;  %v8735_v1 = vmov 0   ;;  %s9027_s14 = smov 0  }
  0xfe   :  { %235 = vst.msk [vmem:[#allocation2] sm:$0x1] %vm234_vm2, %v8734_v0 }
  0xff   :  { %239 = vst.msk [vmem:[#allocation2 + $0x30] sm:$0xc] %vm238_vm3, %v8734_v0 }
 0x100   :  { %241 = vst.msk [vmem:[#allocation2 + $0x38] sm:$0xc] %vm240_vm4, %v8734_v0 }
 0x101   :  { %245 = vst.msk [vmem:[#allocation3] sm:$0x11] %vm244_vm7, %v8735_v1  ;;  %246 = vst.msk [vmem:[#allocation3 + $0x10] sm:$0x11] %vm244_vm7, %v8735_v1 }
 0x102 LB: > { %v7448_v2 = vld [vmem:[#allocation5 + $0x4] ss:$16 sps:$4 sm:$0xff]   ;;  %v7450_v3 = vld [vmem:[#allocation5 + $0xc] ss:$16 sps:$4 sm:$0xff]   ;;  %s6660_s22 = sshll.u32 %s8712_s14, 5  ;;  %s8736_s29 = smov 56   ;;  %s8712_s14 = sphi %s9027_s14, %s252_s14  }
 0x103   : > { %v7452_v4 = vld [vmem:[#allocation5] ss:$16 sps:$4 sm:$0xff]   ;;  %v7453_v5 = vld [vmem:[#allocation5 + $0x8] ss:$16 sps:$4 sm:$0xff]   ;;  %s254_s1 = scalar_lea.vmem %s9455_s0, %s6660_s22  ;;  %648 = vmatprep.subr.bf16.mxu0 %v7448_v2  ;;  %701 = vmatprep.subr.bf16.mxu1 %v7450_v3  ;;  %v7454_v6 = vld [vmem:[#allocation5 + $0x24] ss:$16 sps:$4 sm:$0xff]  }
 0x104   : > { %v9036_v7 = vld [vmem:[%s254_s1] sm:$0xff]  ;;  %v9038_v8 = vld [vmem:[%s254_s1 + $0x8] sm:$0xff]  ;;  %v9040_v9 = vld [vmem:[%s254_s1 + $0x10] sm:$0xff]  ;;  %649 = vmatpush1.bf16.msra.mxu0 %v7452_v4  ;;  %702 = vmatpush1.bf16.msra.mxu1 %v7453_v5  ;;  %vm326_vm8 = vcmask 1046528   ;;  %vm352_vm9 = vcmask 1045504   ;;  %s8737_s3 = smov 28  }
 0x105   : > { %308 = vrot.lane.b32.xlu1 %v9036_v7, %s8736_s29  ;;  %v282_v10 = vrot.slane %v9036_v7, 7  ;;  %v283_v11 = vrot.slane %v9038_v8, 7  ;;  %650 = vmatprep.subr.bf16.mxu0 %v7454_v6  ;;  %v328_v12 = vrot.slane %v9038_v8, 1  ;;  %v330_v13 = vrot.slane %v9040_v9, 1  ;;  %v7456_v14 = vld [vmem:[#allocation5 + $0x2c] ss:$16 sps:$4 sm:$0xff]  }
 0x106   : > { %v7458_v15 = vld [vmem:[#allocation5 + $0x20] ss:$16 sps:$4 sm:$0xff]   ;;  %vm275_vm10 = vcmask 228354   ;;  %vm263_vm11 = vcmask 1041408   ;;  %v327_v17 = vrot.slane %v9036_v7, 1  ;;  %v354_v18 = vrot.slane %v9038_v8, 2  ;;  %703 = vmatprep.subr.bf16.mxu1 %v7456_v14 }
 0x107   : > { %289 = vrot.lane.b32.xlu0 %v282_v10, %s8737_s3  ;;  %v284_v16 = vsel %vm242_vm5, %v282_v10, %v283_v11  ;;  %v9054_v19 = vld [vmem:[%s254_s1 + $0x18] sm:$0xf]  ;;  %v356_v21 = vrot.slane %v9040_v9, 2  ;;  %v7460_v22 = vld [vmem:[#allocation5 + $0x44] ss:$16 sps:$4 sm:$0xff]   ;;  %v264_v23 = vrot.slane %v9036_v7, 6  ;;  %v331_v24 = vsel %vm326_vm8, %v328_v12, %v330_v13 }
 0x108   : > { %v7459_v20 = vld [vmem:[#allocation5 + $0x28] ss:$16 sps:$4 sm:$0xff]   ;;  %651 = vmatpush1.bf16.msra.mxu0 %v7458_v15  ;;  %v7462_v25 = vld [vmem:[#allocation5 + $0x4c] ss:$16 sps:$4 sm:$0xff]   ;;  %v7464_v26 = vld [vmem:[#allocation5 + $0x40] ss:$16 sps:$4 sm:$0xff]   ;;  %v329_v32 = vsel %vm326_vm8, %v327_v17, %v328_v12 }
 0x109   : > { %310 = vrot.lane.b32.xlu1 %v9038_v8, %s8736_s29  ;;  %704 = vmatpush1.bf16.msra.mxu1 %v7459_v20  ;;  %v7465_v27 = vld [vmem:[#allocation5 + $0x48] ss:$16 sps:$4 sm:$0xff]   ;;  %v408_v28 = vld [vmem:[#allocation5 + $0x60] sm:$0xff]  ;;  %v410_v29 = vld [vmem:[#allocation5 + $0x70] sm:$0xff]  ;;  %276 = vst.msk [vmem:[#allocation2] sm:$0xfc] %vm275_vm10, %v264_v23  ;;  %v357_v37 = vsel %vm352_vm9, %v354_v18, %v356_v21 }
 0x10a   : > { %652 = vmatprep.subr.bf16.mxu0 %v7460_v22  ;;  %v7466_v30 = vld [vmem:[#allocation5 + $0x64] ss:$16 sps:$4 sm:$0xff]   ;;  %v265_v31 = vrot.slane %v9038_v8, 6  ;;  %vm277_vm12 = vcmask 228352   ;;  %v353_v33 = vrot.slane %v9036_v7, 2  ;;  %705 = vmatprep.subr.bf16.mxu1 %v7462_v25  ;;  %v409_v34 = vld [vmem:[#allocation5 + $0x68] sm:$0xff]  ;;  %v6673_v41 = vcombine.low %v408_v28, %v410_v29 }
 0x10b   : > { %291 = vrot.lane.b32.xlu0 %v284_v16, %s8737_s3  ;;  %v411_v35 = vld [vmem:[#allocation5 + $0x78] sm:$0xff]  ;;  %s8738_s10 = smov 84   ;;  %v285_v38 = vrot.slane %v9040_v9, 7  ;;  %v287_v39 = vrot.slane %v9054_v19, 7  ;;  %v412_v43 = vld [vmem:[#allocation5 + $0x80] sm:$0xff]  ;;  %v414_v44 = vld [vmem:[#allocation5 + $0x90] sm:$0xff] }
 0x10c   : > { %v7468_v36 = vld [vmem:[#allocation5 + $0x6c] ss:$16 sps:$4 sm:$0xff]   ;;  %v266_v40 = vsel %vm263_vm11, %v264_v23, %v265_v31  ;;  %653 = vmatpush1.bf16.msra.mxu0 %v7464_v26  ;;  %v6675_v42 = vcombine.low %v409_v34, %v411_v35  ;;  %v267_v45 = vrot.slane %v9040_v9, 6  ;;  %v269_v46 = vrot.slane %v9054_v19, 6  ;;  %v7470_v47 = vld [vmem:[#allocation5 + $0x84] ss:$16 sps:$4 sm:$0xff]  }
 0x10d   : > { %336 = vrot.lane.b32.xlu1 %v331_v24, %s8738_s10  ;;  %706 = vmatpush1.bf16.msra.mxu1 %v7465_v27  ;;  %278 = vst.msk [vmem:[#allocation2 + $0x10] sm:$0xff] %vm277_vm12, %v266_v40  ;;  %v413_v48 = vld [vmem:[#allocation5 + $0x88] sm:$0xff]  ;;  %v415_v49 = vld [vmem:[#allocation5 + $0x98] sm:$0xff]  ;;  %vm280_vm13 = vcmask 224256   ;;  %v355_v50 = vsel %vm352_vm9, %v353_v33, %v354_v18  ;;  %s8739_s4 = smov 112   ;;  %v288_v54 = vsel %vm242_vm5, %v285_v38, %v287_v39  ;;  %v416_v57 = vld [vmem:[#allocation5 + $0xa0] sm:$0xff] }
 0x10e   : > { %654 = vmatprep.subr.bf16.mxu0 %v7466_v30  ;;  %707 = vmatprep.subr.bf16.mxu1 %v7468_v36  ;;  %v7472_v51 = vld [vmem:[#allocation5 + $0x8c] ss:$16 sps:$4 sm:$0xff]   ;;  %v270_v52 = vsel %vm263_vm11, %v267_v45, %v269_v46  ;;  %v268_v53 = vsel %vm263_vm11, %v265_v31, %v267_v45  ;;  %v6677_v55 = vcombine.low %v412_v43, %v414_v44  ;;  %v418_v58 = vld [vmem:[#allocation5 + $0xb0] sm:$0xff]  ;;  %v420_v0 = vld [vmem:[#allocation5 + $0xc0] sm:$0xff]  ;;  %v332_v8 = vrot.slane %v9054_v19, 1  ;;  %s7363_s18 = sshll.u32 %s8712_s14, 4 }
 0x10f   : > { %334 = vrot.lane.b32.xlu0 %v329_v32, %s8738_s10  ;;  %281 = vst.msk [vmem:[#allocation2 + $0x30] sm:$0xf] %vm280_vm13, %v270_v52  ;;  %v6679_v56 = vcombine.low %v413_v48, %v415_v49  ;;  %v7474_v59 = vld [vmem:[#allocation5 + $0xa4] ss:$16 sps:$4 sm:$0xff]   ;;  %v417_v60 = vld [vmem:[#allocation5 + $0xa8] sm:$0xff]  ;;  %v419_v61 = vld [vmem:[#allocation5 + $0xb8] sm:$0xff]  ;;  %v286_v62 = vsel %vm242_vm5, %v283_v11, %v285_v38  ;;  %v6681_v4 = vcombine.low %v416_v57, %v418_v58 }
 0x110   : > { %279 = vst.msk [vmem:[#allocation2 + $0x20] sm:$0xff] %vm277_vm12, %v268_v53  ;;  %655 = vmatpush1.bf16.msra.mxu0 %v6673_v41  ;;  %v7476_v63 = vld [vmem:[#allocation5 + $0xac] ss:$16 sps:$4 sm:$0xff]   ;;  %v422_v2 = vld [vmem:[#allocation5 + $0xd0] sm:$0xff]  ;;  %v6683_v5 = vcombine.low %v417_v60, %v419_v61  ;;  %v424_v11 = vld [vmem:[#allocation5 + $0xe0] sm:$0xff]  ;;  %v333_v26 = vsel %vm326_vm8, %v330_v13, %v332_v8  ;;  %v358_v27 = vrot.slane %v9054_v19, 2 }
 0x111   : > { %362 = vrot.lane.b32.xlu1 %v357_v37, %s8739_s4  ;;  %708 = vmatpush1.bf16.msra.mxu1 %v6675_v42  ;;  %v7478_v3 = vld [vmem:[#allocation5 + $0xc4] ss:$16 sps:$4 sm:$0xff]   ;;  %v421_v6 = vld [vmem:[#allocation5 + $0xc8] sm:$0xff]  ;;  %v423_v7 = vld [vmem:[#allocation5 + $0xd8] sm:$0xff]  ;;  %v6685_v17 = vcombine.low %v420_v0, %v422_v2  ;;  %vm301_vm14 = vcmask 457953   ;;  %vm320_vm15 = vcmask 687552  }
 0x112   : > { %656 = vmatprep.subr.bf16.mxu0 %v7470_v47  ;;  %709 = vmatprep.subr.bf16.mxu1 %v7472_v51  ;;  %v7480_v10 = vld [vmem:[#allocation5 + $0xcc] ss:$16 sps:$4 sm:$0xff]   ;;  %v426_v12 = vld [vmem:[#allocation5 + $0xf0] sm:$0xff]  ;;  %v6687_v18 = vcombine.low %v421_v6, %v423_v7  ;;  %v428_v22 = vld [vmem:[#allocation5 + $0x100] sm:$0xff]  ;;  %v359_v13 = vsel %vm352_vm9, %v356_v21, %v358_v27  ;;  %vm303_vm0 = vcmask 457952   ;;  %vm346_vm1 = vcmask 917152  }
 0x113   : > { %360 = vrot.lane.b32.xlu0 %v355_v50, %s8739_s4  ;;  %v7482_v14 = vld [vmem:[#allocation5 + $0xe4] ss:$16 sps:$4 sm:$0xff]   ;;  %v425_v15 = vld [vmem:[#allocation5 + $0xe8] sm:$0xff]  ;;  %v427_v16 = vld [vmem:[#allocation5 + $0xf8] sm:$0xff]  ;;  %v6689_v29 = vcombine.low %v424_v11, %v426_v12  ;;  %vm372_vm2 = vcmask 1048448   ;;  %vm374_vm3 = vcmask 97280  }
 0x114   : > { %657 = vmatpush1.bf16.msra.mxu0 %v6677_v55  ;;  %v7484_v20 = vld [vmem:[#allocation5 + $0xec] ss:$16 sps:$4 sm:$0xff]   ;;  %v430_v23 = vld [vmem:[#allocation5 + $0x110] sm:$0x33]  ;;  %v6691_v30 = vcombine.low %v425_v15, %v427_v16  ;;  %vm306_vm4 = vcmask 453856   ;;  %vm324_vm6 = vcmask 683456  }
 0x115   : > { %295 = vrot.lane.b32.xlu1 %v288_v54, %s8737_s3  ;;  %710 = vmatpush1.bf16.msra.mxu1 %v6679_v56  ;;  %v429_v24 = vld [vmem:[#allocation5 + $0x108] sm:$0xff]  ;;  %v431_v25 = vld [vmem:[#allocation5 + $0x118] sm:$0x33]  ;;  %v7486_v28 = vld [vmem:[#allocation5 + $0x104] ss:$16 sps:$4 sm:$0x3f]   ;;  %v6693_v32 = vcombine.low %v428_v22, %v430_v23 }
 0x116   : > { %658 = vmatprep.subr.bf16.mxu0 %v7474_v59  ;;  %711 = vmatprep.subr.bf16.mxu1 %v7476_v63  ;;  %v7488_v31 = vld [vmem:[#allocation5 + $0x10c] ss:$16 sps:$4 sm:$0x3f]   ;;  %v6695_v33 = vcombine.low %v429_v24, %v431_v25  ;;  %vm350_vm7 = vcmask 912032   ;;  %vm380_vm10 = vcmask 1042304   ;;  %vm382_vm11 = vcmask 91136  }
 0x117   : > { %293 = vrot.lane.b32.xlu0 %v286_v62, %s8737_s3  ;;  %v8740_v61 = vmov 0   ;;  %v434_v62 = vlaneseq  ;;  %vm1865_vm13 = vcmask 1043457   ;;  %s5204_s25 = scalar_lea.vmem [#allocation4], %s7363_s18  ;;  %s252_s14 = sadd.s32 1, %s8712_s14  }
 0x118   : > { %659 = vmatpush1.bf16.msra.mxu0 %v6681_v4  ;;  %v643_v34 = vsel %vm352_vm9, %v6695_v33, 0  ;;  %p249_p0 = scmp.ge.s32.totalorder %s252_s14, 2  }
 0x119   : > { %314 = vrot.lane.b32.xlu1 %v9054_v19, %s8736_s29  ;;  %712 = vmatpush1.bf16.msra.mxu1 %v6683_v5  ;;  %v637_v19 = vsel %vm352_vm9, %v6693_v32, 0  ;;  %v9131_v63 = vshrl.u32 %v434_v62, 7  ;;  %s8741_s0 = smov (%p249_p0), [#allocation28]  }
 0x11a   : > { %660 = vmatprep.subr.bf16.mxu0 %v7478_v3  ;;  %713 = vmatprep.subr.bf16.mxu1 %v7480_v10  ;;  %v432_v3 = vld [vmem:[#allocation8] sm:$0xf]  ;;  %s6635_s20 = sshll.u32 (%p249_p0), %s8741_s0, 4  ;;  %s6636_s20 = int_to_ptr.vmem [resolvable:$true] %s6635_s20 }
 0x11b   : > { %312 = vrot.lane.b32.xlu0 %v9040_v9, %s8736_s29  ;;  %v9134_v0 = vsub.s32 0, %v9131_v63  ;;  %v444_v2 = vsub.s32 2, %v9131_v63  ;;  %v9138_v4 = vsub.s32 1, %v9131_v63  ;;  %v448_v5 = vsub.s32 3, %v9131_v63  ;;  %s8666_s7 = scalar_lea.vmem (%p249_p0), %s6636_s20, 32  ;;  %p8671_p2 = scmp.lt.s32.totalorder (%p249_p0), %s6636_s20, %s6636_s20 }
 0x11c   : > { %661 = vmatpush1.bf16.msra.mxu0 %v6685_v17  ;;  %p8667_p1 = scmp.ne.s32.totalorder (%p249_p0), %s6636_s20, %s8666_s7  ;;  %p8672_p3 = scmp.lt.s32.totalorder (%p249_p0), %s8666_s7, %s8666_s7 }
 0x11d   : > { %340 = vrot.lane.b32.xlu1 %v332_v8, %s8738_s10  ;;  %714 = vmatpush1.bf16.msra.mxu1 %v6687_v18  ;;  %v437_v6 = vrot.slane %v432_v3, %v9134_v0  ;;  %v445_v7 = vrot.slane %v432_v3, %v444_v2  ;;  %v441_v10 = vrot.slane %v432_v3, %v9138_v4 }
 0x11e   : > { %662 = vmatprep.subr.bf16.mxu0 %v7482_v14  ;;  %715 = vmatprep.subr.bf16.mxu1 %v7484_v20  ;;  %v449_v8 = vrot.slane %v432_v3, %v448_v5  ;;  %p8673_p4 = por (%p249_p0), %p8672_p3, %p8671_p2 }
 0x11f   : > { %338 = vrot.lane.b32.xlu0 %v333_v26, %s8738_s10 }
 0x120   : > { %663 = vmatpush1.bf16.msra.mxu0 %v6689_v29  ;;  %p8674_p5 = pnand (%p249_p0), %p8673_p4, %p8667_p1 }
 0x121   : > { %366 = vrot.lane.b32.xlu1 %v358_v27, %s8739_s4  ;;  %716 = vmatpush1.bf16.msra.mxu1 %v6691_v30 }
 0x122   : > { %6697 = vmatprep.subr.msk.bf16.mxu0 %vm352_vm9, %v7486_v28  ;;  %6700 = vmatprep.subr.msk.bf16.mxu1 %vm352_vm9, %v7488_v31 }
 0x123   : > { %364 = vrot.lane.b32.xlu0 %v359_v13, %s8739_s4 }
 0x124   : > { %665 = vmatpush1.bf16.msra.mxu0 %v637_v19 }
 0x125   : > { %718 = vmatpush1.bf16.msra.mxu1 %v643_v34 }
 0x177   : > { %v309_v9 = vpop.permute.xlu1 %308 }
 0x179   : > { %v290_v21 = vpop.permute.xlu0 %289 }
 0x17a   : > { %302 = vst.msk [vmem:[#allocation2] sm:$0xfe] %vm301_vm14, %v290_v21  ;;  %vm1866_vm14 = vcmask 785413  }
 0x17b   : > { %v311_v35 = vpop.permute.xlu1 %310  ;;  %321 = vst.msk [vmem:[#allocation2] sm:$0xff] %vm320_vm15, %v309_v9 }
 0x17d   : > { %v292_v36 = vpop.permute.xlu0 %291 }
 0x17e   : > { %304 = vst.msk [vmem:[#allocation2 + $0x10] sm:$0xff] %vm303_vm0, %v292_v36 }
 0x17f   : > { %v337_v37 = vpop.permute.xlu1 %336  ;;  %322 = vst.msk [vmem:[#allocation2 + $0x10] sm:$0xff] %vm320_vm15, %v311_v35 }
 0x180   : > { %348 = vst.msk [vmem:[#allocation2 + $0x10] sm:$0xff] %vm346_vm1, %v337_v37 }
 0x181   : > { %v335_v38 = vpop.permute.xlu0 %334 }
 0x182   : > { %347 = vst.msk [vmem:[#allocation2] sm:$0xff] %vm346_vm1, %v335_v38 }
 0x183   : > { %v363_v39 = vpop.permute.xlu1 %362 }
 0x184   : > { %376 = vst.msk [vmem:[#allocation2 + $0x10] sm:$0xff] %vm372_vm2, %v363_v39 }
 0x185   : > { %377 = vst.msk [vmem:[#allocation2 + $0x18] sm:$0xff] %vm374_vm3, %v363_v39  ;;  %v361_v40 = vpop.permute.xlu0 %360 }
 0x186   : > { %373 = vst.msk [vmem:[#allocation2] sm:$0xff] %vm372_vm2, %v361_v40 }
 0x187   : > { %375 = vst.msk [vmem:[#allocation2 + $0x8] sm:$0xff] %vm374_vm3, %v361_v40  ;;  %v296_v41 = vpop.permute.xlu1 %295 }
 0x188   : > { %307 = vst.msk [vmem:[#allocation2 + $0x30] sm:$0xf] %vm306_vm4, %v296_v41 }
 0x189   : > { %v294_v42 = vpop.permute.xlu0 %293 }
 0x18a   : > { %305 = vst.msk [vmem:[#allocation2 + $0x20] sm:$0xff] %vm303_vm0, %v294_v42  ;;  %vm1867_vm0 = vmor %vm1866_vm14, %vm1865_vm13 }
 0x18b   : > { %v315_v43 = vpop.permute.xlu1 %314  ;;  %v386_v45 = vld [vmem:[#allocation2 + $0x10] sm:$0xff] }
 0x18c   : > { %v387_v44 = vld [vmem:[#allocation2 + $0x18] sm:$0xff]  ;;  %325 = vst.msk [vmem:[#allocation2 + $0x30] sm:$0xf] %vm324_vm6, %v315_v43  ;;  %vm2292_vm6 = vcmask 785408  }
 0x18d   : > { %v313_v46 = vpop.permute.xlu0 %312  ;;  %v384_v48 = vld [vmem:[#allocation2] sm:$0xff] }
 0x18e   : > { %v385_v47 = vld [vmem:[#allocation2 + $0x8] sm:$0xff]  ;;  %323 = vst.msk [vmem:[#allocation2 + $0x20] sm:$0xff] %vm320_vm15, %v313_v46  ;;  %v392_v50 = vpack.c.bf16 %v386_v45, %v384_v48  ;;  %vm1857_vm15 = vcmask 1044484  }
 0x18f   : > { %v393_v49 = vpack.c.bf16 %v387_v44, %v385_v47  ;;  %v341_v51 = vpop.permute.xlu1 %340 }
 0x190   : > { %351 = vst.msk [vmem:[#allocation2 + $0x30] sm:$0x7] %vm350_vm7, %v341_v51  ;;  %vm3273_vm7 = vsmask.f32 6400 }
 0x191   : > { %6698 = vmatprep.mubr.msk.bf16.mxu0 %vm374_vm3, %v393_v49  ;;  %6701 = vmatprep.mubr.msk.bf16.mxu1 %vm374_vm3, %v393_v49  ;;  %v339_v52 = vpop.permute.xlu0 %338 }
 0x192   : > { %681 = vmatmul.mubr.bf16.vlgmr.msra.gmra.mrb[0].mxu0 %v392_v50  ;;  %734 = vmatmul.mubr.bf16.vlgmr.msra.gmra.mrb[0].mxu1 %v392_v50  ;;  %349 = vst.msk [vmem:[#allocation2 + $0x20] sm:$0xff] %vm346_vm1, %v339_v52  ;;  %vm1869_vm1 = vcmask 1043456  }
 0x193   : > { %v367_v53 = vpop.permute.xlu1 %366 }
 0x194   : > { %381 = vst.msk [vmem:[#allocation2 + $0x30] sm:$0x3] %vm380_vm10, %v367_v53 }
 0x195   : > { %383 = vst.msk [vmem:[#allocation2 + $0x38] sm:$0x3] %vm382_vm11, %v367_v53  ;;  %v365_v54 = vpop.permute.xlu0 %364 }
 0x196   : > { %378 = vst.msk [vmem:[#allocation2 + $0x20] sm:$0xff] %vm372_vm2, %v365_v54  ;;  %vm1870_vm2 = vcmask 785412  }
 0x197   : > { %379 = vst.msk [vmem:[#allocation2 + $0x28] sm:$0xff] %vm374_vm3, %v365_v54  ;;  %vm1871_vm4 = vmor %vm1870_vm2, %vm1869_vm1 }
 0x19b   : > { %v390_v56 = vld [vmem:[#allocation2 + $0x30] sm:$0xf] }
 0x19c   : > { %v391_v55 = vld [vmem:[#allocation2 + $0x38] sm:$0xf] }
 0x19d   : > { %v388_v58 = vld [vmem:[#allocation2 + $0x20] sm:$0xff] }
 0x19e   : > { %v389_v57 = vld [vmem:[#allocation2 + $0x28] sm:$0xff]  ;;  %v394_v60 = vpack.c.bf16 %v390_v56, %v388_v58 }
 0x19f   : > { %v395_v59 = vpack.c.bf16 %v391_v55, %v389_v57 }
 0x1a1   : > { %6699 = vmatprep.mubr.msk.bf16.mxu0 %vm374_vm3, %v395_v59  ;;  %6702 = vmatprep.mubr.msk.bf16.mxu1 %vm374_vm3, %v395_v59  ;;  %vm1858_vm3 = vmor %vm242_vm5, %vm1857_vm15  ;;  %vm5333_vm5 = vcmask (%p249_p0), 1041409  }
 0x1a2   : > { %691 = vmatmul.mubr.bf16.gmra.mrb[4].mxu0 %v394_v60  ;;  %744 = vmatmul.mubr.bf16.gmra.mrb[4].mxu1 %v394_v60 }
 0x1a3   : > { %832 = vmatprep.mubr.bf16.mxu0 %v8740_v61  ;;  %875 = vmatprep.mubr.bf16.mxu1 %v8740_v61 }
 0x265   : > { %v682_v11 = vpop.f32.mrb[0].mxu0  ;;  %v735_v12 = vpop.f32.mrb[0].mxu1 }
 0x266   : > { %v683_v14 = vadd.f32 %v682_v11, %v437_v6  ;;  %v736_v15 = vadd.f32 %v735_v12, %v445_v7  ;;  %v684_v16 = vpop.f32.mrb[1].mxu0  ;;  %v737_v17 = vpop.f32.mrb[1].mxu1 }
 0x267   : > { %v685_v18 = vadd.f32 %v684_v16, %v441_v10  ;;  %v738_v20 = vadd.f32 %v737_v17, %v449_v8  ;;  %v686_v22 = vpop.f32.mrb[2].mxu0  ;;  %v739_v23 = vpop.f32.mrb[2].mxu1  ;;  %v7491_v16 = vld [vmem:[#allocation11] sm:$0x7f]   ;;  %v7492_v17 = vld [vmem:[#allocation13] ss:$8 sps:$4 sm:$0xff]  }
 0x268   : > { %v687_v24 = vadd.f32 %v686_v22, %v437_v6  ;;  %v740_v25 = vadd.f32 %v739_v23, %v445_v7  ;;  %v688_v26 = vpop.f32.mrb[3].mxu0  ;;  %v741_v27 = vpop.f32.mrb[3].mxu1  ;;  %v754_v30 = vmax.f32 %v683_v14, 0.0  ;;  %v756_v31 = vmax.f32 %v736_v15, 0.0  ;;  %v7503_v22 = vld [vmem:[#allocation14 + $0x14] ss:$8 sps:$4 sm:$0xff]  }
 0x269   : > { %v689_v28 = vadd.f32 %v688_v26, %v441_v10  ;;  %v742_v29 = vadd.f32 %v741_v27, %v449_v8  ;;  %v755_v13 = vmax.f32 %v685_v18, 0.0  ;;  %v757_v19 = vmax.f32 %v738_v20, 0.0  ;;  %v7495_v18 = vld [vmem:[#allocation14] ss:$8 sps:$4 sm:$0xff]   ;;  %v7500_v20 = vld [vmem:[#allocation13 + $0x14] ss:$8 sps:$4 sm:$0xff]  }
 0x26a   : > { %v758_v32 = vmax.f32 %v687_v24, 0.0  ;;  %v760_v33 = vmax.f32 %v740_v25, 0.0  ;;  %v7498_v23 = vld [vmem:[#allocation13 + $0x10] ss:$8 sps:$4 sm:$0xff]   ;;  %v7506_v25 = vld [vmem:[#allocation13 + $0x24] ss:$8 sps:$4 sm:$0xff]  }
 0x26b   : > { %v759_v34 = vmax.f32 %v689_v28, 0.0  ;;  %v761_v9 = vmax.f32 %v742_v29, 0.0  ;;  %v7501_v24 = vld [vmem:[#allocation14 + $0x10] ss:$8 sps:$4 sm:$0xff]   ;;  %v7509_v26 = vld [vmem:[#allocation14 + $0x24] ss:$8 sps:$4 sm:$0xff]  }
 0x26c   : > { %v770_v21 = vpack.c.bf16 %v758_v32, %v754_v30  ;;  %v772_v35 = vpack.c.bf16 %v760_v33, %v756_v31  ;;  %v7504_v27 = vld [vmem:[#allocation13 + $0x20] ss:$8 sps:$4 sm:$0xff]   ;;  %v7512_v29 = vld [vmem:[#allocation13 + $0x34] ss:$8 sps:$4 sm:$0xff]   ;;  %v7510_v31 = vld [vmem:[#allocation13 + $0x30] ss:$8 sps:$4 sm:$0xff]  }
 0x26d   : > { %v771_v36 = vpack.c.bf16 %v759_v34, %v755_v13  ;;  %v773_v37 = vpack.c.bf16 %v761_v9, %v757_v19  ;;  %v7507_v28 = vld [vmem:[#allocation14 + $0x20] ss:$8 sps:$4 sm:$0xff]   ;;  %v7515_v30 = vld [vmem:[#allocation14 + $0x34] ss:$8 sps:$4 sm:$0xff]   ;;  %v7513_v32 = vld [vmem:[#allocation14 + $0x30] ss:$8 sps:$4 sm:$0xff]  }
 0x26e   : > { %v7518_v33 = vld [vmem:[#allocation13 + $0x44] ss:$8 sps:$4 sm:$0xff]   ;;  %v7516_v19 = vld [vmem:[#allocation13 + $0x40] ss:$8 sps:$4 sm:$0xff]   ;;  %v7524_v9 = vld [vmem:[#allocation13 + $0x54] ss:$8 sps:$4 sm:$0xff]  }
 0x26f   : > { %800 = vmatprep.subr.bf16.mxu0 %v771_v36  ;;  %843 = vmatprep.subr.bf16.mxu1 %v773_v37  ;;  %v7521_v13 = vld [vmem:[#allocation14 + $0x44] ss:$8 sps:$4 sm:$0xff]   ;;  %v7519_v34 = vld [vmem:[#allocation14 + $0x40] ss:$8 sps:$4 sm:$0xff]  }
 0x270   : > { %801 = vmatpush1.bf16.msra.mxu0 %v770_v21  ;;  %844 = vmatpush1.bf16.msra.mxu1 %v772_v35 }
 0x275   : > { %v692_v38 = vpop.f32.mrb[4].mxu0  ;;  %v745_v39 = vpop.f32.mrb[4].mxu1 }
 0x276   : > { %v693_v40 = vadd.f32 %v692_v38, %v437_v6  ;;  %v746_v41 = vadd.f32 %v745_v39, %v445_v7  ;;  %v694_v42 = vpop.f32.mrb[5].mxu0  ;;  %v747_v43 = vpop.f32.mrb[5].mxu1  ;;  %v7533_v38 = vld [vmem:[#allocation14 + $0x64] ss:$8 sps:$4 sm:$0xff]   ;;  %v7528_v39 = vld [vmem:[#allocation13 + $0x60] ss:$8 sps:$4 sm:$0xff]  }
 0x277   : > { %v695_v44 = vadd.f32 %v694_v42, %v441_v10  ;;  %v748_v45 = vadd.f32 %v747_v43, %v449_v8  ;;  %v696_v46 = vpop.f32.mrb[6].mxu0  ;;  %v749_v47 = vpop.f32.mrb[6].mxu1  ;;  %v7539_v42 = vld [vmem:[#allocation14 + $0x74] ss:$8 sps:$4 sm:$0xff]   ;;  %v7534_v43 = vld [vmem:[#allocation13 + $0x70] ss:$8 sps:$4 sm:$0xff]  }
 0x278   : > { %v697_v48 = vadd.f32 %v696_v46, %v437_v6  ;;  %v750_v49 = vadd.f32 %v749_v47, %v445_v7  ;;  %v698_v50 = vpop.f32.mrb[7].mxu0  ;;  %v751_v51 = vpop.f32.mrb[7].mxu1  ;;  %v762_v54 = vmax.f32 %v693_v40, 0.0  ;;  %v764_v55 = vmax.f32 %v746_v41, 0.0  ;;  %v7490_v7 = vld [vmem:[#allocation10] sm:$0x7f]  }
 0x279   : > { %v699_v52 = vadd.f32 %v698_v50, %v441_v10  ;;  %v752_v53 = vadd.f32 %v751_v51, %v449_v8  ;;  %v763_v58 = vmax.f32 %v695_v44, 0.0  ;;  %v765_v59 = vmax.f32 %v748_v45, 0.0  ;;  %v7494_v10 = vld [vmem:[#allocation13 + $0x4] ss:$8 sps:$4 sm:$0xff]   ;;  %v7531_v40 = vld [vmem:[#allocation14 + $0x60] ss:$8 sps:$4 sm:$0xff]  }
 0x27a   : > { %v766_v56 = vmax.f32 %v697_v48, 0.0  ;;  %v768_v57 = vmax.f32 %v750_v49, 0.0  ;;  %v7497_v8 = vld [vmem:[#allocation14 + $0x4] ss:$8 sps:$4 sm:$0xff]   ;;  %v7536_v41 = vld [vmem:[#allocation13 + $0x74] ss:$8 sps:$4 sm:$0xff]  }
 0x27b   : > { %v767_v60 = vmax.f32 %v699_v52, 0.0  ;;  %v769_v62 = vmax.f32 %v752_v53, 0.0  ;;  %v7537_v44 = vld [vmem:[#allocation14 + $0x70] ss:$8 sps:$4 sm:$0xff]   ;;  %v7542_v45 = vld [vmem:[#allocation13 + $0x84] ss:$8 sps:$4 sm:$0xff]  }
 0x27c   : > { %v774_v3 = vpack.c.bf16 %v766_v56, %v762_v54  ;;  %v776_v11 = vpack.c.bf16 %v768_v57, %v764_v55  ;;  %v7545_v46 = vld [vmem:[#allocation14 + $0x84] ss:$8 sps:$4 sm:$0xff]   ;;  %v7540_v47 = vld [vmem:[#allocation13 + $0x80] ss:$8 sps:$4 sm:$0xff]   ;;  %v7548_v49 = vld [vmem:[#allocation13 + $0x94] ss:$8 sps:$4 sm:$0xff]  }
 0x27d   : > { %v775_v12 = vpack.c.bf16 %v767_v60, %v763_v58  ;;  %v777_v14 = vpack.c.bf16 %v769_v62, %v765_v59  ;;  %v7543_v48 = vld [vmem:[#allocation14 + $0x80] ss:$8 sps:$4 sm:$0xff]   ;;  %v7551_v50 = vld [vmem:[#allocation14 + $0x94] ss:$8 sps:$4 sm:$0xff]   ;;  %v7546_v51 = vld [vmem:[#allocation13 + $0x90] ss:$8 sps:$4 sm:$0xff]  }
 0x27e   : > { %v789_v15 = vsel %vm352_vm9, %v774_v3, 0  ;;  %v795_v6 = vsel %vm352_vm9, %v776_v11, 0  ;;  %v7549_v52 = vld [vmem:[#allocation14 + $0x90] ss:$8 sps:$4 sm:$0xff]   ;;  %v7554_v53 = vld [vmem:[#allocation13 + $0xa4] ss:$8 sps:$4 sm:$0xff]  }
 0x27f   : > { %6704 = vmatprep.subr.msk.bf16.mxu0 %vm352_vm9, %v775_v12  ;;  %6706 = vmatprep.subr.msk.bf16.mxu1 %vm352_vm9, %v777_v14  ;;  %v7557_v54 = vld [vmem:[#allocation14 + $0xa4] ss:$8 sps:$4 sm:$0xff]   ;;  %v7552_v55 = vld [vmem:[#allocation13 + $0xa0] ss:$8 sps:$4 sm:$0xff]   ;;  %v7560_v57 = vld [vmem:[#allocation13 + $0xb4] ss:$8 sps:$4 sm:$0xff]  }
 0x280   : > { %803 = vmatpush1.bf16.msra.mxu0 %v789_v15  ;;  %846 = vmatpush1.bf16.msra.mxu1 %v795_v6  ;;  %v7555_v56 = vld [vmem:[#allocation14 + $0xa0] ss:$8 sps:$4 sm:$0xff]   ;;  %v7563_v58 = vld [vmem:[#allocation14 + $0xb4] ss:$8 sps:$4 sm:$0xff]   ;;  %v7558_v59 = vld [vmem:[#allocation13 + $0xb0] ss:$8 sps:$4 sm:$0xff]  }
 0x281   : > { %896 = vmatprep.subr.bf16.mxu0 %v771_v36  ;;  %939 = vmatprep.subr.bf16.mxu1 %v773_v37  ;;  %v7525_v36 = vld [vmem:[#allocation14 + $0x50] ss:$8 sps:$4 sm:$0xff]   ;;  %v7530_v37 = vld [vmem:[#allocation13 + $0x64] ss:$8 sps:$4 sm:$0xff]   ;;  %v7564_v11 = vld [vmem:[#allocation13 + $0xc0] ss:$8 sps:$4 sm:$0xff]  }
 0x282   : > { %v7561_v60 = vld [vmem:[#allocation14 + $0xb0] ss:$8 sps:$4 sm:$0xff]   ;;  %v7566_v62 = vld [vmem:[#allocation13 + $0xc4] ss:$8 sps:$4 sm:$0xff]  }
 0x283   : > { %6705 = vmatmul.mubr.msk.bf16.vlgmr.msra.gmra.mrb[8].mxu0 %vm277_vm12, %v7490_v7  ;;  %6707 = vmatmul.mubr.msk.bf16.vlgmr.msra.gmra.mrb[8].mxu1 %vm277_vm12, %v7490_v7  ;;  %v7569_v3 = vld [vmem:[#allocation14 + $0xc4] ss:$8 sps:$4 sm:$0xff]   ;;  %v7573_v7 = vld [vmem:[#allocation14 + $0xd0] ss:$8 sps:$4 sm:$0xff]  }
 0x284   : > { %897 = vmatpush1.bf16.msra.mxu0 %v770_v21  ;;  %940 = vmatpush1.bf16.msra.mxu1 %v772_v35  ;;  %v7527_v21 = vld [vmem:[#allocation14 + $0x54] ss:$8 sps:$4 sm:$0xff]   ;;  %v7522_v35 = vld [vmem:[#allocation13 + $0x50] ss:$8 sps:$4 sm:$0xff]  }
 0x285   : > { %6709 = vmatprep.subr.msk.bf16.mxu0 %vm352_vm9, %v775_v12  ;;  %6711 = vmatprep.subr.msk.bf16.mxu1 %vm352_vm9, %v777_v14  ;;  %v7567_v12 = vld [vmem:[#allocation14 + $0xc0] ss:$8 sps:$4 sm:$0xff]   ;;  %v7572_v14 = vld [vmem:[#allocation13 + $0xd4] ss:$8 sps:$4 sm:$0xff]  }
 0x286   : > { %928 = vmatprep.mubr.bf16.mxu0 %v8740_v61  ;;  %971 = vmatprep.mubr.bf16.mxu1 %v8740_v61 }
 0x288   : > { %899 = vmatpush1.bf16.msra.mxu0 %v789_v15  ;;  %942 = vmatpush1.bf16.msra.mxu1 %v795_v6  ;;  %v7575_v15 = vld [vmem:[#allocation14 + $0xd4] ss:$8 sps:$4 sm:$0xff]   ;;  %v7570_v6 = vld [vmem:[#allocation13 + $0xd0] ss:$8 sps:$4 sm:$0xff]  }
 0x289   : > { %1334 = vmatprep.subr.bf16.mxu0 %v7494_v10  ;;  %1756 = vmatprep.subr.bf16.mxu1 %v7497_v8  ;;  %v7578_v10 = vld [vmem:[#allocation13 + $0xe4] ss:$8 sps:$4 sm:$0xff]  }
 0x28a   : > { %v7581_v8 = vld [vmem:[#allocation14 + $0xe4] ss:$8 sps:$4 sm:$0xff]  }
 0x28b   : > { %6710 = vmatmul.mubr.msk.bf16.vlgmr.msra.gmra.mrb[12].mxu0 %vm277_vm12, %v7491_v16  ;;  %6712 = vmatmul.mubr.msk.bf16.vlgmr.msra.gmra.mrb[12].mxu1 %vm277_vm12, %v7491_v16  ;;  %v7576_v16 = vld [vmem:[#allocation13 + $0xe0] ss:$8 sps:$4 sm:$0xff]   ;;  %vm1330_vm12 = vcmask 523264  }
 0x28c   : > { %1335 = vmatpush1.bf16.msra.mxu0 %v7492_v17  ;;  %1757 = vmatpush1.bf16.msra.mxu1 %v7495_v18  ;;  %v7579_v17 = vld [vmem:[#allocation14 + $0xe0] ss:$8 sps:$4 sm:$0xff]   ;;  %v7584_v18 = vld [vmem:[#allocation13 + $0xf4] ss:$8 sps:$4 sm:$0xff]  }
 0x28d   : > { %1336 = vmatprep.subr.bf16.mxu0 %v7500_v20  ;;  %1758 = vmatprep.subr.bf16.mxu1 %v7503_v22  ;;  %v7587_v20 = vld [vmem:[#allocation14 + $0xf4] ss:$8 sps:$4 sm:$0xff]   ;;  %v7582_v22 = vld [vmem:[#allocation13 + $0xf0] ss:$8 sps:$4 sm:$0xff]  }
 0x290   : > { %1337 = vmatpush1.bf16.msra.mxu0 %v7498_v23  ;;  %1759 = vmatpush1.bf16.msra.mxu1 %v7501_v24  ;;  %v7585_v23 = vld [vmem:[#allocation14 + $0xf0] ss:$8 sps:$4 sm:$0xff]   ;;  %v7590_v24 = vld [vmem:[#allocation13 + $0x104] ss:$8 sps:$4 sm:$0xff]  }
 0x291   : > { %1338 = vmatprep.subr.bf16.mxu0 %v7506_v25  ;;  %1760 = vmatprep.subr.bf16.mxu1 %v7509_v26  ;;  %v7593_v25 = vld [vmem:[#allocation14 + $0x104] ss:$8 sps:$4 sm:$0xff]  }
 0x294   : > { %1339 = vmatpush1.bf16.msra.mxu0 %v7504_v27  ;;  %1761 = vmatpush1.bf16.msra.mxu1 %v7507_v28 }
 0x295   : > { %1340 = vmatprep.subr.bf16.mxu0 %v7512_v29  ;;  %1762 = vmatprep.subr.bf16.mxu1 %v7515_v30 }
 0x298   : > { %1341 = vmatpush1.bf16.msra.mxu0 %v7510_v31  ;;  %1763 = vmatpush1.bf16.msra.mxu1 %v7513_v32 }
 0x299   : > { %1342 = vmatprep.subr.bf16.mxu0 %v7518_v33  ;;  %1764 = vmatprep.subr.bf16.mxu1 %v7521_v13 }
 0x29c   : > { %1343 = vmatpush1.bf16.msra.mxu0 %v7516_v19  ;;  %1765 = vmatpush1.bf16.msra.mxu1 %v7519_v34 }
 0x29d   : > { %1344 = vmatprep.subr.bf16.mxu0 %v7524_v9  ;;  %1766 = vmatprep.subr.bf16.mxu1 %v7527_v21 }
 0x2a0   : > { %1345 = vmatpush1.bf16.msra.mxu0 %v7522_v35  ;;  %1767 = vmatpush1.bf16.msra.mxu1 %v7525_v36 }
 0x2a1   : > { %1346 = vmatprep.subr.bf16.mxu0 %v7530_v37  ;;  %1768 = vmatprep.subr.bf16.mxu1 %v7533_v38 }
 0x2a4   : > { %1347 = vmatpush1.bf16.msra.mxu0 %v7528_v39  ;;  %1769 = vmatpush1.bf16.msra.mxu1 %v7531_v40 }
 0x2a5   : > { %1348 = vmatprep.subr.bf16.mxu0 %v7536_v41  ;;  %1770 = vmatprep.subr.bf16.mxu1 %v7539_v42 }
 0x2a8   : > { %1349 = vmatpush1.bf16.msra.mxu0 %v7534_v43  ;;  %1771 = vmatpush1.bf16.msra.mxu1 %v7537_v44 }
 0x2a9   : > { %1350 = vmatprep.subr.bf16.mxu0 %v7542_v45  ;;  %1772 = vmatprep.subr.bf16.mxu1 %v7545_v46 }
 0x2ac   : > { %1351 = vmatpush1.bf16.msra.mxu0 %v7540_v47  ;;  %1773 = vmatpush1.bf16.msra.mxu1 %v7543_v48 }
 0x2ad   : > { %1352 = vmatprep.subr.bf16.mxu0 %v7548_v49  ;;  %1774 = vmatprep.subr.bf16.mxu1 %v7551_v50  ;;  %v7588_v49 = vld [vmem:[#allocation13 + $0x100] ss:$8 sps:$4 sm:$0xff]  }
 0x2ae   : > { %v7591_v50 = vld [vmem:[#allocation14 + $0x100] ss:$8 sps:$4 sm:$0xff]  }
 0x2b0   : > { %1353 = vmatpush1.bf16.msra.mxu0 %v7546_v51  ;;  %1775 = vmatpush1.bf16.msra.mxu1 %v7549_v52  ;;  %v7596_v52 = vld [vmem:[#allocation13 + $0x114] ss:$8 sps:$4 sm:$0xff]  }
 0x2b1   : > { %1354 = vmatprep.subr.bf16.mxu0 %v7554_v53  ;;  %1776 = vmatprep.subr.bf16.mxu1 %v7557_v54  ;;  %v7599_v53 = vld [vmem:[#allocation14 + $0x114] ss:$8 sps:$4 sm:$0xff]   ;;  %v7594_v54 = vld [vmem:[#allocation13 + $0x110] ss:$8 sps:$4 sm:$0xff]  }
 0x2b4   : > { %1355 = vmatpush1.bf16.msra.mxu0 %v7552_v55  ;;  %1777 = vmatpush1.bf16.msra.mxu1 %v7555_v56  ;;  %v7597_v55 = vld [vmem:[#allocation14 + $0x110] ss:$8 sps:$4 sm:$0xff]   ;;  %v7602_v56 = vld [vmem:[#allocation13 + $0x124] ss:$8 sps:$4 sm:$0xff]  }
 0x2b5   : > { %1356 = vmatprep.subr.bf16.mxu0 %v7560_v57  ;;  %1778 = vmatprep.subr.bf16.mxu1 %v7563_v58  ;;  %v7605_v57 = vld [vmem:[#allocation14 + $0x124] ss:$8 sps:$4 sm:$0xff]   ;;  %v7600_v58 = vld [vmem:[#allocation13 + $0x120] ss:$8 sps:$4 sm:$0xff]  }
 0x2b8   : > { %1357 = vmatpush1.bf16.msra.mxu0 %v7558_v59  ;;  %1779 = vmatpush1.bf16.msra.mxu1 %v7561_v60  ;;  %v7603_v59 = vld [vmem:[#allocation14 + $0x120] ss:$8 sps:$4 sm:$0xff]   ;;  %v7608_v60 = vld [vmem:[#allocation13 + $0x134] ss:$8 sps:$4 sm:$0xff]  }
 0x2b9   : > { %1358 = vmatprep.subr.bf16.mxu0 %v7566_v62  ;;  %1780 = vmatprep.subr.bf16.mxu1 %v7569_v3  ;;  %v7611_v62 = vld [vmem:[#allocation14 + $0x134] ss:$8 sps:$4 sm:$0xff]   ;;  %v7606_v3 = vld [vmem:[#allocation13 + $0x130] ss:$8 sps:$4 sm:$0xff]  }
 0x2bc   : > { %1359 = vmatpush1.bf16.msra.mxu0 %v7564_v11  ;;  %1781 = vmatpush1.bf16.msra.mxu1 %v7567_v12  ;;  %v7609_v11 = vld [vmem:[#allocation14 + $0x130] ss:$8 sps:$4 sm:$0xff]   ;;  %v7614_v12 = vld [vmem:[#allocation13 + $0x144] ss:$8 sps:$4 sm:$0xff]  }
 0x2bd   : > { %1360 = vmatprep.subr.bf16.mxu0 %v7572_v14  ;;  %1782 = vmatprep.subr.bf16.mxu1 %v7575_v15  ;;  %v7617_v14 = vld [vmem:[#allocation14 + $0x144] ss:$8 sps:$4 sm:$0xff]   ;;  %v7612_v15 = vld [vmem:[#allocation13 + $0x140] ss:$8 sps:$4 sm:$0xff]  }
 0x2c0   : > { %1361 = vmatpush1.bf16.msra.mxu0 %v7570_v6  ;;  %1783 = vmatpush1.bf16.msra.mxu1 %v7573_v7  ;;  %v7615_v6 = vld [vmem:[#allocation14 + $0x140] ss:$8 sps:$4 sm:$0xff]   ;;  %v7620_v7 = vld [vmem:[#allocation13 + $0x154] ss:$8 sps:$4 sm:$0xff]  }
 0x2c1   : > { %1362 = vmatprep.subr.bf16.mxu0 %v7578_v10  ;;  %1784 = vmatprep.subr.bf16.mxu1 %v7581_v8  ;;  %v7623_v10 = vld [vmem:[#allocation14 + $0x154] ss:$8 sps:$4 sm:$0xff]   ;;  %v7618_v8 = vld [vmem:[#allocation13 + $0x150] ss:$8 sps:$4 sm:$0xff]  }
 0x2c4   : > { %1363 = vmatpush1.bf16.msra.mxu0 %v7576_v16  ;;  %1785 = vmatpush1.bf16.msra.mxu1 %v7579_v17  ;;  %v7621_v16 = vld [vmem:[#allocation14 + $0x150] ss:$8 sps:$4 sm:$0xff]   ;;  %v7626_v17 = vld [vmem:[#allocation13 + $0x164] ss:$8 sps:$4 sm:$0xff]  }
 0x2c5   : > { %1364 = vmatprep.subr.bf16.mxu0 %v7584_v18  ;;  %1786 = vmatprep.subr.bf16.mxu1 %v7587_v20  ;;  %v7629_v18 = vld [vmem:[#allocation14 + $0x164] ss:$8 sps:$4 sm:$0xff]   ;;  %v7624_v20 = vld [vmem:[#allocation13 + $0x160] ss:$8 sps:$4 sm:$0xff]  }
 0x2c8   : > { %1365 = vmatpush1.bf16.msra.mxu0 %v7582_v22  ;;  %1787 = vmatpush1.bf16.msra.mxu1 %v7585_v23  ;;  %v7627_v22 = vld [vmem:[#allocation14 + $0x160] ss:$8 sps:$4 sm:$0xff]   ;;  %v7632_v23 = vld [vmem:[#allocation13 + $0x174] ss:$8 sps:$4 sm:$0xff]  }
 0x2c9   : > { %1377 = vmatprep.subr.bf16.mxu0 %v7590_v24  ;;  %1799 = vmatprep.subr.bf16.mxu1 %v7593_v25  ;;  %v7635_v24 = vld [vmem:[#allocation14 + $0x174] ss:$8 sps:$4 sm:$0xff]   ;;  %v7630_v25 = vld [vmem:[#allocation13 + $0x170] ss:$8 sps:$4 sm:$0xff]  }
 0x356   : > { %v834_v26 = vpop.f32.mrb[8].mxu0  ;;  %v877_v27 = vpop.f32.mrb[8].mxu1 }
 0x357   : > { %v836_v28 = vpop.f32.mrb[9].mxu0  ;;  %v879_v29 = vpop.f32.mrb[9].mxu1 }
 0x358   : > { %v838_v30 = vpop.f32.mrb[10].mxu0  ;;  %v881_v31 = vpop.f32.mrb[10].mxu1 }
 0x359   : > { %v840_v32 = vpop.f32.mrb[11].mxu0  ;;  %v883_v33 = vpop.f32.mrb[11].mxu1 }
 0x35e   : > { %v930_v13 = vpop.f32.mrb[12].mxu0  ;;  %v973_v19 = vpop.f32.mrb[12].mxu1 }
 0x35f   : > { %v982_v34 = vmax.f32 %v834_v26, %v930_v13  ;;  %v932_v9 = vpop.f32.mrb[13].mxu0  ;;  %v984_v21 = vmax.f32 %v877_v27, %v973_v19  ;;  %v975_v35 = vpop.f32.mrb[13].mxu1  ;;  %v7633_v26 = vld [vmem:[#allocation14 + $0x170] ss:$8 sps:$4 sm:$0xff]   ;;  %v7638_v27 = vld [vmem:[#allocation13 + $0x184] ss:$8 sps:$4 sm:$0xff]  }
 0x360   : > { %v983_v36 = vmax.f32 %v836_v28, %v932_v9  ;;  %v934_v37 = vpop.f32.mrb[14].mxu0  ;;  %v985_v38 = vmax.f32 %v879_v29, %v975_v35  ;;  %v977_v39 = vpop.f32.mrb[14].mxu1  ;;  %v7641_v28 = vld [vmem:[#allocation14 + $0x184] ss:$8 sps:$4 sm:$0xff]   ;;  %v7636_v29 = vld [vmem:[#allocation13 + $0x180] ss:$8 sps:$4 sm:$0xff]  }
 0x361   : > { %v986_v40 = vmax.f32 %v838_v30, %v934_v37  ;;  %v936_v41 = vpop.f32.mrb[15].mxu0  ;;  %v988_v42 = vmax.f32 %v881_v31, %v977_v39  ;;  %v979_v43 = vpop.f32.mrb[15].mxu1  ;;  %v7639_v30 = vld [vmem:[#allocation14 + $0x180] ss:$8 sps:$4 sm:$0xff]   ;;  %v7644_v31 = vld [vmem:[#allocation13 + $0x194] ss:$8 sps:$4 sm:$0xff]  }
 0x362   : > { %v987_v44 = vmax.f32 %v840_v32, %v936_v41  ;;  %v989_v45 = vmax.f32 %v883_v33, %v979_v43  ;;  %v7647_v32 = vld [vmem:[#allocation14 + $0x194] ss:$8 sps:$4 sm:$0xff]   ;;  %v7642_v33 = vld [vmem:[#allocation13 + $0x190] ss:$8 sps:$4 sm:$0xff]   ;;  %v7650_v19 = vld [vmem:[#allocation13 + $0x1a4] ss:$8 sps:$4 sm:$0xff]  }
 0x363   : > { %v990_v46 = vpack.c.bf16 %v986_v40, %v982_v34  ;;  %v9159_v47 = vpack.c.bf16 %v988_v42, %v984_v21  ;;  %v7645_v13 = vld [vmem:[#allocation14 + $0x190] ss:$8 sps:$4 sm:$0xff]   ;;  %v7653_v34 = vld [vmem:[#allocation14 + $0x1a4] ss:$8 sps:$4 sm:$0xff]   ;;  %v7648_v9 = vld [vmem:[#allocation13 + $0x1a0] ss:$8 sps:$4 sm:$0xff]  }
 0x364   : > { %v991_v48 = vpack.c.bf16 %v987_v44, %v983_v36  ;;  %v993_v51 = vpack.c.bf16 %v989_v45, %v985_v38  ;;  %v7651_v21 = vld [vmem:[#allocation14 + $0x1a0] ss:$8 sps:$4 sm:$0xff]   ;;  %v7656_v35 = vld [vmem:[#allocation13 + $0x1b4] ss:$8 sps:$4 sm:$0xff]   ;;  %v7654_v37 = vld [vmem:[#allocation13 + $0x1b0] ss:$8 sps:$4 sm:$0xff]  }
 0x365   : > { %v7659_v36 = vld [vmem:[#allocation14 + $0x1b4] ss:$8 sps:$4 sm:$0xff]   ;;  %v7657_v38 = vld [vmem:[#allocation14 + $0x1b0] ss:$8 sps:$4 sm:$0xff]  }
 0x366   : > { %1366 = vmatprep.mubr.bf16.mxu0 %v991_v48  ;;  %1788 = vmatprep.mubr.bf16.mxu1 %v991_v48  ;;  %v7662_v39 = vld [vmem:[#allocation16 + $0x1c4] ss:$16 sps:$4 sm:$0xff]   ;;  %v7665_v40 = vld [vmem:[#allocation16 + $0x1cc] ss:$16 sps:$4 sm:$0xff]   ;;  %v7660_v41 = vld [vmem:[#allocation16 + $0x1c0] ss:$16 sps:$4 sm:$0xff]  }
 0x367   : > { %1367 = vmatmul.mubr.bf16.vlgmr.msra.gmra.mrb[16].mxu0 %v990_v46  ;;  %1789 = vmatmul.mubr.bf16.vlgmr.msra.gmra.mrb[16].mxu1 %v990_v46  ;;  %v7663_v42 = vld [vmem:[#allocation16 + $0x1c8] ss:$16 sps:$4 sm:$0xff]   ;;  %v7668_v43 = vld [vmem:[#allocation16 + $0x1e4] ss:$16 sps:$4 sm:$0xff]   ;;  %v7671_v44 = vld [vmem:[#allocation16 + $0x1ec] ss:$16 sps:$4 sm:$0xff]  }
 0x368   : > { %1378 = vmatpush1.bf16.msra.mxu0 %v7588_v49  ;;  %1800 = vmatpush1.bf16.msra.mxu1 %v7591_v50  ;;  %v7666_v45 = vld [vmem:[#allocation16 + $0x1e0] ss:$16 sps:$4 sm:$0xff]   ;;  %v7669_v46 = vld [vmem:[#allocation16 + $0x1e8] ss:$16 sps:$4 sm:$0xff]   ;;  %v7674_v48 = vld [vmem:[#allocation16 + $0x204] ss:$16 sps:$4 sm:$0xff]  }
 0x369   : > { %1379 = vmatprep.subr.bf16.mxu0 %v7596_v52  ;;  %1801 = vmatprep.subr.bf16.mxu1 %v7599_v53  ;;  %v7677_v49 = vld [vmem:[#allocation16 + $0x20c] ss:$16 sps:$4 sm:$0xff]   ;;  %v7672_v50 = vld [vmem:[#allocation16 + $0x200] ss:$16 sps:$4 sm:$0xff]   ;;  %v7680_v52 = vld [vmem:[#allocation16 + $0x224] ss:$16 sps:$4 sm:$0xff]  }
 0x36a   : > { %6769 = vmatprep.mubr.msk.bf16.mxu0 %vm1330_vm12, %v993_v51  ;;  %6826 = vmatprep.mubr.msk.bf16.mxu1 %vm1330_vm12, %v993_v51  ;;  %v7675_v51 = vld [vmem:[#allocation16 + $0x208] ss:$16 sps:$4 sm:$0xff]   ;;  %v7683_v53 = vld [vmem:[#allocation16 + $0x22c] ss:$16 sps:$4 sm:$0xff]  }
 0x36c   : > { %1380 = vmatpush1.bf16.msra.mxu0 %v7594_v54  ;;  %1802 = vmatpush1.bf16.msra.mxu1 %v7597_v55  ;;  %v7678_v54 = vld [vmem:[#allocation16 + $0x220] ss:$16 sps:$4 sm:$0xff]   ;;  %v7686_v55 = vld [vmem:[#allocation16 + $0x244] ss:$16 sps:$4 sm:$0xff]  }
 0x36d   : > { %1381 = vmatprep.subr.bf16.mxu0 %v7602_v56  ;;  %1803 = vmatprep.subr.bf16.mxu1 %v7605_v57  ;;  %v7689_v56 = vld [vmem:[#allocation16 + $0x24c] ss:$16 sps:$4 sm:$0xff]   ;;  %v7684_v57 = vld [vmem:[#allocation16 + $0x240] ss:$16 sps:$4 sm:$0xff]  }
 0x370   : > { %1382 = vmatpush1.bf16.msra.mxu0 %v7600_v58  ;;  %1804 = vmatpush1.bf16.msra.mxu1 %v7603_v59  ;;  %v7687_v58 = vld [vmem:[#allocation16 + $0x248] ss:$16 sps:$4 sm:$0xff]   ;;  %v7692_v59 = vld [vmem:[#allocation16 + $0x264] ss:$16 sps:$4 sm:$0xff]  }
 0x371   : > { %1383 = vmatprep.subr.bf16.mxu0 %v7608_v60  ;;  %1805 = vmatprep.subr.bf16.mxu1 %v7611_v62  ;;  %v7695_v60 = vld [vmem:[#allocation16 + $0x26c] ss:$16 sps:$4 sm:$0xff]   ;;  %v7690_v62 = vld [vmem:[#allocation16 + $0x260] ss:$16 sps:$4 sm:$0xff]  }
 0x374   : > { %1384 = vmatpush1.bf16.msra.mxu0 %v7606_v3  ;;  %1806 = vmatpush1.bf16.msra.mxu1 %v7609_v11  ;;  %v7693_v3 = vld [vmem:[#allocation16 + $0x268] ss:$16 sps:$4 sm:$0xff]   ;;  %v7698_v11 = vld [vmem:[#allocation16 + $0x284] ss:$16 sps:$4 sm:$0xff]  }
 0x375   : > { %1385 = vmatprep.subr.bf16.mxu0 %v7614_v12  ;;  %1807 = vmatprep.subr.bf16.mxu1 %v7617_v14  ;;  %v7701_v12 = vld [vmem:[#allocation16 + $0x28c] ss:$16 sps:$4 sm:$0xff]   ;;  %v7696_v14 = vld [vmem:[#allocation16 + $0x280] ss:$16 sps:$4 sm:$0xff]  }
 0x378   : > { %1386 = vmatpush1.bf16.msra.mxu0 %v7612_v15  ;;  %1808 = vmatpush1.bf16.msra.mxu1 %v7615_v6  ;;  %v7699_v15 = vld [vmem:[#allocation16 + $0x288] ss:$16 sps:$4 sm:$0xff]   ;;  %v7704_v6 = vld [vmem:[#allocation16 + $0x2a4] ss:$16 sps:$4 sm:$0xff]  }
 0x379   : > { %1387 = vmatprep.subr.bf16.mxu0 %v7620_v7  ;;  %1809 = vmatprep.subr.bf16.mxu1 %v7623_v10  ;;  %v7707_v7 = vld [vmem:[#allocation16 + $0x2ac] ss:$16 sps:$4 sm:$0xff]   ;;  %v7702_v10 = vld [vmem:[#allocation16 + $0x2a0] ss:$16 sps:$4 sm:$0xff]  }
 0x37c   : > { %1388 = vmatpush1.bf16.msra.mxu0 %v7618_v8  ;;  %1810 = vmatpush1.bf16.msra.mxu1 %v7621_v16  ;;  %v7705_v8 = vld [vmem:[#allocation16 + $0x2a8] ss:$16 sps:$4 sm:$0xff]   ;;  %v7710_v16 = vld [vmem:[#allocation16 + $0x2c4] ss:$16 sps:$4 sm:$0xff]  }
 0x37d   : > { %1389 = vmatprep.subr.bf16.mxu0 %v7626_v17  ;;  %1811 = vmatprep.subr.bf16.mxu1 %v7629_v18  ;;  %v7713_v17 = vld [vmem:[#allocation16 + $0x2cc] ss:$16 sps:$4 sm:$0xff]   ;;  %v7708_v18 = vld [vmem:[#allocation16 + $0x2c0] ss:$16 sps:$4 sm:$0xff]  }
 0x380   : > { %1390 = vmatpush1.bf16.msra.mxu0 %v7624_v20  ;;  %1812 = vmatpush1.bf16.msra.mxu1 %v7627_v22  ;;  %v7711_v20 = vld [vmem:[#allocation16 + $0x2c8] ss:$16 sps:$4 sm:$0xff]   ;;  %v7716_v22 = vld [vmem:[#allocation16 + $0x2e4] ss:$16 sps:$4 sm:$0xff]  }
 0x381   : > { %1391 = vmatprep.subr.bf16.mxu0 %v7632_v23  ;;  %1813 = vmatprep.subr.bf16.mxu1 %v7635_v24  ;;  %v7719_v23 = vld [vmem:[#allocation16 + $0x2ec] ss:$16 sps:$4 sm:$0xff]   ;;  %v7714_v24 = vld [vmem:[#allocation16 + $0x2e0] ss:$16 sps:$4 sm:$0xff]  }
 0x384   : > { %1392 = vmatpush1.bf16.msra.mxu0 %v7630_v25  ;;  %1814 = vmatpush1.bf16.msra.mxu1 %v7633_v26  ;;  %v7717_v25 = vld [vmem:[#allocation16 + $0x2e8] ss:$16 sps:$4 sm:$0xff]   ;;  %v7722_v26 = vld [vmem:[#allocation16 + $0x304] ss:$16 sps:$4 sm:$0xff]  }
 0x385   : > { %1393 = vmatprep.subr.bf16.mxu0 %v7638_v27  ;;  %1815 = vmatprep.subr.bf16.mxu1 %v7641_v28  ;;  %v7725_v27 = vld [vmem:[#allocation16 + $0x30c] ss:$16 sps:$4 sm:$0xff]   ;;  %v7720_v28 = vld [vmem:[#allocation16 + $0x300] ss:$16 sps:$4 sm:$0xff]  }
 0x388   : > { %1394 = vmatpush1.bf16.msra.mxu0 %v7636_v29  ;;  %1816 = vmatpush1.bf16.msra.mxu1 %v7639_v30  ;;  %v7723_v29 = vld [vmem:[#allocation16 + $0x308] ss:$16 sps:$4 sm:$0xff]   ;;  %v7728_v30 = vld [vmem:[#allocation16 + $0x324] ss:$16 sps:$4 sm:$0xff]  }
 0x389   : > { %1395 = vmatprep.subr.bf16.mxu0 %v7644_v31  ;;  %1817 = vmatprep.subr.bf16.mxu1 %v7647_v32  ;;  %v7726_v31 = vld [vmem:[#allocation16 + $0x320] ss:$16 sps:$4 sm:$0xff]   ;;  %v7729_v32 = vld [vmem:[#allocation16 + $0x328] ss:$16 sps:$4 sm:$0xff]  }
 0x38c   : > { %1396 = vmatpush1.bf16.msra.mxu0 %v7642_v33  ;;  %1818 = vmatpush1.bf16.msra.mxu1 %v7645_v13  ;;  %v7731_v33 = vld [vmem:[#allocation16 + $0x32c] ss:$16 sps:$4 sm:$0xff]   ;;  %v7734_v13 = vld [vmem:[#allocation16 + $0x344] ss:$16 sps:$4 sm:$0xff]  }
 0x38d   : > { %1397 = vmatprep.subr.bf16.mxu0 %v7650_v19  ;;  %1819 = vmatprep.subr.bf16.mxu1 %v7653_v34  ;;  %v7737_v19 = vld [vmem:[#allocation16 + $0x34c] ss:$16 sps:$4 sm:$0xff]   ;;  %v7732_v34 = vld [vmem:[#allocation16 + $0x340] ss:$16 sps:$4 sm:$0xff]  }
 0x390   : > { %1398 = vmatpush1.bf16.msra.mxu0 %v7648_v9  ;;  %1820 = vmatpush1.bf16.msra.mxu1 %v7651_v21  ;;  %v7735_v9 = vld [vmem:[#allocation16 + $0x348] ss:$16 sps:$4 sm:$0xff]   ;;  %v7740_v21 = vld [vmem:[#allocation16 + $0x364] ss:$16 sps:$4 sm:$0xff]  }
 0x391   : > { %1399 = vmatprep.subr.bf16.mxu0 %v7656_v35  ;;  %1821 = vmatprep.subr.bf16.mxu1 %v7659_v36  ;;  %v7743_v35 = vld [vmem:[#allocation16 + $0x36c] ss:$16 sps:$4 sm:$0xff]   ;;  %v7738_v36 = vld [vmem:[#allocation16 + $0x360] ss:$16 sps:$4 sm:$0xff]  }
 0x394   : > { %1400 = vmatpush1.bf16.msra.mxu0 %v7654_v37  ;;  %1822 = vmatpush1.bf16.msra.mxu1 %v7657_v38  ;;  %v7741_v37 = vld [vmem:[#allocation16 + $0x368] ss:$16 sps:$4 sm:$0xff]   ;;  %v7747_v38 = vld [vmem:[#allocation16 + $0x4] ss:$16 sps:$4 sm:$0xff]  }
 0x395   : > { %2296 = vmatprep.subr.bf16.mxu0 %v7662_v39  ;;  %2339 = vmatprep.subr.bf16.mxu1 %v7665_v40  ;;  %v7750_v39 = vld [vmem:[#allocation16 + $0xc] ss:$16 sps:$4 sm:$0xff]  }
 0x397   : > { %1410 = vmatmul.mubr.bf16.vlgmr.msra.gmra.mrb[16].mxu0 %v9159_v47  ;;  %1832 = vmatmul.mubr.bf16.vlgmr.msra.gmra.mrb[16].mxu1 %v9159_v47  ;;  %v7681_v47 = vld [vmem:[#allocation16 + $0x228] ss:$16 sps:$4 sm:$0xff]  }
 0x398   : > { %2297 = vmatpush1.bf16.msra.mxu0 %v7660_v41  ;;  %2340 = vmatpush1.bf16.msra.mxu1 %v7663_v42 }
 0x399   : > { %2298 = vmatprep.subr.bf16.mxu0 %v7668_v43  ;;  %2341 = vmatprep.subr.bf16.mxu1 %v7671_v44 }
 0x39c   : > { %2299 = vmatpush1.bf16.msra.mxu0 %v7666_v45  ;;  %2342 = vmatpush1.bf16.msra.mxu1 %v7669_v46 }
 0x39d   : > { %2300 = vmatprep.subr.bf16.mxu0 %v7674_v48  ;;  %2343 = vmatprep.subr.bf16.mxu1 %v7677_v49 }
 0x3a0   : > { %2301 = vmatpush1.bf16.msra.mxu0 %v7672_v50  ;;  %2344 = vmatpush1.bf16.msra.mxu1 %v7675_v51 }
 0x3a1   : > { %2302 = vmatprep.subr.bf16.mxu0 %v7680_v52  ;;  %2345 = vmatprep.subr.bf16.mxu1 %v7683_v53 }
 0x3a4   : > { %2303 = vmatpush1.bf16.msra.mxu0 %v7678_v54  ;;  %2346 = vmatpush1.bf16.msra.mxu1 %v7681_v47 }
 0x3a5   : > { %2304 = vmatprep.subr.bf16.mxu0 %v7686_v55  ;;  %2347 = vmatprep.subr.bf16.mxu1 %v7689_v56 }
 0x3a8   : > { %2305 = vmatpush1.bf16.msra.mxu0 %v7684_v57  ;;  %2348 = vmatpush1.bf16.msra.mxu1 %v7687_v58 }
 0x3a9   : > { %2306 = vmatprep.subr.bf16.mxu0 %v7692_v59  ;;  %2349 = vmatprep.subr.bf16.mxu1 %v7695_v60 }
 0x3ac   : > { %2307 = vmatpush1.bf16.msra.mxu0 %v7690_v62  ;;  %2350 = vmatpush1.bf16.msra.mxu1 %v7693_v3 }
 0x3ad   : > { %2308 = vmatprep.subr.bf16.mxu0 %v7698_v11  ;;  %2351 = vmatprep.subr.bf16.mxu1 %v7701_v12 }
 0x3b0   : > { %2309 = vmatpush1.bf16.msra.mxu0 %v7696_v14  ;;  %2352 = vmatpush1.bf16.msra.mxu1 %v7699_v15 }
 0x3b1   : > { %2310 = vmatprep.subr.bf16.mxu0 %v7704_v6  ;;  %2353 = vmatprep.subr.bf16.mxu1 %v7707_v7 }
 0x3b4   : > { %2311 = vmatpush1.bf16.msra.mxu0 %v7702_v10  ;;  %2354 = vmatpush1.bf16.msra.mxu1 %v7705_v8  ;;  %v7745_v10 = vld [vmem:[#allocation16] ss:$16 sps:$4 sm:$0xff]   ;;  %v7748_v8 = vld [vmem:[#allocation16 + $0x8] ss:$16 sps:$4 sm:$0xff]  }
 0x3b5   : > { %2312 = vmatprep.subr.bf16.mxu0 %v7710_v16  ;;  %2355 = vmatprep.subr.bf16.mxu1 %v7713_v17 }
 0x3b8   : > { %2313 = vmatpush1.bf16.msra.mxu0 %v7708_v18  ;;  %2356 = vmatpush1.bf16.msra.mxu1 %v7711_v20  ;;  %v7755_v18 = vld [vmem:[#allocation16 + $0x24] ss:$16 sps:$4 sm:$0xff]   ;;  %v7758_v20 = vld [vmem:[#allocation16 + $0x2c] ss:$16 sps:$4 sm:$0xff]  }
 0x3b9   : > { %2314 = vmatprep.subr.bf16.mxu0 %v7716_v22  ;;  %2357 = vmatprep.subr.bf16.mxu1 %v7719_v23  ;;  %v7753_v23 = vld [vmem:[#allocation16 + $0x20] ss:$16 sps:$4 sm:$0xff]  }
 0x3bc   : > { %2315 = vmatpush1.bf16.msra.mxu0 %v7714_v24  ;;  %2358 = vmatpush1.bf16.msra.mxu1 %v7717_v25  ;;  %v7756_v24 = vld [vmem:[#allocation16 + $0x28] ss:$16 sps:$4 sm:$0xff]   ;;  %v7761_v25 = vld [vmem:[#allocation16 + $0x44] ss:$16 sps:$4 sm:$0xff]  }
 0x3bd   : > { %2316 = vmatprep.subr.bf16.mxu0 %v7722_v26  ;;  %2359 = vmatprep.subr.bf16.mxu1 %v7725_v27  ;;  %v7764_v26 = vld [vmem:[#allocation16 + $0x4c] ss:$16 sps:$4 sm:$0xff]   ;;  %v7759_v27 = vld [vmem:[#allocation16 + $0x40] ss:$16 sps:$4 sm:$0xff]  }
 0x3c0   : > { %2317 = vmatpush1.bf16.msra.mxu0 %v7720_v28  ;;  %2360 = vmatpush1.bf16.msra.mxu1 %v7723_v29  ;;  %v7762_v28 = vld [vmem:[#allocation16 + $0x48] ss:$16 sps:$4 sm:$0xff]   ;;  %v7767_v29 = vld [vmem:[#allocation16 + $0x64] ss:$16 sps:$4 sm:$0xff]  }
 0x3c1   : > { %2318 = vmatprep.subr.bf16.mxu0 %v7728_v30  ;;  %2361 = vmatprep.subr.bf16.mxu1 %v7731_v33  ;;  %v7770_v30 = vld [vmem:[#allocation16 + $0x6c] ss:$16 sps:$4 sm:$0xff]   ;;  %v7773_v33 = vld [vmem:[#allocation16 + $0x84] ss:$16 sps:$4 sm:$0xff]  }
 0x3c4   : > { %2319 = vmatpush1.bf16.msra.mxu0 %v7726_v31  ;;  %2362 = vmatpush1.bf16.msra.mxu1 %v7729_v32  ;;  %v7765_v31 = vld [vmem:[#allocation16 + $0x60] ss:$16 sps:$4 sm:$0xff]   ;;  %v7768_v32 = vld [vmem:[#allocation16 + $0x68] ss:$16 sps:$4 sm:$0xff]  }
 0x3c5   : > { %2320 = vmatprep.subr.bf16.mxu0 %v7734_v13  ;;  %2363 = vmatprep.subr.bf16.mxu1 %v7737_v19  ;;  %v7776_v13 = vld [vmem:[#allocation16 + $0x8c] ss:$16 sps:$4 sm:$0xff]   ;;  %v7771_v19 = vld [vmem:[#allocation16 + $0x80] ss:$16 sps:$4 sm:$0xff]  }
 0x3c8   : > { %2321 = vmatpush1.bf16.msra.mxu0 %v7732_v34  ;;  %2364 = vmatpush1.bf16.msra.mxu1 %v7735_v9  ;;  %v7774_v34 = vld [vmem:[#allocation16 + $0x88] ss:$16 sps:$4 sm:$0xff]   ;;  %v7779_v9 = vld [vmem:[#allocation16 + $0xa4] ss:$16 sps:$4 sm:$0xff]  }
 0x3c9   : > { %2322 = vmatprep.subr.bf16.mxu0 %v7740_v21  ;;  %2365 = vmatprep.subr.bf16.mxu1 %v7743_v35  ;;  %v7782_v21 = vld [vmem:[#allocation16 + $0xac] ss:$16 sps:$4 sm:$0xff]   ;;  %v7777_v35 = vld [vmem:[#allocation16 + $0xa0] ss:$16 sps:$4 sm:$0xff]  }
 0x3cc   : > { %2323 = vmatpush1.bf16.msra.mxu0 %v7738_v36  ;;  %2366 = vmatpush1.bf16.msra.mxu1 %v7741_v37  ;;  %v7780_v36 = vld [vmem:[#allocation16 + $0xa8] ss:$16 sps:$4 sm:$0xff]   ;;  %v7785_v37 = vld [vmem:[#allocation16 + $0xc4] ss:$16 sps:$4 sm:$0xff]  }
 0x3cd   : > { %2671 = vmatprep.subr.bf16.mxu0 %v7747_v38  ;;  %2714 = vmatprep.subr.bf16.mxu1 %v7750_v39  ;;  %v7788_v38 = vld [vmem:[#allocation16 + $0xcc] ss:$16 sps:$4 sm:$0xff]   ;;  %v7783_v39 = vld [vmem:[#allocation16 + $0xc0] ss:$16 sps:$4 sm:$0xff]  }
 0x46a   : > { %v1411_v40 = vpop.f32.mrb[16].mxu0  ;;  %v1833_v41 = vpop.f32.mrb[16].mxu1 }
 0x46b   : > { %v1842_v42 = vmax.f32 %v1411_v40, %v1833_v41  ;;  %v1413_v43 = vpop.f32.mrb[17].mxu0  ;;  %v1835_v44 = vpop.f32.mrb[17].mxu1  ;;  %v7786_v40 = vld [vmem:[#allocation16 + $0xc8] ss:$16 sps:$4 sm:$0xff]   ;;  %v7791_v41 = vld [vmem:[#allocation16 + $0xe4] ss:$16 sps:$4 sm:$0xff]  }
 0x46c   : > { %v1843_v45 = vmax.f32 %v1413_v43, %v1835_v44  ;;  %v1415_v46 = vpop.f32.mrb[18].mxu0  ;;  %v1837_v48 = vpop.f32.mrb[18].mxu1  ;;  %v7789_v43 = vld [vmem:[#allocation16 + $0xe0] ss:$16 sps:$4 sm:$0xff]   ;;  %v7792_v44 = vld [vmem:[#allocation16 + $0xe8] ss:$16 sps:$4 sm:$0xff]  }
 0x46d   : > { %v1844_v49 = vmax.f32 %v1415_v46, %v1837_v48  ;;  %v1417_v50 = vpop.f32.mrb[19].mxu0  ;;  %v1839_v51 = vpop.f32.mrb[19].mxu1  ;;  %v7800_v46 = vld [vmem:[#allocation16 + $0x10c] ss:$16 sps:$4 sm:$0xff]   ;;  %v7795_v48 = vld [vmem:[#allocation16 + $0x100] ss:$16 sps:$4 sm:$0xff]  }
 0x46e   : > { %v7361_v52 = vpack.c.bf16 %v1843_v45, %v1842_v42  ;;  %v1845_v53 = vmax.f32 %v1417_v50, %v1839_v51  ;;  %v7794_v42 = vld [vmem:[#allocation16 + $0xec] ss:$16 sps:$4 sm:$0xff]   ;;  %v7797_v45 = vld [vmem:[#allocation16 + $0x104] ss:$16 sps:$4 sm:$0xff]  }
 0x46f   : > { %v7803_v50 = vld [vmem:[#allocation16 + $0x124] ss:$16 sps:$4 sm:$0xff]   ;;  %v7806_v51 = vld [vmem:[#allocation16 + $0x12c] ss:$16 sps:$4 sm:$0xff]  }
 0x470   : > { %v1859_v54 = vrot.slane %v7361_v52, 7  ;;  %v7362_v47 = vpack.c.bf16 %v1845_v53, %v1844_v49  ;;  %v7798_v49 = vld [vmem:[#allocation16 + $0x108] ss:$16 sps:$4 sm:$0xff]   ;;  %v7801_v52 = vld [vmem:[#allocation16 + $0x120] ss:$16 sps:$4 sm:$0xff]  }
 0x471   : > { %v7804_v53 = vld [vmem:[#allocation16 + $0x128] ss:$16 sps:$4 sm:$0xff]  }
 0x472   : > { %v1860_v55 = vrot.slane %v1859_v54, 4  ;;  %1868 = vst.msk [vmem:[#allocation3] sm:$0xee] %vm1867_vm0, %v1859_v54  ;;  %v1861_v56 = vrot.slane %v7362_v47, 7  ;;  %v7809_v54 = vld [vmem:[#allocation16 + $0x144] ss:$16 sps:$4 sm:$0xff]  }
 0x473   : > { %v7812_v47 = vld [vmem:[#allocation16 + $0x14c] ss:$16 sps:$4 sm:$0xff]  }
 0x474   : > { %v1862_v57 = vsel %vm1858_vm3, %v1860_v55, %v1861_v56  ;;  %v7807_v55 = vld [vmem:[#allocation16 + $0x140] ss:$16 sps:$4 sm:$0xff]   ;;  %v7810_v56 = vld [vmem:[#allocation16 + $0x148] ss:$16 sps:$4 sm:$0xff]  }
 0x475   : > { %1872 = vst.msk [vmem:[#allocation3 + $0x8] sm:$0xff] %vm1871_vm4, %v1862_v57  ;;  %v7815_v57 = vld [vmem:[#allocation16 + $0x164] ss:$16 sps:$4 sm:$0xff]  }
 0x479   : > { %v9166_v58 = vld [vmem:[#allocation3] sm:$0xff] }
 0x47c   : > { %v9168_v59 = vld [vmem:[#allocation3 + $0x8] sm:$0xff] }
 0x47d   : > { %v6830_v60 = vcombine.high %v9166_v58, %v9168_v59  ;;  %v6829_v62 = vcombine.low %v9166_v58, %v9168_v59  ;;  %v9174_v17 = vld [vmem:[#allocation3 + $0x8] sm:$0x77] }
 0x47e   : > { %v6890_v22 = vcombine.high %v9166_v58, %v9174_v17 }
 0x47f   : > { %v2007_v3 = vshll.u32 %v6830_v60, 16  ;;  %v2000_v11 = vshll.u32 %v6829_v62, 16  ;;  %v2005_v12 = vshrl.u32 %v6830_v60, 16  ;;  %v1998_v15 = vshrl.u32 %v6829_v62, 16  ;;  %v7818_v60 = vld [vmem:[#allocation16 + $0x16c] ss:$16 sps:$4 sm:$0xff]  }
 0x480   : > { %v7813_v62 = vld [vmem:[#allocation16 + $0x160] ss:$16 sps:$4 sm:$0xff]  }
 0x481   : > { %v2009_v14 = vrot.slane %v2007_v3, 1  ;;  %v2002_v6 = vrot.slane %v2000_v11, 1  ;;  %v7816_v3 = vld [vmem:[#allocation16 + $0x168] ss:$16 sps:$4 sm:$0xff]   ;;  %v7821_v11 = vld [vmem:[#allocation16 + $0x184] ss:$16 sps:$4 sm:$0xff]  }
 0x483   : > { %v2010_v7 = vor.u32 %v2009_v14, %v2005_v12  ;;  %v2003_v16 = vor.u32 %v2002_v6, %v1998_v15  ;;  %v7824_v12 = vld [vmem:[#allocation16 + $0x18c] ss:$16 sps:$4 sm:$0xff]   ;;  %v7819_v14 = vld [vmem:[#allocation16 + $0x180] ss:$16 sps:$4 sm:$0xff]   ;;  %v7822_v15 = vld [vmem:[#allocation16 + $0x188] ss:$16 sps:$4 sm:$0xff]  }
 0x484   : > { %v7827_v6 = vld [vmem:[#allocation16 + $0x1a4] ss:$16 sps:$4 sm:$0xff]  }
 0x485   : > { %6887 = vmatprep.mubr.msk.bf16.mxu0 %vm2292_vm6, %v2010_v7  ;;  %6888 = vmatprep.mubr.msk.bf16.mxu1 %vm2292_vm6, %v2010_v7  ;;  %v7830_v7 = vld [vmem:[#allocation16 + $0x1ac] ss:$16 sps:$4 sm:$0xff]  }
 0x486   : > { %2329 = vmatmul.mubr.bf16.vlgmr.msra.gmra.mrb[20].mxu0 %v2003_v16  ;;  %2372 = vmatmul.mubr.bf16.vlgmr.msra.gmra.mrb[20].mxu1 %v2003_v16  ;;  %v7834_v16 = vld [vmem:[#allocation16 + $0x384] ss:$16 sps:$4 sm:$0xff]  }
 0x487   : > { %2672 = vmatpush1.bf16.msra.mxu0 %v7745_v10  ;;  %2715 = vmatpush1.bf16.msra.mxu1 %v7748_v8  ;;  %v7825_v10 = vld [vmem:[#allocation16 + $0x1a0] ss:$16 sps:$4 sm:$0xff]   ;;  %v7828_v8 = vld [vmem:[#allocation16 + $0x1a8] ss:$16 sps:$4 sm:$0xff]  }
 0x488   : > { %6947 = vmatprep.mubr.msk.bf16.mxu0 %vm2292_vm6, %v6890_v22  ;;  %6948 = vmatprep.mubr.msk.bf16.mxu1 %vm2292_vm6, %v6890_v22 }
 0x489   : > { %2673 = vmatprep.subr.bf16.mxu0 %v7755_v18  ;;  %2716 = vmatprep.subr.bf16.mxu1 %v7758_v20  ;;  %v7837_v18 = vld [vmem:[#allocation16 + $0x38c] ss:$16 sps:$4 sm:$0xff]   ;;  %v9182_v20 = vld [vmem:[#allocation3] sm:$0xee] }
 0x48a   : > { %v6950_v22 = vcombine.high %v9182_v20, %v9168_v59 }
 0x48b   : > { %2674 = vmatpush1.bf16.msra.mxu0 %v7753_v23  ;;  %2717 = vmatpush1.bf16.msra.mxu1 %v7756_v24  ;;  %v7832_v23 = vld [vmem:[#allocation16 + $0x380] ss:$16 sps:$4 sm:$0xff]   ;;  %v6889_v24 = vcombine.low %v9166_v58, %v9174_v17  ;;  %v7850_v58 = vld [vmem:[#allocation16 + $0x3cc] ss:$16 sps:$4 sm:$0xff]  }
 0x48c   : > { %2675 = vmatprep.subr.bf16.mxu0 %v7761_v25  ;;  %2718 = vmatprep.subr.bf16.mxu1 %v7764_v26  ;;  %v7835_v25 = vld [vmem:[#allocation16 + $0x388] ss:$16 sps:$4 sm:$0xff]   ;;  %v2821_v26 = vrot.slane %v6950_v22, 1  ;;  %v7845_v17 = vld [vmem:[#allocation16 + $0x3c0] ss:$16 sps:$4 sm:$0xff]  }
 0x48f   : > { %2676 = vmatpush1.bf16.msra.mxu0 %v7759_v27  ;;  %2719 = vmatpush1.bf16.msra.mxu1 %v7762_v28  ;;  %v7841_v27 = vld [vmem:[#allocation16 + $0x3a4] ss:$16 sps:$4 sm:$0xff]   ;;  %v7844_v28 = vld [vmem:[#allocation16 + $0x3ac] ss:$16 sps:$4 sm:$0xff]  }
 0x490   : > { %2677 = vmatprep.subr.bf16.mxu0 %v7767_v29  ;;  %2720 = vmatprep.subr.bf16.mxu1 %v7770_v30  ;;  %v7839_v29 = vld [vmem:[#allocation16 + $0x3a0] ss:$16 sps:$4 sm:$0xff]   ;;  %v7842_v30 = vld [vmem:[#allocation16 + $0x3a8] ss:$16 sps:$4 sm:$0xff]  }
 0x493   : > { %2678 = vmatpush1.bf16.msra.mxu0 %v7765_v31  ;;  %2721 = vmatpush1.bf16.msra.mxu1 %v7768_v32  ;;  %v7847_v31 = vld [vmem:[#allocation16 + $0x3c4] ss:$16 sps:$4 sm:$0xff]   ;;  %v7848_v32 = vld [vmem:[#allocation16 + $0x3c8] ss:$16 sps:$4 sm:$0xff]  }
 0x494   : > { %2679 = vmatprep.subr.bf16.mxu0 %v7773_v33  ;;  %2722 = vmatprep.subr.bf16.mxu1 %v7776_v13  ;;  %v7853_v33 = vld [vmem:[#allocation16 + $0x3e4] ss:$16 sps:$4 sm:$0xff]   ;;  %v7856_v13 = vld [vmem:[#allocation16 + $0x3ec] ss:$16 sps:$4 sm:$0xff]  }
 0x497   : > { %2680 = vmatpush1.bf16.msra.mxu0 %v7771_v19  ;;  %2723 = vmatpush1.bf16.msra.mxu1 %v7774_v34  ;;  %v7851_v19 = vld [vmem:[#allocation16 + $0x3e0] ss:$16 sps:$4 sm:$0xff]   ;;  %v7854_v34 = vld [vmem:[#allocation16 + $0x3e8] ss:$16 sps:$4 sm:$0xff]  }
 0x498   : > { %2681 = vmatprep.subr.bf16.mxu0 %v7779_v9  ;;  %2724 = vmatprep.subr.bf16.mxu1 %v7782_v21  ;;  %v7859_v9 = vld [vmem:[#allocation16 + $0x404] ss:$16 sps:$4 sm:$0xff]   ;;  %v7862_v21 = vld [vmem:[#allocation16 + $0x40c] ss:$16 sps:$4 sm:$0xff]  }
 0x49b   : > { %2682 = vmatpush1.bf16.msra.mxu0 %v7777_v35  ;;  %2725 = vmatpush1.bf16.msra.mxu1 %v7780_v36  ;;  %v7857_v35 = vld [vmem:[#allocation16 + $0x400] ss:$16 sps:$4 sm:$0xff]   ;;  %v7860_v36 = vld [vmem:[#allocation16 + $0x408] ss:$16 sps:$4 sm:$0xff]  }
 0x49c   : > { %2683 = vmatprep.subr.bf16.mxu0 %v7785_v37  ;;  %2726 = vmatprep.subr.bf16.mxu1 %v7788_v38  ;;  %v7865_v37 = vld [vmem:[#allocation16 + $0x424] ss:$16 sps:$4 sm:$0xff]   ;;  %v7868_v38 = vld [vmem:[#allocation16 + $0x42c] ss:$16 sps:$4 sm:$0xff]  }
 0x49f   : > { %2684 = vmatpush1.bf16.msra.mxu0 %v7783_v39  ;;  %2727 = vmatpush1.bf16.msra.mxu1 %v7786_v40  ;;  %v7863_v39 = vld [vmem:[#allocation16 + $0x420] ss:$16 sps:$4 sm:$0xff]   ;;  %v7866_v40 = vld [vmem:[#allocation16 + $0x428] ss:$16 sps:$4 sm:$0xff]  }
 0x4a0   : > { %2685 = vmatprep.subr.bf16.mxu0 %v7791_v41  ;;  %2728 = vmatprep.subr.bf16.mxu1 %v7794_v42  ;;  %v7871_v41 = vld [vmem:[#allocation16 + $0x444] ss:$16 sps:$4 sm:$0xff]   ;;  %v7874_v42 = vld [vmem:[#allocation16 + $0x44c] ss:$16 sps:$4 sm:$0xff]  }
 0x4a3   : > { %2686 = vmatpush1.bf16.msra.mxu0 %v7789_v43  ;;  %2729 = vmatpush1.bf16.msra.mxu1 %v7792_v44  ;;  %v7869_v43 = vld [vmem:[#allocation16 + $0x440] ss:$16 sps:$4 sm:$0xff]   ;;  %v7872_v44 = vld [vmem:[#allocation16 + $0x448] ss:$16 sps:$4 sm:$0xff]  }
 0x4a4   : > { %2687 = vmatprep.subr.bf16.mxu0 %v7797_v45  ;;  %2730 = vmatprep.subr.bf16.mxu1 %v7800_v46  ;;  %v7877_v45 = vld [vmem:[#allocation16 + $0x464] ss:$16 sps:$4 sm:$0xff]   ;;  %v7880_v46 = vld [vmem:[#allocation16 + $0x46c] ss:$16 sps:$4 sm:$0xff]  }
 0x4a7   : > { %2688 = vmatpush1.bf16.msra.mxu0 %v7795_v48  ;;  %2731 = vmatpush1.bf16.msra.mxu1 %v7798_v49  ;;  %v7875_v48 = vld [vmem:[#allocation16 + $0x460] ss:$16 sps:$4 sm:$0xff]   ;;  %v7878_v49 = vld [vmem:[#allocation16 + $0x468] ss:$16 sps:$4 sm:$0xff]  }
 0x4a8   : > { %2689 = vmatprep.subr.bf16.mxu0 %v7803_v50  ;;  %2732 = vmatprep.subr.bf16.mxu1 %v7806_v51  ;;  %v7883_v50 = vld [vmem:[#allocation16 + $0x484] ss:$16 sps:$4 sm:$0xff]   ;;  %v7886_v51 = vld [vmem:[#allocation16 + $0x48c] ss:$16 sps:$4 sm:$0xff]  }
 0x4ab   : > { %2690 = vmatpush1.bf16.msra.mxu0 %v7801_v52  ;;  %2733 = vmatpush1.bf16.msra.mxu1 %v7804_v53  ;;  %v7881_v52 = vld [vmem:[#allocation16 + $0x480] ss:$16 sps:$4 sm:$0xff]   ;;  %v7884_v53 = vld [vmem:[#allocation16 + $0x488] ss:$16 sps:$4 sm:$0xff]  }
 0x4ac   : > { %2691 = vmatprep.subr.bf16.mxu0 %v7809_v54  ;;  %2734 = vmatprep.subr.bf16.mxu1 %v7812_v47  ;;  %v7889_v54 = vld [vmem:[#allocation16 + $0x4a4] ss:$16 sps:$4 sm:$0xff]   ;;  %v7892_v47 = vld [vmem:[#allocation16 + $0x4ac] ss:$16 sps:$4 sm:$0xff]  }
 0x4af   : > { %2692 = vmatpush1.bf16.msra.mxu0 %v7807_v55  ;;  %2735 = vmatpush1.bf16.msra.mxu1 %v7810_v56  ;;  %v7887_v55 = vld [vmem:[#allocation16 + $0x4a0] ss:$16 sps:$4 sm:$0xff]   ;;  %v7890_v56 = vld [vmem:[#allocation16 + $0x4a8] ss:$16 sps:$4 sm:$0xff]  }
 0x4b0   : > { %2693 = vmatprep.subr.bf16.mxu0 %v7815_v57  ;;  %2736 = vmatprep.subr.bf16.mxu1 %v7818_v60  ;;  %v7895_v57 = vld [vmem:[#allocation16 + $0x4c4] ss:$16 sps:$4 sm:$0xff]   ;;  %v7898_v60 = vld [vmem:[#allocation16 + $0x4cc] ss:$16 sps:$4 sm:$0xff]  }
 0x4b3   : > { %2694 = vmatpush1.bf16.msra.mxu0 %v7813_v62  ;;  %2737 = vmatpush1.bf16.msra.mxu1 %v7816_v3  ;;  %v7893_v62 = vld [vmem:[#allocation16 + $0x4c0] ss:$16 sps:$4 sm:$0xff]   ;;  %v7896_v3 = vld [vmem:[#allocation16 + $0x4c8] ss:$16 sps:$4 sm:$0xff]  }
 0x4b4   : > { %2695 = vmatprep.subr.bf16.mxu0 %v7821_v11  ;;  %2738 = vmatprep.subr.bf16.mxu1 %v7824_v12  ;;  %v7901_v11 = vld [vmem:[#allocation16 + $0x4e4] ss:$16 sps:$4 sm:$0xff]   ;;  %v7904_v12 = vld [vmem:[#allocation16 + $0x4ec] ss:$16 sps:$4 sm:$0xff]  }
 0x4b7   : > { %2696 = vmatpush1.bf16.msra.mxu0 %v7819_v14  ;;  %2739 = vmatpush1.bf16.msra.mxu1 %v7822_v15  ;;  %v9190_v14 = vld [vmem:[#allocation3] sm:$0xee]  ;;  %v7899_v15 = vld [vmem:[#allocation16 + $0x4e0] ss:$16 sps:$4 sm:$0xff]  }
 0x4b8   : > { %2697 = vmatprep.subr.bf16.mxu0 %v7827_v6  ;;  %2740 = vmatprep.subr.bf16.mxu1 %v7830_v7  ;;  %v7010_v6 = vcombine.high %v9190_v14, %v9168_v59  ;;  %v7902_v7 = vld [vmem:[#allocation16 + $0x4e8] ss:$16 sps:$4 sm:$0xff]  }
 0x4ba   : > { %v3288_v22 = vshrl.u32 %v7010_v6, 16 }
 0x4bb   : > { %2698 = vmatpush1.bf16.msra.mxu0 %v7825_v10  ;;  %2741 = vmatpush1.bf16.msra.mxu1 %v7828_v8  ;;  %v7907_v10 = vld [vmem:[#allocation16 + $0x504] ss:$16 sps:$4 sm:$0xff]   ;;  %v7910_v8 = vld [vmem:[#allocation16 + $0x50c] ss:$16 sps:$4 sm:$0xff]  }
 0x4bc   : > { %3106 = vmatprep.subr.bf16.mxu0 %v7834_v16  ;;  %3149 = vmatprep.subr.bf16.mxu1 %v7837_v18  ;;  %v9194_v16 = vld [vmem:[#allocation3 + $0x10] sm:$0x11]  ;;  %v7905_v18 = vld [vmem:[#allocation16 + $0x500] ss:$16 sps:$4 sm:$0xff]  }
 0x4be   : > { %2704 = vmatmul.mubr.bf16.vlgmr.msra.gmra.mrb[20].mxu0 %v6889_v24  ;;  %2747 = vmatmul.mubr.bf16.vlgmr.msra.gmra.mrb[20].mxu1 %v6889_v24  ;;  %v7908_v24 = vld [vmem:[#allocation16 + $0x508] ss:$16 sps:$4 sm:$0xff]  }
 0x4bf   : > { %3107 = vmatpush1.bf16.msra.mxu0 %v7832_v23  ;;  %7007 = vmatprep.mubr.msk.bf16.mxu0 %vm2292_vm6, %v2821_v26  ;;  %v3291_v23 = vshll.u32 %v7010_v6, 16  ;;  %v7973_v6 = vld [vmem:[#allocation16 + $0x64c] ss:$16 sps:$4 sm:$0xff]  }
 0x4c0   : > { %3150 = vmatpush1.bf16.msra.mxu1 %v7835_v25  ;;  %7008 = vmatprep.mubr.msk.bf16.mxu1 %vm2292_vm6, %v2821_v26  ;;  %v7913_v25 = vld [vmem:[#allocation16 + $0x524] ss:$16 sps:$4 sm:$0xff]   ;;  %v7916_v26 = vld [vmem:[#allocation16 + $0x52c] ss:$16 sps:$4 sm:$0xff]  }
 0x4c1   : > { %3108 = vmatprep.subr.bf16.mxu0 %v7841_v27  ;;  %3151 = vmatprep.subr.bf16.mxu1 %v7844_v28  ;;  %v9198_v27 = vcombine.high %v9194_v16, %v9194_v16  ;;  %v7911_v28 = vld [vmem:[#allocation16 + $0x520] ss:$16 sps:$4 sm:$0xff]  }
 0x4c3   : > { %3109 = vmatpush1.bf16.msra.mxu0 %v7839_v29  ;;  %v3290_v29 = vrot.slane %v3288_v22, 1  ;;  %v7974_v22 = vld [vmem:[#allocation16 + $0x660] ss:$16 sps:$4 sm:$0xff]  }
 0x4c4   : > { %3152 = vmatpush1.bf16.msra.mxu1 %v7842_v30  ;;  %3110 = vmatprep.subr.bf16.mxu0 %v7847_v31  ;;  %v3293_v30 = vrot.slane %v3291_v23, 2  ;;  %v3296_v31 = vshll.u32 %v9198_v27, 16  ;;  %v7977_v23 = vld [vmem:[#allocation16 + $0x668] ss:$16 sps:$4 sm:$0xff]  }
 0x4c5   : > { %3153 = vmatprep.subr.bf16.mxu1 %v7850_v58  ;;  %v7914_v58 = vld [vmem:[#allocation16 + $0x528] ss:$16 sps:$4 sm:$0xff]  }
 0x4c7   : > { %3111 = vmatpush1.bf16.msra.mxu0 %v7845_v17  ;;  %v6949_v17 = vcombine.low %v9182_v20, %v9168_v59 }
 0x4c8   : > { %3154 = vmatpush1.bf16.msra.mxu1 %v7848_v32  ;;  %3112 = vmatprep.subr.bf16.mxu0 %v7853_v33  ;;  %v7920_v32 = vld [vmem:[#allocation16 + $0x544] ss:$16 sps:$4 sm:$0xff]   ;;  %v7923_v33 = vld [vmem:[#allocation16 + $0x54c] ss:$16 sps:$4 sm:$0xff]  }
 0x4c9   : > { %3155 = vmatprep.subr.bf16.mxu1 %v7856_v13  ;;  %v7918_v13 = vld [vmem:[#allocation16 + $0x540] ss:$16 sps:$4 sm:$0xff]  }
 0x4cb   : > { %3113 = vmatpush1.bf16.msra.mxu0 %v7851_v19  ;;  %v3294_v19 = vor.u32 %v3293_v30, %v3290_v29  ;;  %v7988_v29 = vld [vmem:[#allocation16 + $0x6a4] ss:$16 sps:$4 sm:$0xff]   ;;  %v7991_v30 = vld [vmem:[#allocation16 + $0x6ac] ss:$16 sps:$4 sm:$0xff]  }
 0x4cc   : > { %3156 = vmatpush1.bf16.msra.mxu1 %v7854_v34  ;;  %3114 = vmatprep.subr.bf16.mxu0 %v7859_v9  ;;  %v3298_v34 = vrot.slane %v3296_v31, 2  ;;  %v2820_v9 = vrot.slane %v6949_v17, 1  ;;  %v7009_v31 = vcombine.low %v9190_v14, %v9168_v59  ;;  %v7989_v17 = vld [vmem:[#allocation16 + $0x6a8] ss:$16 sps:$4 sm:$0xff]   ;;  %v8000_v14 = vld [vmem:[#allocation16 + $0x6e4] ss:$16 sps:$4 sm:$0xff]  }
 0x4cd   : > { %3157 = vmatprep.subr.bf16.mxu1 %v7862_v21  ;;  %v7921_v21 = vld [vmem:[#allocation16 + $0x548] ss:$16 sps:$4 sm:$0xff]  }
 0x4ce   : > { %v3299_v20 = vsel %vm3273_vm7, %v3294_v19, %v3298_v34  ;;  %v3278_v19 = vshll.u32 %v7009_v31, 16  ;;  %v7992_v34 = vld [vmem:[#allocation16 + $0x6c0] ss:$16 sps:$4 sm:$0xff]  }
 0x4cf   : > { %3115 = vmatpush1.bf16.msra.mxu0 %v7857_v35  ;;  %v7928_v35 = vld [vmem:[#allocation16 + $0x564] ss:$16 sps:$4 sm:$0xff]  }
 0x4d0   : > { %3158 = vmatpush1.bf16.msra.mxu1 %v7860_v36  ;;  %3116 = vmatprep.subr.bf16.mxu0 %v7865_v37  ;;  %v7931_v36 = vld [vmem:[#allocation16 + $0x56c] ss:$16 sps:$4 sm:$0xff]   ;;  %v7926_v37 = vld [vmem:[#allocation16 + $0x560] ss:$16 sps:$4 sm:$0xff]  }
 0x4d1   : > { %3159 = vmatprep.subr.bf16.mxu1 %v7868_v38  ;;  %v7929_v38 = vld [vmem:[#allocation16 + $0x568] ss:$16 sps:$4 sm:$0xff]  }
 0x4d3   : > { %3117 = vmatpush1.bf16.msra.mxu0 %v7863_v39  ;;  %v7934_v39 = vld [vmem:[#allocation16 + $0x584] ss:$16 sps:$4 sm:$0xff]  }
 0x4d4   : > { %3160 = vmatpush1.bf16.msra.mxu1 %v7866_v40  ;;  %3118 = vmatprep.subr.bf16.mxu0 %v7871_v41  ;;  %v7937_v40 = vld [vmem:[#allocation16 + $0x58c] ss:$16 sps:$4 sm:$0xff]   ;;  %v7932_v41 = vld [vmem:[#allocation16 + $0x580] ss:$16 sps:$4 sm:$0xff]  }
 0x4d5   : > { %3161 = vmatprep.subr.bf16.mxu1 %v7874_v42  ;;  %v7935_v42 = vld [vmem:[#allocation16 + $0x588] ss:$16 sps:$4 sm:$0xff]  }
 0x4d7   : > { %3119 = vmatpush1.bf16.msra.mxu0 %v7869_v43  ;;  %v7940_v43 = vld [vmem:[#allocation16 + $0x5a4] ss:$16 sps:$4 sm:$0xff]  }
 0x4d8   : > { %3162 = vmatpush1.bf16.msra.mxu1 %v7872_v44  ;;  %3120 = vmatprep.subr.bf16.mxu0 %v7877_v45  ;;  %v7943_v44 = vld [vmem:[#allocation16 + $0x5ac] ss:$16 sps:$4 sm:$0xff]   ;;  %v7938_v45 = vld [vmem:[#allocation16 + $0x5a0] ss:$16 sps:$4 sm:$0xff]  }
 0x4d9   : > { %3163 = vmatprep.subr.bf16.mxu1 %v7880_v46  ;;  %v7941_v46 = vld [vmem:[#allocation16 + $0x5a8] ss:$16 sps:$4 sm:$0xff]  }
 0x4db   : > { %3121 = vmatpush1.bf16.msra.mxu0 %v7875_v48  ;;  %v7946_v48 = vld [vmem:[#allocation16 + $0x5c4] ss:$16 sps:$4 sm:$0xff]  }
 0x4dc   : > { %3164 = vmatpush1.bf16.msra.mxu1 %v7878_v49  ;;  %3122 = vmatprep.subr.bf16.mxu0 %v7883_v50  ;;  %v7949_v49 = vld [vmem:[#allocation16 + $0x5cc] ss:$16 sps:$4 sm:$0xff]   ;;  %v7944_v50 = vld [vmem:[#allocation16 + $0x5c0] ss:$16 sps:$4 sm:$0xff]  }
 0x4dd   : > { %3165 = vmatprep.subr.bf16.mxu1 %v7886_v51  ;;  %v7947_v51 = vld [vmem:[#allocation16 + $0x5c8] ss:$16 sps:$4 sm:$0xff]  }
 0x4df   : > { %3123 = vmatpush1.bf16.msra.mxu0 %v7881_v52  ;;  %v7952_v52 = vld [vmem:[#allocation16 + $0x5e4] ss:$16 sps:$4 sm:$0xff]  }
 0x4e0   : > { %3166 = vmatpush1.bf16.msra.mxu1 %v7884_v53  ;;  %3124 = vmatprep.subr.bf16.mxu0 %v7889_v54  ;;  %v7955_v53 = vld [vmem:[#allocation16 + $0x5ec] ss:$16 sps:$4 sm:$0xff]   ;;  %v7950_v54 = vld [vmem:[#allocation16 + $0x5e0] ss:$16 sps:$4 sm:$0xff]  }
 0x4e1   : > { %3167 = vmatprep.subr.bf16.mxu1 %v7892_v47  ;;  %v7953_v47 = vld [vmem:[#allocation16 + $0x5e8] ss:$16 sps:$4 sm:$0xff]  }
 0x4e3   : > { %3125 = vmatpush1.bf16.msra.mxu0 %v7887_v55  ;;  %v7958_v55 = vld [vmem:[#allocation16 + $0x604] ss:$16 sps:$4 sm:$0xff]  }
 0x4e4   : > { %3168 = vmatpush1.bf16.msra.mxu1 %v7890_v56  ;;  %3126 = vmatprep.subr.bf16.mxu0 %v7895_v57  ;;  %v7961_v56 = vld [vmem:[#allocation16 + $0x60c] ss:$16 sps:$4 sm:$0xff]   ;;  %v7956_v57 = vld [vmem:[#allocation16 + $0x600] ss:$16 sps:$4 sm:$0xff]  }
 0x4e5   : > { %3169 = vmatprep.subr.bf16.mxu1 %v7898_v60  ;;  %v7959_v60 = vld [vmem:[#allocation16 + $0x608] ss:$16 sps:$4 sm:$0xff]  }
 0x4e7   : > { %3127 = vmatpush1.bf16.msra.mxu0 %v7893_v62  ;;  %v7964_v62 = vld [vmem:[#allocation16 + $0x624] ss:$16 sps:$4 sm:$0xff]  }
 0x4e8   : > { %3170 = vmatpush1.bf16.msra.mxu1 %v7896_v3  ;;  %3128 = vmatprep.subr.bf16.mxu0 %v7901_v11  ;;  %v7967_v3 = vld [vmem:[#allocation16 + $0x62c] ss:$16 sps:$4 sm:$0xff]   ;;  %v7962_v11 = vld [vmem:[#allocation16 + $0x620] ss:$16 sps:$4 sm:$0xff]  }
 0x4e9   : > { %3171 = vmatprep.subr.bf16.mxu1 %v7904_v12  ;;  %v7965_v12 = vld [vmem:[#allocation16 + $0x628] ss:$16 sps:$4 sm:$0xff]  }
 0x4eb   : > { %3129 = vmatpush1.bf16.msra.mxu0 %v7899_v15  ;;  %v7970_v15 = vld [vmem:[#allocation16 + $0x644] ss:$16 sps:$4 sm:$0xff]  }
 0x4ec   : > { %3172 = vmatpush1.bf16.msra.mxu1 %v7902_v7  ;;  %3130 = vmatprep.subr.bf16.mxu0 %v7907_v10  ;;  %v7968_v7 = vld [vmem:[#allocation16 + $0x640] ss:$16 sps:$4 sm:$0xff]   ;;  %v7971_v10 = vld [vmem:[#allocation16 + $0x648] ss:$16 sps:$4 sm:$0xff]  }
 0x4ed   : > { %3173 = vmatprep.subr.bf16.mxu1 %v7910_v8  ;;  %v7976_v8 = vld [vmem:[#allocation16 + $0x664] ss:$16 sps:$4 sm:$0xff]  }
 0x4ef   : > { %3131 = vmatpush1.bf16.msra.mxu0 %v7905_v18  ;;  %v7979_v18 = vld [vmem:[#allocation16 + $0x66c] ss:$16 sps:$4 sm:$0xff]  }
 0x4f0   : > { %3174 = vmatpush1.bf16.msra.mxu1 %v7908_v24  ;;  %3132 = vmatprep.subr.bf16.mxu0 %v7913_v25  ;;  %v7982_v24 = vld [vmem:[#allocation16 + $0x684] ss:$16 sps:$4 sm:$0xff]   ;;  %v7985_v25 = vld [vmem:[#allocation16 + $0x68c] ss:$16 sps:$4 sm:$0xff]  }
 0x4f1   : > { %3175 = vmatprep.subr.bf16.mxu1 %v7916_v26  ;;  %v7980_v26 = vld [vmem:[#allocation16 + $0x680] ss:$16 sps:$4 sm:$0xff]  }
 0x4f3   : > { %3133 = vmatpush1.bf16.msra.mxu0 %v7911_v28  ;;  %v7983_v28 = vld [vmem:[#allocation16 + $0x688] ss:$16 sps:$4 sm:$0xff]  }
 0x4f4   : > { %3176 = vmatpush1.bf16.msra.mxu1 %v7914_v58  ;;  %3584 = vmatprep.subr.bf16.mxu0 %v7920_v32  ;;  %v7986_v58 = vld [vmem:[#allocation16 + $0x6a0] ss:$16 sps:$4 sm:$0xff]   ;;  %v7994_v32 = vld [vmem:[#allocation16 + $0x6c4] ss:$16 sps:$4 sm:$0xff]  }
 0x4f5   : > { %3627 = vmatprep.subr.bf16.mxu1 %v7923_v33  ;;  %v7997_v33 = vld [vmem:[#allocation16 + $0x6cc] ss:$16 sps:$4 sm:$0xff]  }
 0x4f6   : > { %3139 = vmatmul.mubr.bf16.vlgmr.msra.gmra.mrb[20].mxu0 %v2820_v9 }
 0x4f7   : > { %3182 = vmatmul.mubr.bf16.vlgmr.msra.gmra.mrb[20].mxu1 %v2820_v9  ;;  %3585 = vmatpush1.bf16.msra.mxu0 %v7918_v13  ;;  %v3275_v13 = vshrl.u32 %v7009_v31, 16  ;;  %v9210_v9 = vcombine.low %v9194_v16, %v9194_v16  ;;  %v8001_v16 = vld [vmem:[#allocation16 + $0x6e8] ss:$16 sps:$4 sm:$0xff]  }
 0x4f8   : > { %7069 = vmatprep.mubr.msk.bf16.mxu0 %vm2292_vm6, %v3299_v20  ;;  %3628 = vmatpush1.bf16.msra.mxu1 %v7921_v21  ;;  %v7995_v21 = vld [vmem:[#allocation16 + $0x6c8] ss:$16 sps:$4 sm:$0xff]  }
 0x4f9   : > { %7070 = vmatprep.mubr.msk.bf16.mxu1 %vm2292_vm6, %v3299_v20  ;;  %3586 = vmatprep.subr.bf16.mxu0 %v7928_v35  ;;  %v8003_v35 = vld [vmem:[#allocation16 + $0x6ec] ss:$16 sps:$4 sm:$0xff]   ;;  %v3280_v20 = vrot.slane %v3278_v19, 2  ;;  %v8052_v31 = vld [vmem:[#allocation16 + $0x7e8] ss:$16 sps:$4 sm:$0xff]  }
 0x4fa   : > { %3629 = vmatprep.subr.bf16.mxu1 %v7931_v36  ;;  %v3277_v36 = vrot.slane %v3275_v13, 1  ;;  %v8063_v13 = vld [vmem:[#allocation16 + $0x824] ss:$16 sps:$4 sm:$0xff]   ;;  %v8066_v19 = vld [vmem:[#allocation16 + $0x82c] ss:$16 sps:$4 sm:$0xff]  }
 0x4fb   : > { %3587 = vmatpush1.bf16.msra.mxu0 %v7926_v37  ;;  %v3283_v37 = vshll.u32 %v9210_v9, 16 }
 0x4fc   : > { %3630 = vmatpush1.bf16.msra.mxu1 %v7929_v38  ;;  %3588 = vmatprep.subr.bf16.mxu0 %v7934_v39  ;;  %v9213_v38 = vld [vmem:[#allocation3] sm:$0xcc]  ;;  %v7998_v39 = vld [vmem:[#allocation16 + $0x6e0] ss:$16 sps:$4 sm:$0xff]  }
 0x4fd   : > { %3631 = vmatprep.subr.bf16.mxu1 %v7937_v40  ;;  %v7072_v40 = vcombine.high %v9213_v38, %v9168_v59 }
 0x4ff   : > { %3589 = vmatpush1.bf16.msra.mxu0 %v7932_v41  ;;  %v8008_v41 = vld [vmem:[#allocation16 + $0x704] ss:$16 sps:$4 sm:$0xff]  }
 0x500   : > { %3632 = vmatpush1.bf16.msra.mxu1 %v7935_v42  ;;  %3590 = vmatprep.subr.bf16.mxu0 %v7940_v43  ;;  %v3281_v42 = vor.u32 %v3280_v20, %v3277_v36  ;;  %v3285_v43 = vrot.slane %v3283_v37, 2  ;;  %v8067_v36 = vld [vmem:[#allocation16 + $0x840] ss:$16 sps:$4 sm:$0xff]   ;;  %v8070_v20 = vld [vmem:[#allocation16 + $0x848] ss:$16 sps:$4 sm:$0xff]  }
 0x501   : > { %3633 = vmatprep.subr.bf16.mxu1 %v7943_v44  ;;  %v8011_v44 = vld [vmem:[#allocation16 + $0x70c] ss:$16 sps:$4 sm:$0xff]   ;;  %v8075_v37 = vld [vmem:[#allocation16 + $0x864] ss:$16 sps:$4 sm:$0xff]  }
 0x503   : > { %3591 = vmatpush1.bf16.msra.mxu0 %v7938_v45  ;;  %v8006_v45 = vld [vmem:[#allocation16 + $0x700] ss:$16 sps:$4 sm:$0xff]  }
 0x504   : > { %3634 = vmatpush1.bf16.msra.mxu1 %v7941_v46  ;;  %3592 = vmatprep.subr.bf16.mxu0 %v7946_v48  ;;  %v3745_v46 = vrot.slane %v7072_v40, 2  ;;  %v3746_v48 = vrot.slane %v9198_v27, 2  ;;  %v8024_v27 = vld [vmem:[#allocation16 + $0x74c] ss:$16 sps:$4 sm:$0xff]   ;;  %v8073_v40 = vld [vmem:[#allocation16 + $0x860] ss:$16 sps:$4 sm:$0xff]  }
 0x505   : > { %3635 = vmatprep.subr.bf16.mxu1 %v7949_v49  ;;  %v8009_v49 = vld [vmem:[#allocation16 + $0x708] ss:$16 sps:$4 sm:$0xff]  }
 0x507   : > { %3593 = vmatpush1.bf16.msra.mxu0 %v7944_v50  ;;  %v3286_v50 = vsel %vm3273_vm7, %v3281_v42, %v3285_v43  ;;  %v8084_v42 = vld [vmem:[#allocation16 + $0x88c] ss:$16 sps:$4 sm:$0xff]   ;;  %v8079_v43 = vld [vmem:[#allocation16 + $0x880] ss:$16 sps:$4 sm:$0xff]  }
 0x508   : > { %3636 = vmatpush1.bf16.msra.mxu1 %v7947_v51  ;;  %3594 = vmatprep.subr.bf16.mxu0 %v7952_v52  ;;  %v8015_v51 = vld [vmem:[#allocation16 + $0x724] ss:$16 sps:$4 sm:$0xff]   ;;  %v8018_v52 = vld [vmem:[#allocation16 + $0x72c] ss:$16 sps:$4 sm:$0xff]  }
 0x509   : > { %3637 = vmatprep.subr.bf16.mxu1 %v7955_v53  ;;  %v3747_v53 = vsel %vm352_vm9, %v3745_v46, %v3746_v48  ;;  %v8090_v46 = vld [vmem:[#allocation16 + $0x8ac] ss:$16 sps:$4 sm:$0xff]   ;;  %v7071_v48 = vcombine.low %v9213_v38, %v9168_v59  ;;  %v4126_v59 = vld [vmem:[#allocation17] sm:$0xf] }
 0x50a   : > { %v4131_v38 = vrot.slane %v4126_v59, %v9134_v0 }
 0x50b   : > { %3595 = vmatpush1.bf16.msra.mxu0 %v7950_v54  ;;  %v8013_v54 = vld [vmem:[#allocation16 + $0x720] ss:$16 sps:$4 sm:$0xff]  }
 0x50c   : > { %3638 = vmatpush1.bf16.msra.mxu1 %v7953_v47  ;;  %3596 = vmatprep.subr.bf16.mxu0 %v7958_v55  ;;  %v8016_v47 = vld [vmem:[#allocation16 + $0x728] ss:$16 sps:$4 sm:$0xff]   ;;  %v8021_v55 = vld [vmem:[#allocation16 + $0x744] ss:$16 sps:$4 sm:$0xff]  }
 0x50d   : > { %3639 = vmatprep.subr.bf16.mxu1 %v7961_v56  ;;  %v8019_v56 = vld [vmem:[#allocation16 + $0x740] ss:$16 sps:$4 sm:$0xff]  }
 0x50f   : > { %3597 = vmatpush1.bf16.msra.mxu0 %v7956_v57  ;;  %v8022_v57 = vld [vmem:[#allocation16 + $0x748] ss:$16 sps:$4 sm:$0xff]  }
 0x510   : > { %3640 = vmatpush1.bf16.msra.mxu1 %v7959_v60  ;;  %3598 = vmatprep.subr.bf16.mxu0 %v7964_v62  ;;  %v8027_v60 = vld [vmem:[#allocation16 + $0x764] ss:$16 sps:$4 sm:$0xff]   ;;  %v8030_v62 = vld [vmem:[#allocation16 + $0x76c] ss:$16 sps:$4 sm:$0xff]  }
 0x511   : > { %3641 = vmatprep.subr.bf16.mxu1 %v7967_v3  ;;  %v8025_v3 = vld [vmem:[#allocation16 + $0x760] ss:$16 sps:$4 sm:$0xff]  }
 0x513   : > { %3599 = vmatpush1.bf16.msra.mxu0 %v7962_v11  ;;  %v8028_v11 = vld [vmem:[#allocation16 + $0x768] ss:$16 sps:$4 sm:$0xff]  }
 0x514   : > { %3642 = vmatpush1.bf16.msra.mxu1 %v7965_v12  ;;  %3600 = vmatprep.subr.bf16.mxu0 %v7970_v15  ;;  %v8033_v12 = vld [vmem:[#allocation16 + $0x784] ss:$16 sps:$4 sm:$0xff]   ;;  %v8036_v15 = vld [vmem:[#allocation16 + $0x78c] ss:$16 sps:$4 sm:$0xff]  }
 0x515   : > { %3643 = vmatprep.subr.bf16.mxu1 %v7973_v6  ;;  %v8031_v6 = vld [vmem:[#allocation16 + $0x780] ss:$16 sps:$4 sm:$0xff]  }
 0x517   : > { %3601 = vmatpush1.bf16.msra.mxu0 %v7968_v7  ;;  %v8034_v7 = vld [vmem:[#allocation16 + $0x788] ss:$16 sps:$4 sm:$0xff]  }
 0x518   : > { %3644 = vmatpush1.bf16.msra.mxu1 %v7971_v10  ;;  %3602 = vmatprep.subr.bf16.mxu0 %v7976_v8  ;;  %v8039_v10 = vld [vmem:[#allocation16 + $0x7a4] ss:$16 sps:$4 sm:$0xff]   ;;  %v8042_v8 = vld [vmem:[#allocation16 + $0x7ac] ss:$16 sps:$4 sm:$0xff]  }
 0x519   : > { %3645 = vmatprep.subr.bf16.mxu1 %v7979_v18  ;;  %v8037_v18 = vld [vmem:[#allocation16 + $0x7a0] ss:$16 sps:$4 sm:$0xff]  }
 0x51b   : > { %3603 = vmatpush1.bf16.msra.mxu0 %v7974_v22  ;;  %v8040_v22 = vld [vmem:[#allocation16 + $0x7a8] ss:$16 sps:$4 sm:$0xff]  }
 0x51c   : > { %3646 = vmatpush1.bf16.msra.mxu1 %v7977_v23  ;;  %3604 = vmatprep.subr.bf16.mxu0 %v7982_v24  ;;  %v8045_v23 = vld [vmem:[#allocation16 + $0x7c4] ss:$16 sps:$4 sm:$0xff]   ;;  %v8048_v24 = vld [vmem:[#allocation16 + $0x7cc] ss:$16 sps:$4 sm:$0xff]  }
 0x51d   : > { %3647 = vmatprep.subr.bf16.mxu1 %v7985_v25  ;;  %v8043_v25 = vld [vmem:[#allocation16 + $0x7c0] ss:$16 sps:$4 sm:$0xff]  }
 0x51f   : > { %3605 = vmatpush1.bf16.msra.mxu0 %v7980_v26  ;;  %v8046_v26 = vld [vmem:[#allocation16 + $0x7c8] ss:$16 sps:$4 sm:$0xff]  }
 0x520   : > { %3648 = vmatpush1.bf16.msra.mxu1 %v7983_v28  ;;  %3606 = vmatprep.subr.bf16.mxu0 %v7988_v29  ;;  %v8051_v28 = vld [vmem:[#allocation16 + $0x7e4] ss:$16 sps:$4 sm:$0xff]   ;;  %v8054_v29 = vld [vmem:[#allocation16 + $0x7ec] ss:$16 sps:$4 sm:$0xff]  }
 0x521   : > { %3649 = vmatprep.subr.bf16.mxu1 %v7991_v30  ;;  %v8049_v30 = vld [vmem:[#allocation16 + $0x7e0] ss:$16 sps:$4 sm:$0xff]  }
 0x523   : > { %3607 = vmatpush1.bf16.msra.mxu0 %v7986_v58  ;;  %v8057_v58 = vld [vmem:[#allocation16 + $0x804] ss:$16 sps:$4 sm:$0xff]  }
 0x524   : > { %3650 = vmatpush1.bf16.msra.mxu1 %v7989_v17  ;;  %3608 = vmatprep.subr.bf16.mxu0 %v7994_v32  ;;  %v8060_v17 = vld [vmem:[#allocation16 + $0x80c] ss:$16 sps:$4 sm:$0xff]   ;;  %v8055_v32 = vld [vmem:[#allocation16 + $0x800] ss:$16 sps:$4 sm:$0xff]  }
 0x525   : > { %3651 = vmatprep.subr.bf16.mxu1 %v7997_v33  ;;  %v8058_v33 = vld [vmem:[#allocation16 + $0x808] ss:$16 sps:$4 sm:$0xff]  }
 0x527   : > { %3609 = vmatpush1.bf16.msra.mxu0 %v7992_v34  ;;  %v8061_v34 = vld [vmem:[#allocation16 + $0x820] ss:$16 sps:$4 sm:$0xff]  }
 0x528   : > { %3652 = vmatpush1.bf16.msra.mxu1 %v7995_v21  ;;  %3610 = vmatprep.subr.bf16.mxu0 %v8000_v14  ;;  %v8064_v21 = vld [vmem:[#allocation16 + $0x828] ss:$16 sps:$4 sm:$0xff]   ;;  %v8069_v14 = vld [vmem:[#allocation16 + $0x844] ss:$16 sps:$4 sm:$0xff]  }
 0x529   : > { %3653 = vmatprep.subr.bf16.mxu1 %v8003_v35  ;;  %v8072_v35 = vld [vmem:[#allocation16 + $0x84c] ss:$16 sps:$4 sm:$0xff]  }
 0x52b   : > { %3611 = vmatpush1.bf16.msra.mxu0 %v7998_v39  ;;  %v8078_v39 = vld [vmem:[#allocation16 + $0x86c] ss:$16 sps:$4 sm:$0xff]  }
 0x52c   : > { %3654 = vmatpush1.bf16.msra.mxu1 %v8001_v16  ;;  %4032 = vmatprep.subr.bf16.mxu0 %v8008_v41  ;;  %v8076_v16 = vld [vmem:[#allocation16 + $0x868] ss:$16 sps:$4 sm:$0xff]   ;;  %v8081_v41 = vld [vmem:[#allocation16 + $0x884] ss:$16 sps:$4 sm:$0xff]  }
 0x52d   : > { %4075 = vmatprep.subr.bf16.mxu1 %v8011_v44  ;;  %v8082_v44 = vld [vmem:[#allocation16 + $0x888] ss:$16 sps:$4 sm:$0xff]  }
 0x52e   : > { %3617 = vmatmul.mubr.bf16.vlgmr.msra.gmra.mrb[20].mxu0 %v3286_v50 }
 0x52f   : > { %3660 = vmatmul.mubr.bf16.vlgmr.msra.gmra.mrb[20].mxu1 %v3286_v50  ;;  %4033 = vmatpush1.bf16.msra.mxu0 %v8006_v45  ;;  %v8087_v45 = vld [vmem:[#allocation16 + $0x8a4] ss:$16 sps:$4 sm:$0xff]   ;;  %v8088_v50 = vld [vmem:[#allocation16 + $0x8a8] ss:$16 sps:$4 sm:$0xff]  }
 0x530   : > { %7129 = vmatprep.mubr.msk.bf16.mxu0 %vm2292_vm6, %v3747_v53  ;;  %4076 = vmatpush1.bf16.msra.mxu1 %v8009_v49  ;;  %v8085_v49 = vld [vmem:[#allocation16 + $0x8a0] ss:$16 sps:$4 sm:$0xff]  }
 0x531   : > { %7130 = vmatprep.mubr.msk.bf16.mxu1 %vm2292_vm6, %v3747_v53  ;;  %4034 = vmatprep.subr.bf16.mxu0 %v8015_v51  ;;  %v3742_v51 = vrot.slane %v7071_v48, 2  ;;  %v8116_v48 = vld [vmem:[#allocation22 + $0x40] ss:$8 sps:$4 sm:$0xff]  }
 0x532   : > { %4077 = vmatprep.subr.bf16.mxu1 %v8018_v52  ;;  %v3743_v52 = vrot.slane %v9210_v9, 2  ;;  %v4143_v9 = vrot.slane %v4126_v59, %v448_v5 }
 0x533   : > { %4035 = vmatpush1.bf16.msra.mxu0 %v8013_v54  ;;  %v4139_v54 = vrot.slane %v4126_v59, %v444_v2 }
 0x534   : > { %4078 = vmatpush1.bf16.msra.mxu1 %v8016_v47  ;;  %4036 = vmatprep.subr.bf16.mxu0 %v8021_v55  ;;  %v3744_v53 = vsel %vm352_vm9, %v3742_v51, %v3743_v52  ;;  %v4135_v47 = vrot.slane %v4126_v59, %v9138_v4  ;;  %vm4169_vm9 = vcmask 113664   ;;  %v8127_v51 = vld [vmem:[#allocation23 + $0x54] ss:$8 sps:$4 sm:$0xff]   ;;  %v8122_v52 = vld [vmem:[#allocation22 + $0x50] ss:$8 sps:$4 sm:$0xff]  }
 0x535   : > { %4079 = vmatprep.subr.bf16.mxu1 %v8024_v27  ;;  %v8130_v59 = vld [vmem:[#allocation22 + $0x64] ss:$8 sps:$4 sm:$0xff]  }
 0x537   : > { %4037 = vmatpush1.bf16.msra.mxu0 %v8019_v56 }
 0x538   : > { %4080 = vmatpush1.bf16.msra.mxu1 %v8022_v57  ;;  %4038 = vmatprep.subr.bf16.mxu0 %v8027_v60 }
 0x539   : > { %4081 = vmatprep.subr.bf16.mxu1 %v8030_v62 }
 0x53b   : > { %4039 = vmatpush1.bf16.msra.mxu0 %v8025_v3 }
 0x53c   : > { %4082 = vmatpush1.bf16.msra.mxu1 %v8028_v11  ;;  %4040 = vmatprep.subr.bf16.mxu0 %v8033_v12 }
 0x53d   : > { %4083 = vmatprep.subr.bf16.mxu1 %v8036_v15 }
 0x53f   : > { %4041 = vmatpush1.bf16.msra.mxu0 %v8031_v6 }
 0x540   : > { %4084 = vmatpush1.bf16.msra.mxu1 %v8034_v7  ;;  %4042 = vmatprep.subr.bf16.mxu0 %v8039_v10 }
 0x541   : > { %4085 = vmatprep.subr.bf16.mxu1 %v8042_v8 }
 0x543   : > { %4043 = vmatpush1.bf16.msra.mxu0 %v8037_v18 }
 0x544   : > { %4086 = vmatpush1.bf16.msra.mxu1 %v8040_v22  ;;  %4044 = vmatprep.subr.bf16.mxu0 %v8045_v23 }
 0x545   : > { %4087 = vmatprep.subr.bf16.mxu1 %v8048_v24 }
 0x547   : > { %4045 = vmatpush1.bf16.msra.mxu0 %v8043_v25 }
 0x548   : > { %4088 = vmatpush1.bf16.msra.mxu1 %v8046_v26  ;;  %4046 = vmatprep.subr.bf16.mxu0 %v8051_v28 }
 0x549   : > { %4089 = vmatprep.subr.bf16.mxu1 %v8054_v29 }
 0x54b   : > { %4047 = vmatpush1.bf16.msra.mxu0 %v8049_v30 }
 0x54c   : > { %4090 = vmatpush1.bf16.msra.mxu1 %v8052_v31  ;;  %4048 = vmatprep.subr.bf16.mxu0 %v8057_v58 }
 0x54d   : > { %4091 = vmatprep.subr.bf16.mxu1 %v8060_v17 }
 0x54f   : > { %4049 = vmatpush1.bf16.msra.mxu0 %v8055_v32 }
 0x550   : > { %4092 = vmatpush1.bf16.msra.mxu1 %v8058_v33  ;;  %4050 = vmatprep.subr.bf16.mxu0 %v8063_v13  ;;  %v4168_v33 = vld [vmem:[#allocation19] sm:$0xf]  ;;  %v8094_v13 = vld [vmem:[#allocation22 + $0x4] ss:$8 sps:$4 sm:$0xff]  }
 0x551   : > { %4093 = vmatprep.subr.bf16.mxu1 %v8066_v19  ;;  %v8097_v19 = vld [vmem:[#allocation23 + $0x4] ss:$8 sps:$4 sm:$0xff]  }
 0x553   : > { %4051 = vmatpush1.bf16.msra.mxu0 %v8061_v34  ;;  %v4267_v34 = vld [vmem:[#allocation20] sm:$0xf] }
 0x554   : > { %4094 = vmatpush1.bf16.msra.mxu1 %v8064_v21  ;;  %4052 = vmatprep.subr.bf16.mxu0 %v8069_v14  ;;  %v8092_v21 = vld [vmem:[#allocation22] ss:$8 sps:$4 sm:$0xff]  }
 0x555   : > { %4095 = vmatprep.subr.bf16.mxu1 %v8072_v35  ;;  %v8095_v14 = vld [vmem:[#allocation23] ss:$8 sps:$4 sm:$0xff]   ;;  %v8100_v35 = vld [vmem:[#allocation22 + $0x14] ss:$8 sps:$4 sm:$0xff]  }
 0x557   : > { %4053 = vmatpush1.bf16.msra.mxu0 %v8067_v36  ;;  %v8103_v36 = vld [vmem:[#allocation23 + $0x14] ss:$8 sps:$4 sm:$0xff]  }
 0x558   : > { %4096 = vmatpush1.bf16.msra.mxu1 %v8070_v20  ;;  %4054 = vmatprep.subr.bf16.mxu0 %v8075_v37  ;;  %v8098_v20 = vld [vmem:[#allocation22 + $0x10] ss:$8 sps:$4 sm:$0xff]  }
 0x559   : > { %4097 = vmatprep.subr.bf16.mxu1 %v8078_v39  ;;  %v8101_v37 = vld [vmem:[#allocation23 + $0x10] ss:$8 sps:$4 sm:$0xff]   ;;  %v8106_v39 = vld [vmem:[#allocation22 + $0x24] ss:$8 sps:$4 sm:$0xff]  }
 0x55b   : > { %4055 = vmatpush1.bf16.msra.mxu0 %v8073_v40  ;;  %v8109_v40 = vld [vmem:[#allocation23 + $0x24] ss:$8 sps:$4 sm:$0xff]  }
 0x55c   : > { %4098 = vmatpush1.bf16.msra.mxu1 %v8076_v16  ;;  %4056 = vmatprep.subr.bf16.mxu0 %v8081_v41  ;;  %v8107_v16 = vld [vmem:[#allocation23 + $0x20] ss:$8 sps:$4 sm:$0xff]   ;;  %v8112_v41 = vld [vmem:[#allocation22 + $0x34] ss:$8 sps:$4 sm:$0xff]  }
 0x55d   : > { %4099 = vmatprep.subr.bf16.mxu1 %v8084_v42  ;;  %v8115_v42 = vld [vmem:[#allocation23 + $0x34] ss:$8 sps:$4 sm:$0xff]  }
 0x55f   : > { %4057 = vmatpush1.bf16.msra.mxu0 %v8079_v43  ;;  %v8110_v43 = vld [vmem:[#allocation22 + $0x30] ss:$8 sps:$4 sm:$0xff]  }
 0x560   : > { %4100 = vmatpush1.bf16.msra.mxu1 %v8082_v44  ;;  %4058 = vmatprep.subr.bf16.mxu0 %v8087_v45  ;;  %v8113_v44 = vld [vmem:[#allocation23 + $0x30] ss:$8 sps:$4 sm:$0xff]   ;;  %v8118_v45 = vld [vmem:[#allocation22 + $0x44] ss:$8 sps:$4 sm:$0xff]  }
 0x561   : > { %4101 = vmatprep.subr.bf16.mxu1 %v8090_v46  ;;  %v8121_v46 = vld [vmem:[#allocation23 + $0x44] ss:$8 sps:$4 sm:$0xff]  }
 0x563   : > { %4059 = vmatpush1.bf16.msra.mxu0 %v8085_v49  ;;  %v8119_v49 = vld [vmem:[#allocation23 + $0x40] ss:$8 sps:$4 sm:$0xff]  }
 0x564   : > { %4102 = vmatpush1.bf16.msra.mxu1 %v8088_v50  ;;  %v8124_v50 = vld [vmem:[#allocation22 + $0x54] ss:$8 sps:$4 sm:$0xff]  }
 0x566   : > { %4065 = vmatmul.mubr.bf16.vlgmr.msra.gmra.mrb[20].mxu0 %v3744_v53 }
 0x567   : > { %4108 = vmatmul.mubr.bf16.vlgmr.msra.gmra.mrb[20].mxu1 %v3744_v53  ;;  %4217 = vmatprep.mubr.bf16.mxu0 %v8740_v61  ;;  %v8125_v53 = vld [vmem:[#allocation23 + $0x50] ss:$8 sps:$4 sm:$0xff]  }
 0x568   : > { %4258 = vmatprep.mubr.bf16.mxu1 %v8740_v61 }
 0x639   : > { %v4066_v55 = vpop.f32.mrb[20].mxu0 }
 0x63a   : > { %v4148_v27 = vadd.f32 %v4131_v38, %v4066_v55  ;;  %v4109_v56 = vpop.f32.mrb[20].mxu1  ;;  %v4068_v57 = vpop.f32.mrb[21].mxu0  ;;  %v8139_v55 = vld [vmem:[#allocation23 + $0x74] ss:$8 sps:$4 sm:$0xff]  }
 0x63b   : > { %v4150_v60 = vadd.f32 %v4139_v54, %v4109_v56  ;;  %v4149_v62 = vadd.f32 %v4135_v47, %v4068_v57  ;;  %v4111_v3 = vpop.f32.mrb[21].mxu1  ;;  %v4070_v11 = vpop.f32.mrb[22].mxu0  ;;  %v8137_v56 = vld [vmem:[#allocation23 + $0x70] ss:$8 sps:$4 sm:$0xff]   ;;  %v8142_v57 = vld [vmem:[#allocation22 + $0x84] ss:$8 sps:$4 sm:$0xff]  }
 0x63c   : > { %v4151_v12 = vadd.f32 %v4143_v9, %v4111_v3  ;;  %v4152_v15 = vadd.f32 %v4131_v38, %v4070_v11  ;;  %v4113_v6 = vpop.f32.mrb[22].mxu1  ;;  %v4072_v7 = vpop.f32.mrb[23].mxu0  ;;  %v4156_v18 = vmax.f32 %v4148_v27, 0.0  ;;  %v8133_v38 = vld [vmem:[#allocation23 + $0x64] ss:$8 sps:$4 sm:$0xff]  }
 0x63d   : > { %v4154_v10 = vadd.f32 %v4139_v54, %v4113_v6  ;;  %v4153_v8 = vadd.f32 %v4135_v47, %v4072_v7  ;;  %v4115_v2 = vpop.f32.mrb[23].mxu1  ;;  %v4158_v63 = vmax.f32 %v4150_v60, 0.0  ;;  %v4157_v5 = vmax.f32 %v4149_v62, 0.0  ;;  %v8128_v54 = vld [vmem:[#allocation22 + $0x60] ss:$8 sps:$4 sm:$0xff]  }
 0x63e   : > { %v4160_v22 = vmax.f32 %v4152_v15, 0.0  ;;  %v4155_v23 = vadd.f32 %v4143_v9, %v4115_v2  ;;  %v4159_v26 = vmax.f32 %v4151_v12, 0.0  ;;  %v8131_v47 = vld [vmem:[#allocation23 + $0x60] ss:$8 sps:$4 sm:$0xff]   ;;  %v8136_v9 = vld [vmem:[#allocation22 + $0x74] ss:$8 sps:$4 sm:$0xff]  }
 0x63f   : > { %v4162_v24 = vmax.f32 %v4154_v10, 0.0  ;;  %v4161_v25 = vmax.f32 %v4153_v8, 0.0  ;;  %v8134_v27 = vld [vmem:[#allocation22 + $0x70] ss:$8 sps:$4 sm:$0xff]   ;;  %v8145_v60 = vld [vmem:[#allocation23 + $0x84] ss:$8 sps:$4 sm:$0xff]  }
 0x640   : > { %v4164_v28 = vpack.c.bf16 %v4160_v22, %v4156_v18  ;;  %v4163_v29 = vmax.f32 %v4155_v23, 0.0  ;;  %v8140_v62 = vld [vmem:[#allocation22 + $0x80] ss:$8 sps:$4 sm:$0xff]   ;;  %v8148_v11 = vld [vmem:[#allocation22 + $0x94] ss:$8 sps:$4 sm:$0xff]  }
 0x641   : > { %v4166_v30 = vpack.c.bf16 %v4162_v24, %v4158_v63  ;;  %v4165_v31 = vpack.c.bf16 %v4161_v25, %v4157_v5  ;;  %v8143_v3 = vld [vmem:[#allocation23 + $0x80] ss:$8 sps:$4 sm:$0xff]   ;;  %v8151_v12 = vld [vmem:[#allocation23 + $0x94] ss:$8 sps:$4 sm:$0xff]   ;;  %v8146_v15 = vld [vmem:[#allocation22 + $0x90] ss:$8 sps:$4 sm:$0xff]  }
 0x642   : > { %v4167_v58 = vpack.c.bf16 %v4163_v29, %v4159_v26  ;;  %v4174_v17 = vsel %vm326_vm8, %v4164_v28, 0  ;;  %v8149_v6 = vld [vmem:[#allocation23 + $0x90] ss:$8 sps:$4 sm:$0xff]   ;;  %v8154_v7 = vld [vmem:[#allocation22 + $0xa4] ss:$8 sps:$4 sm:$0xff]  }
 0x643   : > { %7131 = vmatprep.subr.msk.bf16.mxu0 %vm326_vm8, %v4165_v31  ;;  %v4180_v32 = vsel %vm326_vm8, %v4166_v30, 0  ;;  %v8157_v10 = vld [vmem:[#allocation23 + $0xa4] ss:$8 sps:$4 sm:$0xff]   ;;  %v8152_v8 = vld [vmem:[#allocation22 + $0xa0] ss:$8 sps:$4 sm:$0xff]  }
 0x644   : > { %7133 = vmatprep.subr.msk.bf16.mxu1 %vm326_vm8, %v4167_v58  ;;  %4186 = vmatpush1.bf16.msra.mxu0 %v4174_v17  ;;  %v8155_v2 = vld [vmem:[#allocation23 + $0xa0] ss:$8 sps:$4 sm:$0xff]   ;;  %v8160_v18 = vld [vmem:[#allocation22 + $0xb4] ss:$8 sps:$4 sm:$0xff]   ;;  %v8158_v23 = vld [vmem:[#allocation22 + $0xb0] ss:$8 sps:$4 sm:$0xff]  }
 0x645   : > { %4227 = vmatpush1.bf16.msra.mxu1 %v4180_v32  ;;  %7135 = vmatprep.subr.msk.bf16.mxu0 %vm326_vm8, %v4165_v31  ;;  %v8163_v22 = vld [vmem:[#allocation23 + $0xb4] ss:$8 sps:$4 sm:$0xff]   ;;  %v8161_v63 = vld [vmem:[#allocation23 + $0xb0] ss:$8 sps:$4 sm:$0xff]   ;;  %v8166_v5 = vld [vmem:[#allocation22 + $0xc4] ss:$8 sps:$4 sm:$0xff]  }
 0x646   : > { %7137 = vmatprep.subr.msk.bf16.mxu1 %vm326_vm8, %v4167_v58  ;;  %v8169_v24 = vld [vmem:[#allocation23 + $0xc4] ss:$8 sps:$4 sm:$0xff]   ;;  %v8164_v25 = vld [vmem:[#allocation22 + $0xc0] ss:$8 sps:$4 sm:$0xff]   ;;  %v8170_v28 = vld [vmem:[#allocation22 + $0xd0] ss:$8 sps:$4 sm:$0xff]  }
 0x647   : > { %7132 = vmatmul.mubr.msk.bf16.vlgmr.msra.gmra.mrb[24].mxu0 %vm4169_vm9, %v4168_v33  ;;  %v8167_v26 = vld [vmem:[#allocation23 + $0xc0] ss:$8 sps:$4 sm:$0xff]   ;;  %v8172_v29 = vld [vmem:[#allocation22 + $0xd4] ss:$8 sps:$4 sm:$0xff]   ;;  %v8173_v30 = vld [vmem:[#allocation23 + $0xd0] ss:$8 sps:$4 sm:$0xff]  }
 0x648   : > { %7134 = vmatmul.mubr.msk.bf16.vlgmr.msra.gmra.mrb[24].mxu1 %vm4169_vm9, %v4168_v33  ;;  %4272 = vmatpush1.bf16.msra.mxu0 %v4174_v17  ;;  %v8175_v31 = vld [vmem:[#allocation23 + $0xd4] ss:$8 sps:$4 sm:$0xff]   ;;  %v8176_v58 = vld [vmem:[#allocation22 + $0xe0] ss:$8 sps:$4 sm:$0xff]   ;;  %v8178_v17 = vld [vmem:[#allocation22 + $0xe4] ss:$8 sps:$4 sm:$0xff]  }
 0x649   : > { %4313 = vmatpush1.bf16.msra.mxu1 %v4180_v32  ;;  %4303 = vmatprep.mubr.bf16.mxu0 %v8740_v61  ;;  %v8179_v32 = vld [vmem:[#allocation23 + $0xe0] ss:$8 sps:$4 sm:$0xff]   ;;  %v8181_v33 = vld [vmem:[#allocation23 + $0xe4] ss:$8 sps:$4 sm:$0xff]   ;;  %vm5206_vm8 = vcmask 784384  }
 0x64a   : > { %4344 = vmatprep.mubr.bf16.mxu1 %v8740_v61  ;;  %4700 = vmatprep.subr.bf16.mxu0 %v8094_v13  ;;  %v8104_v61 = vld [vmem:[#allocation22 + $0x20] ss:$8 sps:$4 sm:$0xff]   ;;  %v8184_v13 = vld [vmem:[#allocation22 + $0xf4] ss:$8 sps:$4 sm:$0xff]  }
 0x64b   : > { %5118 = vmatprep.subr.bf16.mxu1 %v8097_v19  ;;  %v8187_v19 = vld [vmem:[#allocation23 + $0xf4] ss:$8 sps:$4 sm:$0xff]  }
 0x64f   : > { %7136 = vmatmul.mubr.msk.bf16.vlgmr.msra.gmra.mrb[28].mxu0 %vm4169_vm9, %v4267_v34 }
 0x650   : > { %7138 = vmatmul.mubr.msk.bf16.vlgmr.msra.gmra.mrb[28].mxu1 %vm4169_vm9, %v4267_v34  ;;  %4701 = vmatpush1.bf16.msra.mxu0 %v8092_v21  ;;  %v8182_v34 = vld [vmem:[#allocation22 + $0xf0] ss:$8 sps:$4 sm:$0xff]  }
 0x651   : > { %5119 = vmatpush1.bf16.msra.mxu1 %v8095_v14  ;;  %4702 = vmatprep.subr.bf16.mxu0 %v8100_v35  ;;  %v8185_v21 = vld [vmem:[#allocation23 + $0xf0] ss:$8 sps:$4 sm:$0xff]   ;;  %v8190_v14 = vld [vmem:[#allocation22 + $0x104] ss:$8 sps:$4 sm:$0xff]  }
 0x652   : > { %5120 = vmatprep.subr.bf16.mxu1 %v8103_v36  ;;  %v8193_v35 = vld [vmem:[#allocation23 + $0x104] ss:$8 sps:$4 sm:$0xff]  }
 0x654   : > { %4703 = vmatpush1.bf16.msra.mxu0 %v8098_v20 }
 0x655   : > { %5121 = vmatpush1.bf16.msra.mxu1 %v8101_v37  ;;  %4704 = vmatprep.subr.bf16.mxu0 %v8106_v39 }
 0x656   : > { %5122 = vmatprep.subr.bf16.mxu1 %v8109_v40 }
 0x658   : > { %4705 = vmatpush1.bf16.msra.mxu0 %v8104_v61 }
 0x659   : > { %5123 = vmatpush1.bf16.msra.mxu1 %v8107_v16  ;;  %4706 = vmatprep.subr.bf16.mxu0 %v8112_v41 }
 0x65a   : > { %5124 = vmatprep.subr.bf16.mxu1 %v8115_v42 }
 0x65c   : > { %4707 = vmatpush1.bf16.msra.mxu0 %v8110_v43 }
 0x65d   : > { %5125 = vmatpush1.bf16.msra.mxu1 %v8113_v44  ;;  %4708 = vmatprep.subr.bf16.mxu0 %v8118_v45 }
 0x65e   : > { %5126 = vmatprep.subr.bf16.mxu1 %v8121_v46 }
 0x660   : > { %4709 = vmatpush1.bf16.msra.mxu0 %v8116_v48 }
 0x661   : > { %5127 = vmatpush1.bf16.msra.mxu1 %v8119_v49  ;;  %4710 = vmatprep.subr.bf16.mxu0 %v8124_v50 }
 0x662   : > { %5128 = vmatprep.subr.bf16.mxu1 %v8127_v51 }
 0x664   : > { %4711 = vmatpush1.bf16.msra.mxu0 %v8122_v52 }
 0x665   : > { %5129 = vmatpush1.bf16.msra.mxu1 %v8125_v53  ;;  %4712 = vmatprep.subr.bf16.mxu0 %v8130_v59 }
 0x666   : > { %5130 = vmatprep.subr.bf16.mxu1 %v8133_v38  ;;  %v8188_v38 = vld [vmem:[#allocation22 + $0x100] ss:$8 sps:$4 sm:$0xff]  }
 0x668   : > { %4713 = vmatpush1.bf16.msra.mxu0 %v8128_v54  ;;  %v8191_v54 = vld [vmem:[#allocation23 + $0x100] ss:$8 sps:$4 sm:$0xff]  }
 0x669   : > { %5131 = vmatpush1.bf16.msra.mxu1 %v8131_v47  ;;  %4714 = vmatprep.subr.bf16.mxu0 %v8136_v9 }
 0x66a   : > { %5132 = vmatprep.subr.bf16.mxu1 %v8139_v55  ;;  %v8196_v55 = vld [vmem:[#allocation22 + $0x114] ss:$8 sps:$4 sm:$0xff]  }
 0x66c   : > { %4715 = vmatpush1.bf16.msra.mxu0 %v8134_v27  ;;  %v8199_v27 = vld [vmem:[#allocation23 + $0x114] ss:$8 sps:$4 sm:$0xff]  }
 0x66d   : > { %5133 = vmatpush1.bf16.msra.mxu1 %v8137_v56  ;;  %4716 = vmatprep.subr.bf16.mxu0 %v8142_v57  ;;  %v8194_v57 = vld [vmem:[#allocation22 + $0x110] ss:$8 sps:$4 sm:$0xff]  }
 0x66e   : > { %5134 = vmatprep.subr.bf16.mxu1 %v8145_v60  ;;  %v8197_v60 = vld [vmem:[#allocation23 + $0x110] ss:$8 sps:$4 sm:$0xff]  }
 0x670   : > { %4717 = vmatpush1.bf16.msra.mxu0 %v8140_v62  ;;  %v8202_v62 = vld [vmem:[#allocation22 + $0x124] ss:$8 sps:$4 sm:$0xff]  }
 0x671   : > { %5135 = vmatpush1.bf16.msra.mxu1 %v8143_v3  ;;  %4718 = vmatprep.subr.bf16.mxu0 %v8148_v11  ;;  %v8205_v3 = vld [vmem:[#allocation23 + $0x124] ss:$8 sps:$4 sm:$0xff]   ;;  %v8200_v11 = vld [vmem:[#allocation22 + $0x120] ss:$8 sps:$4 sm:$0xff]  }
 0x672   : > { %5136 = vmatprep.subr.bf16.mxu1 %v8151_v12  ;;  %v8203_v12 = vld [vmem:[#allocation23 + $0x120] ss:$8 sps:$4 sm:$0xff]  }
 0x674   : > { %4719 = vmatpush1.bf16.msra.mxu0 %v8146_v15  ;;  %v8208_v15 = vld [vmem:[#allocation22 + $0x134] ss:$8 sps:$4 sm:$0xff]  }
 0x675   : > { %5137 = vmatpush1.bf16.msra.mxu1 %v8149_v6  ;;  %4720 = vmatprep.subr.bf16.mxu0 %v8154_v7  ;;  %v8211_v6 = vld [vmem:[#allocation23 + $0x134] ss:$8 sps:$4 sm:$0xff]   ;;  %v8206_v7 = vld [vmem:[#allocation22 + $0x130] ss:$8 sps:$4 sm:$0xff]  }
 0x676   : > { %5138 = vmatprep.subr.bf16.mxu1 %v8157_v10  ;;  %v8209_v10 = vld [vmem:[#allocation23 + $0x130] ss:$8 sps:$4 sm:$0xff]  }
 0x678   : > { %4721 = vmatpush1.bf16.msra.mxu0 %v8152_v8  ;;  %v8214_v8 = vld [vmem:[#allocation22 + $0x144] ss:$8 sps:$4 sm:$0xff]  }
 0x679   : > { %5139 = vmatpush1.bf16.msra.mxu1 %v8155_v2  ;;  %4722 = vmatprep.subr.bf16.mxu0 %v8160_v18  ;;  %v8217_v2 = vld [vmem:[#allocation23 + $0x144] ss:$8 sps:$4 sm:$0xff]   ;;  %v8212_v18 = vld [vmem:[#allocation22 + $0x140] ss:$8 sps:$4 sm:$0xff]  }
 0x67a   : > { %5140 = vmatprep.subr.bf16.mxu1 %v8163_v22  ;;  %v8215_v22 = vld [vmem:[#allocation23 + $0x140] ss:$8 sps:$4 sm:$0xff]  }
 0x67c   : > { %4723 = vmatpush1.bf16.msra.mxu0 %v8158_v23  ;;  %v8220_v23 = vld [vmem:[#allocation22 + $0x154] ss:$8 sps:$4 sm:$0xff]  }
 0x67d   : > { %5141 = vmatpush1.bf16.msra.mxu1 %v8161_v63  ;;  %4724 = vmatprep.subr.bf16.mxu0 %v8166_v5  ;;  %v8223_v63 = vld [vmem:[#allocation23 + $0x154] ss:$8 sps:$4 sm:$0xff]   ;;  %v8218_v5 = vld [vmem:[#allocation22 + $0x150] ss:$8 sps:$4 sm:$0xff]  }
 0x67e   : > { %5142 = vmatprep.subr.bf16.mxu1 %v8169_v24  ;;  %v8221_v24 = vld [vmem:[#allocation23 + $0x150] ss:$8 sps:$4 sm:$0xff]  }
 0x680   : > { %4725 = vmatpush1.bf16.msra.mxu0 %v8164_v25  ;;  %v8226_v25 = vld [vmem:[#allocation22 + $0x164] ss:$8 sps:$4 sm:$0xff]  }
 0x681   : > { %5143 = vmatpush1.bf16.msra.mxu1 %v8167_v26  ;;  %4726 = vmatprep.subr.bf16.mxu0 %v8172_v29  ;;  %v8229_v26 = vld [vmem:[#allocation23 + $0x164] ss:$8 sps:$4 sm:$0xff]   ;;  %v8227_v29 = vld [vmem:[#allocation23 + $0x160] ss:$8 sps:$4 sm:$0xff]  }
 0x682   : > { %5144 = vmatprep.subr.bf16.mxu1 %v8175_v31  ;;  %v8235_v31 = vld [vmem:[#allocation23 + $0x174] ss:$8 sps:$4 sm:$0xff]  }
 0x684   : > { %4727 = vmatpush1.bf16.msra.mxu0 %v8170_v28  ;;  %v8224_v28 = vld [vmem:[#allocation22 + $0x160] ss:$8 sps:$4 sm:$0xff]  }
 0x685   : > { %5145 = vmatpush1.bf16.msra.mxu1 %v8173_v30  ;;  %4728 = vmatprep.subr.bf16.mxu0 %v8178_v17  ;;  %v8232_v30 = vld [vmem:[#allocation22 + $0x174] ss:$8 sps:$4 sm:$0xff]   ;;  %v8233_v17 = vld [vmem:[#allocation23 + $0x170] ss:$8 sps:$4 sm:$0xff]  }
 0x686   : > { %5146 = vmatprep.subr.bf16.mxu1 %v8181_v33  ;;  %v8241_v33 = vld [vmem:[#allocation23 + $0x184] ss:$8 sps:$4 sm:$0xff]  }
 0x688   : > { %4729 = vmatpush1.bf16.msra.mxu0 %v8176_v58  ;;  %v8230_v58 = vld [vmem:[#allocation22 + $0x170] ss:$8 sps:$4 sm:$0xff]  }
 0x689   : > { %5147 = vmatpush1.bf16.msra.mxu1 %v8179_v32  ;;  %4730 = vmatprep.subr.bf16.mxu0 %v8184_v13  ;;  %v8238_v32 = vld [vmem:[#allocation22 + $0x184] ss:$8 sps:$4 sm:$0xff]   ;;  %v8236_v13 = vld [vmem:[#allocation22 + $0x180] ss:$8 sps:$4 sm:$0xff]  }
 0x68a   : > { %5148 = vmatprep.subr.bf16.mxu1 %v8187_v19  ;;  %v8239_v19 = vld [vmem:[#allocation23 + $0x180] ss:$8 sps:$4 sm:$0xff]  }
 0x68c   : > { %4731 = vmatpush1.bf16.msra.mxu0 %v8182_v34  ;;  %v8244_v34 = vld [vmem:[#allocation22 + $0x194] ss:$8 sps:$4 sm:$0xff]  }
 0x68d   : > { %5149 = vmatpush1.bf16.msra.mxu1 %v8185_v21  ;;  %4741 = vmatprep.subr.bf16.mxu0 %v8190_v14  ;;  %v8247_v21 = vld [vmem:[#allocation23 + $0x194] ss:$8 sps:$4 sm:$0xff]   ;;  %v8242_v14 = vld [vmem:[#allocation22 + $0x190] ss:$8 sps:$4 sm:$0xff]  }
 0x68e   : > { %5159 = vmatprep.subr.bf16.mxu1 %v8193_v35  ;;  %v8245_v35 = vld [vmem:[#allocation23 + $0x190] ss:$8 sps:$4 sm:$0xff]  }
 0x71a   : > { %v4219_v36 = vpop.f32.mrb[24].mxu0 }
 0x71b   : > { %v4221_v20 = vpop.f32.mrb[25].mxu0  ;;  %v4260_v37 = vpop.f32.mrb[24].mxu1 }
 0x71c   : > { %v4223_v39 = vpop.f32.mrb[26].mxu0  ;;  %v4262_v40 = vpop.f32.mrb[25].mxu1 }
 0x71d   : > { %v4224_v61 = vpop.f32.mrb[27].mxu0  ;;  %v4264_v16 = vpop.f32.mrb[26].mxu1  ;;  %v8251_v39 = vld [vmem:[#allocation23 + $0x1a0] ss:$8 sps:$4 sm:$0xff]  }
 0x71e   : > { %v4265_v41 = vpop.f32.mrb[27].mxu1  ;;  %v8259_v61 = vld [vmem:[#allocation23 + $0x1b4] ss:$8 sps:$4 sm:$0xff]   ;;  %v8254_v16 = vld [vmem:[#allocation22 + $0x1b0] ss:$8 sps:$4 sm:$0xff]  }
 0x71f   : > { %v8257_v41 = vld [vmem:[#allocation23 + $0x1b0] ss:$8 sps:$4 sm:$0xff]  }
 0x722   : > { %v4305_v42 = vpop.f32.mrb[28].mxu0 }
 0x723   : > { %v4353_v43 = vmax.f32 %v4219_v36, %v4305_v42  ;;  %v4307_v44 = vpop.f32.mrb[29].mxu0  ;;  %v4346_v45 = vpop.f32.mrb[28].mxu1  ;;  %v8250_v36 = vld [vmem:[#allocation22 + $0x1a4] ss:$8 sps:$4 sm:$0xff]  }
 0x724   : > { %v4354_v46 = vmax.f32 %v4221_v20, %v4307_v44  ;;  %v4309_v48 = vpop.f32.mrb[30].mxu0  ;;  %v9246_v49 = vmax.f32 %v4260_v37, %v4346_v45  ;;  %v4348_v50 = vpop.f32.mrb[29].mxu1  ;;  %v8253_v20 = vld [vmem:[#allocation23 + $0x1a4] ss:$8 sps:$4 sm:$0xff]   ;;  %v8248_v37 = vld [vmem:[#allocation22 + $0x1a0] ss:$8 sps:$4 sm:$0xff]  }
 0x725   : > { %v4310_v51 = vpop.f32.mrb[31].mxu0  ;;  %v4356_v52 = vmax.f32 %v4262_v40, %v4348_v50  ;;  %v4350_v53 = vpop.f32.mrb[30].mxu1  ;;  %v4357_v9 = vpack.c.bf16 %v4353_v43, %v4353_v43  ;;  %v8256_v40 = vld [vmem:[#allocation22 + $0x1b4] ss:$8 sps:$4 sm:$0xff]  }
 0x726   : > { %v4358_v59 = vpack.c.bf16 %v4354_v46, %v4354_v46  ;;  %v4351_v47 = vpop.f32.mrb[31].mxu1  ;;  %v4359_v42 = vpack.c.bf16 %v9246_v49, %v9246_v49  ;;  %v8260_v49 = vld [vmem:[#allocation25 + $0x70] sm:$0xff] (%p249_p0)  }
 0x727   : > { %v4360_v56 = vpack.c.bf16 %v4356_v52, %v4356_v52  ;;  %v8263_v47 = vld [vmem:[#allocation25 + $0x8] sm:$0xff] (%p249_p0)  }
 0x728   : > { %4732 = vmatprep.mubr.bf16.mxu0 %v4358_v59  ;;  %5150 = vmatprep.mubr.bf16.mxu1 %v4358_v59 }
 0x729   : > { %4733 = vmatmul.mubr.bf16.vlgmr.msra.gmra.mrb[32].mxu0 %v4357_v9  ;;  %5151 = vmatmul.mubr.bf16.vlgmr.msra.gmra.mrb[32].mxu1 %v4357_v9  ;;  %v8264_v9 = vld [vmem:[#allocation25 + $0x80] sm:$0xff] (%p249_p0)  }
 0x72a   : > { %4742 = vmatpush1.bf16.msra.mxu0 %v8188_v38  ;;  %5160 = vmatpush1.bf16.msra.mxu1 %v8191_v54  ;;  %v8261_v38 = vld [vmem:[#allocation25] sm:$0xff] (%p249_p0)   ;;  %v8262_v54 = vld [vmem:[#allocation25 + $0x78] sm:$0xff] (%p249_p0)  }
 0x72b   : > { %4743 = vmatprep.subr.bf16.mxu0 %v8196_v55  ;;  %5161 = vmatprep.subr.bf16.mxu1 %v8199_v27  ;;  %v8265_v55 = vld [vmem:[#allocation25 + $0x10] sm:$0xff] (%p249_p0)   ;;  %v8266_v27 = vld [vmem:[#allocation25 + $0x88] sm:$0xff] (%p249_p0)  }
 0x72c   : > { %7195 = vmatprep.mubr.msk.bf16.mxu0 %vm1330_vm12, %v4360_v56  ;;  %7252 = vmatprep.mubr.msk.bf16.mxu1 %vm1330_vm12, %v4360_v56  ;;  %v8267_v56 = vld [vmem:[#allocation25 + $0x18] sm:$0xff] (%p249_p0)  }
 0x72e   : > { %4744 = vmatpush1.bf16.msra.mxu0 %v8194_v57  ;;  %5162 = vmatpush1.bf16.msra.mxu1 %v8197_v60  ;;  %v8268_v57 = vld [vmem:[#allocation25 + $0x90] sm:$0xff] (%p249_p0)   ;;  %v8269_v60 = vld [vmem:[#allocation25 + $0x20] sm:$0xff] (%p249_p0)  }
 0x72f   : > { %4745 = vmatprep.subr.bf16.mxu0 %v8202_v62  ;;  %5163 = vmatprep.subr.bf16.mxu1 %v8205_v3  ;;  %v8270_v62 = vld [vmem:[#allocation25 + $0x98] sm:$0xff] (%p249_p0)   ;;  %v8271_v3 = vld [vmem:[#allocation25 + $0x28] sm:$0xff] (%p249_p0)  }
 0x732   : > { %4746 = vmatpush1.bf16.msra.mxu0 %v8200_v11  ;;  %5164 = vmatpush1.bf16.msra.mxu1 %v8203_v12  ;;  %v8272_v11 = vld [vmem:[#allocation25 + $0xa0] sm:$0xff] (%p249_p0)   ;;  %v8273_v12 = vld [vmem:[#allocation25 + $0x30] sm:$0xff] (%p249_p0)  }
 0x733   : > { %4747 = vmatprep.subr.bf16.mxu0 %v8208_v15  ;;  %5165 = vmatprep.subr.bf16.mxu1 %v8211_v6  ;;  %v8274_v15 = vld [vmem:[#allocation25 + $0xa8] sm:$0xff] (%p249_p0)   ;;  %v8275_v6 = vld [vmem:[#allocation25 + $0x38] sm:$0xff] (%p249_p0)  }
 0x736   : > { %4748 = vmatpush1.bf16.msra.mxu0 %v8206_v7  ;;  %5166 = vmatpush1.bf16.msra.mxu1 %v8209_v10 }
 0x737   : > { %4749 = vmatprep.subr.bf16.mxu0 %v8214_v8  ;;  %5167 = vmatprep.subr.bf16.mxu1 %v8217_v2 }
 0x73a   : > { %4750 = vmatpush1.bf16.msra.mxu0 %v8212_v18  ;;  %5168 = vmatpush1.bf16.msra.mxu1 %v8215_v22 }
 0x73b   : > { %4751 = vmatprep.subr.bf16.mxu0 %v8220_v23  ;;  %5169 = vmatprep.subr.bf16.mxu1 %v8223_v63  ;;  %v8276_v23 = vld [vmem:[#allocation25 + $0xb0] sm:$0xff] (%p249_p0)  }
 0x73e   : > { %4752 = vmatpush1.bf16.msra.mxu0 %v8218_v5  ;;  %5170 = vmatpush1.bf16.msra.mxu1 %v8221_v24  ;;  %v8277_v24 = vld [vmem:[#allocation25 + $0x40] sm:$0xff] (%p249_p0)  }
 0x73f   : > { %4753 = vmatprep.subr.bf16.mxu0 %v8226_v25  ;;  %5171 = vmatprep.subr.bf16.mxu1 %v8229_v26 }
 0x742   : > { %4754 = vmatpush1.bf16.msra.mxu0 %v8224_v28  ;;  %5172 = vmatpush1.bf16.msra.mxu1 %v8227_v29 }
 0x743   : > { %4755 = vmatprep.subr.bf16.mxu0 %v8232_v30  ;;  %5173 = vmatprep.subr.bf16.mxu1 %v8235_v31  ;;  %v8278_v30 = vld [vmem:[#allocation25 + $0xb8] sm:$0xff] (%p249_p0)  }
 0x746   : > { %4756 = vmatpush1.bf16.msra.mxu0 %v8230_v58  ;;  %5174 = vmatpush1.bf16.msra.mxu1 %v8233_v17 }
 0x747   : > { %4757 = vmatprep.subr.bf16.mxu0 %v8238_v32  ;;  %5175 = vmatprep.subr.bf16.mxu1 %v8241_v33  ;;  %v8279_v32 = vld [vmem:[#allocation25 + $0x48] sm:$0xff] (%p249_p0)  }
 0x74a   : > { %4758 = vmatpush1.bf16.msra.mxu0 %v8236_v13  ;;  %5176 = vmatpush1.bf16.msra.mxu1 %v8239_v19 }
 0x74b   : > { %4759 = vmatprep.subr.bf16.mxu0 %v8244_v34  ;;  %5177 = vmatprep.subr.bf16.mxu1 %v8247_v21 }
 0x74e   : > { %4760 = vmatpush1.bf16.msra.mxu0 %v8242_v14  ;;  %5178 = vmatpush1.bf16.msra.mxu1 %v8245_v35  ;;  %v8280_v14 = vld [vmem:[#allocation25 + $0xc0] sm:$0xff] (%p249_p0)  }
 0x74f   : > { %4761 = vmatprep.subr.bf16.mxu0 %v8250_v36  ;;  %5179 = vmatprep.subr.bf16.mxu1 %v8253_v20 }
 0x752   : > { %4762 = vmatpush1.bf16.msra.mxu0 %v8248_v37  ;;  %5180 = vmatpush1.bf16.msra.mxu1 %v8251_v39  ;;  %v8281_v39 = vld [vmem:[#allocation25 + $0x50] sm:$0xff] (%p249_p0)  }
 0x753   : > { %4763 = vmatprep.subr.bf16.mxu0 %v8256_v40  ;;  %5181 = vmatprep.subr.bf16.mxu1 %v8259_v61 }
 0x756   : > { %4764 = vmatpush1.bf16.msra.mxu0 %v8254_v16  ;;  %5182 = vmatpush1.bf16.msra.mxu1 %v8257_v41 }
 0x757   :  { %5428 = vmatprep.subr.bf16.mxu0 (%p249_p0), %v8735_v1  ;;  %5570 = vmatprep.subr.bf16.mxu1 (%p249_p0), %v8735_v1 }
 0x759   : > { %4774 = vmatmul.mubr.bf16.vlgmr.msra.gmra.mrb[32].mxu0 %v4359_v42  ;;  %5192 = vmatmul.mubr.bf16.vlgmr.msra.gmra.mrb[32].mxu1 %v4359_v42  ;;  %v8282_v42 = vld [vmem:[#allocation25 + $0xc8] sm:$0xff] (%p249_p0)  }
 0x75a   :  { %5429 = vmatpush1.bf16.msra.mxu0 (%p249_p0), %v8260_v49  ;;  %5571 = vmatpush1.bf16.msra.mxu1 (%p249_p0), %v8261_v38  ;;  %v8286_v38 = vld [vmem:[#allocation25 + $0xd8] sm:$0xff] (%p249_p0)  }
 0x75b   :  { %5430 = vmatprep.subr.bf16.mxu0 (%p249_p0), %v8735_v1  ;;  %5572 = vmatprep.subr.bf16.mxu1 (%p249_p0), %v8735_v1 }
 0x75e   :  { %5431 = vmatpush1.bf16.msra.mxu0 (%p249_p0), %v8262_v54  ;;  %5573 = vmatpush1.bf16.msra.mxu1 (%p249_p0), %v8263_v47  ;;  %v8287_v47 = vld [vmem:[#allocation25 + $0x68] sm:$0xff] (%p249_p0)  }
 0x75f   :  { %5432 = vmatprep.subr.bf16.mxu0 (%p249_p0), %v8735_v1  ;;  %5574 = vmatprep.subr.bf16.mxu1 (%p249_p0), %v8735_v1 }
 0x762   :  { %5433 = vmatpush1.bf16.msra.mxu0 (%p249_p0), %v8264_v9  ;;  %5575 = vmatpush1.bf16.msra.mxu1 (%p249_p0), %v8265_v55 }
 0x763   :  { %5434 = vmatprep.subr.bf16.mxu0 (%p249_p0), %v8735_v1  ;;  %5576 = vmatprep.subr.bf16.mxu1 (%p249_p0), %v8735_v1 }
 0x766   :  { %5435 = vmatpush1.bf16.msra.mxu0 (%p249_p0), %v8266_v27  ;;  %5577 = vmatpush1.bf16.msra.mxu1 (%p249_p0), %v8267_v56  ;;  %v8288_v56 = vld [vmem:[#allocation25 + $0xe0] sm:$0xff] (%p249_p0)  }
 0x767   :  { %5436 = vmatprep.subr.bf16.mxu0 (%p249_p0), %v8735_v1  ;;  %5578 = vmatprep.subr.bf16.mxu1 (%p249_p0), %v8735_v1 }
 0x76a   :  { %5437 = vmatpush1.bf16.msra.mxu0 (%p249_p0), %v8268_v57  ;;  %5579 = vmatpush1.bf16.msra.mxu1 (%p249_p0), %v8269_v60  ;;  %v8289_v57 = vld [vmem:[#allocation25 + $0x150] sm:$0xff] (%p249_p0)   ;;  %v8290_v60 = vld [vmem:[#allocation25 + $0xe8] sm:$0xff] (%p249_p0)  }
 0x76b   :  { %5438 = vmatprep.subr.bf16.mxu0 (%p249_p0), %v8735_v1  ;;  %5580 = vmatprep.subr.bf16.mxu1 (%p249_p0), %v8735_v1 }
 0x76e   :  { %5439 = vmatpush1.bf16.msra.mxu0 (%p249_p0), %v8270_v62  ;;  %5581 = vmatpush1.bf16.msra.mxu1 (%p249_p0), %v8271_v3  ;;  %v8291_v3 = vld [vmem:[#allocation25 + $0x158] sm:$0xff] (%p249_p0)  }
 0x76f   :  { %5440 = vmatprep.subr.bf16.mxu0 (%p249_p0), %v8735_v1  ;;  %5582 = vmatprep.subr.bf16.mxu1 (%p249_p0), %v8735_v1 }
 0x772   :  { %5441 = vmatpush1.bf16.msra.mxu0 (%p249_p0), %v8272_v11  ;;  %5583 = vmatpush1.bf16.msra.mxu1 (%p249_p0), %v8273_v12 }
 0x773   :  { %5442 = vmatprep.subr.bf16.mxu0 (%p249_p0), %v8735_v1  ;;  %5584 = vmatprep.subr.bf16.mxu1 (%p249_p0), %v8735_v1 }
 0x776   :  { %5443 = vmatpush1.bf16.msra.mxu0 (%p249_p0), %v8274_v15  ;;  %5585 = vmatpush1.bf16.msra.mxu1 (%p249_p0), %v8275_v6 }
 0x777   :  { %5444 = vmatprep.subr.bf16.mxu0 (%p249_p0), %v8735_v1  ;;  %5586 = vmatprep.subr.bf16.mxu1 (%p249_p0), %v8735_v1 }
 0x77a   :  { %5445 = vmatpush1.bf16.msra.mxu0 (%p249_p0), %v8276_v23  ;;  %5587 = vmatpush1.bf16.msra.mxu1 (%p249_p0), %v8277_v24 }
 0x77b   :  { %5446 = vmatprep.subr.bf16.mxu0 (%p249_p0), %v8735_v1  ;;  %5588 = vmatprep.subr.bf16.mxu1 (%p249_p0), %v8735_v1 }
 0x77e   :  { %5447 = vmatpush1.bf16.msra.mxu0 (%p249_p0), %v8278_v30  ;;  %5589 = vmatpush1.bf16.msra.mxu1 (%p249_p0), %v8279_v32  ;;  %v8294_v30 = vld [vmem:[#allocation25 + $0xf8] sm:$0xff] (%p249_p0)  }
 0x77f   :  { %5448 = vmatprep.subr.bf16.mxu0 (%p249_p0), %v8735_v1  ;;  %5590 = vmatprep.subr.bf16.mxu1 (%p249_p0), %v8735_v1 }
 0x782   :  { %5449 = vmatpush1.bf16.msra.mxu0 (%p249_p0), %v8280_v14  ;;  %5591 = vmatpush1.bf16.msra.mxu1 (%p249_p0), %v8281_v39  ;;  %v8299_v14 = vld [vmem:[#allocation25 + $0x178] sm:$0xff] (%p249_p0)   ;;  %v8304_v39 = vld [vmem:[#allocation25 + $0x120] sm:$0xff] (%p249_p0)  }
 0x783   :  { %5450 = vmatprep.subr.bf16.mxu0 (%p249_p0), %v8735_v1  ;;  %5592 = vmatprep.subr.bf16.mxu1 (%p249_p0), %v8735_v1 }
 0x786   :  { %5451 = vmatpush1.bf16.msra.mxu0 (%p249_p0), %v8282_v42 }
 0x787   :  { %5452 = vmatprep.subr.bf16.mxu0 (%p249_p0), %v8735_v1 }
 0x82a   :  { %251 = sbr.rel (!%p249_p0) target bundleno = 258 (0x102), region = 168 }
 0x82c   : > { %v4775_v43 = vpop.f32.mrb[32].mxu0  ;;  %v5193_v44 = vpop.f32.mrb[32].mxu1 }
 0x82d   : > { %v5200_v45 = vmax.f32 %v4775_v43, %v5193_v44  ;;  %v4777_v46 = vpop.f32.mrb[33].mxu0  ;;  %v5195_v48 = vpop.f32.mrb[33].mxu1 }
 0x82e   : > { %v5201_v50 = vmax.f32 %v4777_v46, %v5195_v48  ;;  %v4779_v51 = vpop.f32.mrb[34].mxu0  ;;  %v5197_v52 = vpop.f32.mrb[34].mxu1 }
 0x82f   : > { %5205 = vst [vmem:[%s5204_s25] sm:$0x7f] %v5200_v45  ;;  %v4780_v53 = vpop.f32.mrb[35].mxu0  ;;  %v5198_v59 = vpop.f32.mrb[35].mxu1  ;;  %v8283_v45 = vld [vmem:[#allocation25 + $0x58] sm:$0xff] (%p249_p0)  }
 0x830   : > { %5207 = vst.msk [vmem:[%s5204_s25 + $0x8] sm:$0x7f] %vm5206_vm8, %v5201_v50  ;;  %v8284_v50 = vld [vmem:[#allocation25 + $0xd0] sm:$0xff] (%p249_p0)   ;;  %5593 = vmatpush1.bf16.msra.mxu1 (%p249_p0), %v8283_v45  ;;  %v8285_v53 = vld [vmem:[#allocation25 + $0x60] sm:$0xff] (%p249_p0)  }
 0x831   :  { %5594 = vmatprep.subr.bf16.mxu1 %v8735_v1  ;;  %5453 = vmatpush1.bf16.msra.mxu0 %v8284_v50  ;;  %v8308_v50 = vld [vmem:[#allocation25 + $0x130] sm:$0xff]  }
 0x832   :  { %5454 = vmatprep.subr.bf16.mxu0 %v8735_v1 }
 0x834   :  { %5595 = vmatpush1.bf16.msra.mxu1 %v8285_v53 }
 0x835   :  { %5596 = vmatprep.subr.bf16.mxu1 %v8735_v1  ;;  %5455 = vmatpush1.bf16.msra.mxu0 %v8286_v38 }
 0x836   :  { %5771 = vmatprep.subr.bf16.mxu0 %v8735_v1 }
 0x837   :  { %v5266_v7 = vld [vmem:[#allocation4 + $0x1] ss:$8 sm:$0x3]  ;;  %v5268_v10 = vld [vmem:[#allocation4 + $0x11] ss:$8 sm:$0x3] }
 0x838   :  { %v5278_v8 = vrot.slane %v5266_v7, %v9138_v4  ;;  %v5286_v2 = vrot.slane %v5268_v10, %v9138_v4  ;;  %v5208_v18 = vld [vmem:[#allocation4] ss:$8 sm:$0x3]  ;;  %v5210_v22 = vld [vmem:[#allocation4 + $0x10] ss:$8 sm:$0x3]  ;;  %v5282_v31 = vrot.slane %v5268_v10, %v9134_v0  ;;  %v5274_v35 = vrot.slane %v5266_v7, %v9134_v0  ;;  %5597 = vmatpush1.bf16.msra.mxu1 %v8287_v47 }
 0x839   :  { %v5220_v63 = vrot.slane %v5208_v18, %v9138_v4  ;;  %v5228_v5 = vrot.slane %v5210_v22, %v9138_v4  ;;  %v5224_v33 = vrot.slane %v5210_v22, %v9134_v0  ;;  %v5216_v37 = vrot.slane %v5208_v18, %v9134_v0  ;;  %5973 = vmatprep.subr.bf16.mxu1 %v8735_v1  ;;  %v9300_v62 = vld [vmem:[#allocation4 + $0x2] ss:$8 sm:$0x3]  ;;  %v9302_v11 = vld [vmem:[#allocation4 + $0x12] ss:$8 sm:$0x3] }
 0x83a   :  { %v5292_v25 = vpack.c.bf16 %v5278_v8, %v5278_v8  ;;  %v5294_v26 = vpack.c.bf16 %v5286_v2, %v5286_v2  ;;  %v5293_v36 = vpack.c.bf16 %v5282_v31, %v5282_v31  ;;  %v5291_v43 = vpack.c.bf16 %v5274_v35, %v5274_v35  ;;  %v9309_v6 = vld [vmem:[#allocation4 + $0x3] ss:$8 sm:$0x3]  ;;  %v9311_v7 = vld [vmem:[#allocation4 + $0x13] ss:$8 sm:$0x3] }
 0x83b   :  { %v5234_v28 = vpack.c.bf16 %v5220_v63, %v5220_v63  ;;  %v5236_v29 = vpack.c.bf16 %v5228_v5, %v5228_v5  ;;  %v5235_v61 = vpack.c.bf16 %v5224_v33, %v5224_v33  ;;  %v5233_v46 = vpack.c.bf16 %v5216_v37, %v5216_v37  ;;  %v8292_v22 = vld [vmem:[#allocation25 + $0xf0] sm:$0xff]   ;;  %v8293_v63 = vld [vmem:[#allocation25 + $0x160] sm:$0xff]   ;;  %v8295_v31 = vld [vmem:[#allocation25 + $0x168] sm:$0xff]  }
 0x83c   :  { %v5329_v58 = vunpack.c.l.b16 %v5292_v25  ;;  %v5331_v17 = vunpack.c.l.b16 %v5294_v26  ;;  %v5330_v44 = vunpack.c.l.b16 %v5293_v36  ;;  %v5328_v51 = vunpack.c.l.b16 %v5291_v43  ;;  %v8300_v35 = vld [vmem:[#allocation25 + $0x110] sm:$0xff]   ;;  %v8301_v36 = vld [vmem:[#allocation25 + $0x180] sm:$0xff]   ;;  %v8303_v37 = vld [vmem:[#allocation25 + $0x188] sm:$0xff]  }
 0x83d   :  { %v5473_v13 = vunpack.c.l.b16 %v5234_v28  ;;  %v5475_v19 = vunpack.c.l.b16 %v5236_v29  ;;  %v5474_v48 = vunpack.c.l.b16 %v5235_v61  ;;  %v5472_v59 = vunpack.c.l.b16 %v5233_v46  ;;  %v9336_v61 = vld [vmem:[#allocation4 + $0x14] ss:$8 sm:$0x3]  ;;  %v9346_v45 = vld [vmem:[#allocation4 + $0x4] ss:$8 sm:$0x3] }
 0x83e   :  { %v5335_v34 = vrot.slane %v5331_v17, 7  ;;  %v5332_v52 = vrot.slane %v5330_v44, 7  ;;  %v5623_v12 = vrot.slane %v9300_v62, %v9138_v4  ;;  %v5631_v15 = vrot.slane %v9302_v11, %v9138_v4  ;;  %v8307_v43 = vld [vmem:[#allocation25 + $0x198] sm:$0xff]  }
 0x83f   :  { %v5478_v21 = vrot.slane %v5475_v19, 7  ;;  %v5476_v49 = vrot.slane %v5474_v48, 7  ;;  %v5825_v8 = vrot.slane %v9309_v6, %v9138_v4  ;;  %v5833_v18 = vrot.slane %v9311_v7, %v9138_v4  ;;  %v9350_v48 = vld [vmem:[#allocation4 + $0x5] ss:$8 sm:$0x3] }
 0x840   :  { %v5336_v20 = vsel %vm5333_vm5, %v5335_v34, %v5329_v58  ;;  %v5334_v54 = vsel %vm5333_vm5, %v5332_v52, %v5328_v51  ;;  %v5637_v10 = vpack.c.bf16 %v5623_v12, %v5623_v12  ;;  %v5639_v2 = vpack.c.bf16 %v5631_v15, %v5631_v15  ;;  %v8297_v34 = vld [vmem:[#allocation25 + $0x170] sm:$0xff]   ;;  %v8312_v15 = vld [vmem:[#allocation25 + $0x140] sm:$0xff]  }
 0x841   :  { %v5338_v40 = vpack.c.b16 %v5336_v20, %v5336_v20  ;;  %v5479_v16 = vsel %vm5333_vm5, %v5478_v21, %v5473_v13  ;;  %v5477_v9 = vsel %vm5333_vm5, %v5476_v49, %v5472_v59  ;;  %v5337_v55 = vpack.c.b16 %v5334_v54, %v5334_v54  ;;  %v8296_v13 = vld [vmem:[#allocation25 + $0x100] sm:$0xff]   ;;  %v8298_v21 = vld [vmem:[#allocation25 + $0x108] sm:$0xff]   ;;  %v8302_v20 = vld [vmem:[#allocation25 + $0x118] sm:$0xff]  }
 0x842   :  { %v5481_v41 = vpack.c.b16 %v5479_v16, %v5479_v16  ;;  %v5480_v27 = vpack.c.b16 %v5477_v9, %v5477_v9  ;;  %v5839_v23 = vpack.c.bf16 %v5825_v8, %v5825_v8  ;;  %v5674_v5 = vunpack.c.l.b16 %v5637_v10  ;;  %v9338_v16 = vld [vmem:[#allocation4 + $0x15] ss:$8 sm:$0x3]  ;;  %v8309_v59 = vld [vmem:[#allocation25 + $0x1a0] sm:$0xff]  }
 0x843   :  { %7269 = vmatprep.mubr.msk.bf16.mxu0 %vm2292_vm6, %v5338_v40  ;;  %v5676_v24 = vunpack.c.l.b16 %v5639_v2  ;;  %v5841_v25 = vpack.c.bf16 %v5833_v18, %v5833_v18  ;;  %v8305_v40 = vld [vmem:[#allocation25 + $0x190] sm:$0xff]   ;;  %v5627_v42 = vrot.slane %v9302_v11, %v9134_v0  ;;  %v5829_v44 = vrot.slane %v9311_v7, %v9134_v0  ;;  %v8310_v9 = vld [vmem:[#allocation25 + $0x138] sm:$0xff]  }
 0x844   :  { %7284 = vmatprep.mubr.msk.bf16.mxu1 %vm2292_vm6, %v5481_v41  ;;  %5461 = vmatmul.mubr.bf16.vlgmr.msra.gmra.mrb[0].mxu0 %v5337_v55  ;;  %v5876_v28 = vunpack.c.l.b16 %v5839_v23  ;;  %v8306_v41 = vld [vmem:[#allocation25 + $0x128] sm:$0xff]   ;;  %v6035_v46 = vrot.slane %v9336_v61, %v9138_v4  ;;  %v5619_v51 = vrot.slane %v9300_v62, %v9134_v0  ;;  %v6237_v53 = vrot.slane %v9338_v16, %v9138_v4  ;;  %v8313_v2 = vld [vmem:[#allocation25 + $0x1b0] sm:$0xff]  }
 0x845   :  { %5603 = vmatmul.mubr.bf16.vlgmr.msra.gmra.mrb[0].mxu1 %v5480_v27  ;;  %5772 = vmatpush1.bf16.msra.mxu0 %v8288_v56  ;;  %v5679_v26 = vrot.slane %v5676_v24, 7  ;;  %v5878_v29 = vunpack.c.l.b16 %v5841_v25  ;;  %v5638_v52 = vpack.c.bf16 %v5627_v42, %v5627_v42  ;;  %v5821_v49 = vrot.slane %v9309_v6, %v9134_v0  ;;  %v8328_v42 = vld [vmem:[#allocation25 + $0x1f0] sm:$0xff]  }
 0x846   :  { %5974 = vmatpush1.bf16.msra.mxu1 %v8289_v57  ;;  %5773 = vmatprep.subr.bf16.mxu0 %v8735_v1  ;;  %v5840_v38 = vpack.c.bf16 %v5829_v44, %v5829_v44  ;;  %v6027_v54 = vrot.slane %v9346_v45, %v9138_v4  ;;  %v6043_v47 = vpack.c.bf16 %v6035_v46, %v6035_v46  ;;  %v8330_v44 = vld [vmem:[#allocation25 + $0x1f8] sm:$0xff]   ;;  %v8331_v46 = vld [vmem:[#allocation25 + $0x268] sm:$0xff]  }
 0x847   :  { %5975 = vmatprep.subr.bf16.mxu1 %v8735_v1  ;;  %v5680_v58 = vsel %vm5333_vm5, %v5679_v26, %v5674_v5  ;;  %v5881_v17 = vrot.slane %v5878_v29, 7  ;;  %v5636_v55 = vpack.c.bf16 %v5619_v51, %v5619_v51  ;;  %v5675_v27 = vunpack.c.l.b16 %v5638_v52  ;;  %v8314_v5 = vld [vmem:[#allocation25 + $0x148] sm:$0xff]   ;;  %v8333_v51 = vld [vmem:[#allocation25 + $0x270] sm:$0xff]  }
 0x848   :  { %v5682_v32 = vpack.c.b16 %v5680_v58, %v5680_v58  ;;  %v6229_v56 = vrot.slane %v9350_v48, %v9138_v4  ;;  %v6245_v57 = vpack.c.bf16 %v6237_v53, %v6237_v53  ;;  %v5838_v62 = vpack.c.bf16 %v5821_v49, %v5821_v49  ;;  %v8316_v58 = vld [vmem:[#allocation25 + $0x1c0] sm:$0xff]   ;;  %v9394_v52 = vld [vmem:[#allocation4 + $0x16] ss:$8 sm:$0x3]  ;;  %v8334_v53 = vld [vmem:[#allocation25 + $0x208] sm:$0xff]  }
 0x849   :  { %5774 = vmatpush1.bf16.msra.mxu0 %v8290_v60  ;;  %v5882_v33 = vsel %vm5333_vm5, %v5881_v17, %v5876_v28  ;;  %v8311_v60 = vld [vmem:[#allocation25 + $0x1a8] sm:$0xff]   ;;  %v6041_v11 = vpack.c.bf16 %v6027_v54, %v6027_v54  ;;  %v6080_v12 = vunpack.c.l.b16 %v6043_v47  ;;  %v5673_v6 = vunpack.c.l.b16 %v5636_v55  ;;  %v8315_v28 = vld [vmem:[#allocation25 + $0x1b8] sm:$0xff]  }
 0x84a   :  { %5976 = vmatpush1.bf16.msra.mxu1 %v8291_v3  ;;  %5775 = vmatprep.subr.bf16.mxu0 %v8735_v1  ;;  %v5884_v19 = vpack.c.b16 %v5882_v33, %v5882_v33  ;;  %v5877_v3 = vunpack.c.l.b16 %v5840_v38  ;;  %v5677_v7 = vrot.slane %v5675_v27, 7  ;;  %v6243_v10 = vpack.c.bf16 %v6229_v56, %v6229_v56  ;;  %v8317_v33 = vld [vmem:[#allocation25 + $0x230] sm:$0xff]   ;;  %v8335_v49 = vld [vmem:[#allocation25 + $0x278] sm:$0xff]   ;;  %v9404_v47 = vld [vmem:[#allocation4 + $0x6] ss:$8 sm:$0x3] }
 0x84b   :  { %5977 = vmatprep.subr.bf16.mxu1 %v8735_v1  ;;  %7299 = vmatprep.mubr.msk.bf16.mxu0 %vm2292_vm6, %v5682_v32  ;;  %v6282_v8 = vunpack.c.l.b16 %v6245_v57  ;;  %v5875_v18 = vunpack.c.l.b16 %v5838_v62  ;;  %v6078_v23 = vunpack.c.l.b16 %v6041_v11  ;;  %v6233_v38 = vrot.slane %v9338_v16, %v9134_v0  ;;  %v8337_v27 = vld [vmem:[#allocation25 + $0x280] sm:$0xff]   ;;  %v8338_v62 = vld [vmem:[#allocation25 + $0x218] sm:$0xff]  }
 0x84c   :  { %7314 = vmatprep.mubr.msk.bf16.mxu1 %vm2292_vm6, %v5884_v19  ;;  %v5678_v24 = vsel %vm5333_vm5, %v5677_v7, %v5673_v6  ;;  %v6280_v25 = vunpack.c.l.b16 %v6243_v10  ;;  %v6439_v54 = vrot.slane %v9394_v52, %v9138_v4  ;;  %v6023_v55 = vrot.slane %v9346_v45, %v9134_v0  ;;  %v8339_v45 = vld [vmem:[#allocation25 + $0x288] sm:$0xff]   ;;  %v8340_v7 = vld [vmem:[#allocation25 + $0x220] sm:$0xff]  }
 0x84d   :  { %5776 = vmatpush1.bf16.msra.mxu0 %v8292_v22  ;;  %v5879_v22 = vrot.slane %v5877_v3, 7  ;;  %v6285_v26 = vrot.slane %v6282_v8, 7  ;;  %v6225_v16 = vrot.slane %v9350_v48, %v9134_v0  ;;  %v6244_v56 = vpack.c.bf16 %v6233_v38, %v6233_v38 }
 0x84e   :  { %5978 = vmatpush1.bf16.msra.mxu1 %v8293_v63  ;;  %5777 = vmatprep.subr.bf16.mxu0 %v8735_v1  ;;  %v6083_v63 = vrot.slane %v6080_v12, 7  ;;  %v6431_v57 = vrot.slane %v9404_v47, %v9138_v4  ;;  %v6040_v3 = vpack.c.bf16 %v6023_v55, %v6023_v55  ;;  %v8341_v4 = vld [vmem:[#allocation25 + $0x290] sm:$0xff]  }
 0x84f   :  { %5979 = vmatprep.subr.bf16.mxu1 %v8735_v1  ;;  %v5880_v29 = vsel %vm5333_vm5, %v5879_v22, %v5875_v18  ;;  %v6286_v32 = vsel %vm5333_vm5, %v6285_v26, %v6280_v25  ;;  %v6242_v12 = vpack.c.bf16 %v6225_v16, %v6225_v16 }
 0x850   :  { %v5883_v17 = vpack.c.b16 %v5880_v29, %v5880_v29  ;;  %v6288_v19 = vpack.c.b16 %v6286_v32, %v6286_v32  ;;  %v6445_v48 = vpack.c.bf16 %v6431_v57, %v6431_v57  ;;  %v6077_v10 = vunpack.c.l.b16 %v6040_v3  ;;  %v8344_v29 = vld [vmem:[#allocation25 + $0x2a0] sm:$0xff]   ;;  %v8347_v32 = vld [vmem:[#allocation25 + $0x2b8] sm:$0xff]  }
 0x851   :  { %5778 = vmatpush1.bf16.msra.mxu0 %v8294_v30  ;;  %v5681_v30 = vpack.c.b16 %v5678_v24, %v5678_v24  ;;  %v8343_v24 = vld [vmem:[#allocation25 + $0x298] sm:$0xff]  }
 0x852   :  { %5980 = vmatpush1.bf16.msra.mxu1 %v8295_v31  ;;  %5779 = vmatprep.subr.bf16.mxu0 %v8735_v1  ;;  %v6084_v31 = vsel %vm5333_vm5, %v6083_v63, %v6078_v23  ;;  %v6482_v22 = vunpack.c.l.b16 %v6445_v48  ;;  %v8342_v63 = vld [vmem:[#allocation25 + $0x228] sm:$0xff]  }
 0x853   :  { %5981 = vmatprep.subr.bf16.mxu1 %v8735_v1 }
 0x855   :  { %5780 = vmatpush1.bf16.msra.mxu0 %v8296_v13  ;;  %v6086_v13 = vpack.c.b16 %v6084_v31, %v6084_v31 }
 0x856   :  { %5982 = vmatpush1.bf16.msra.mxu1 %v8297_v34  ;;  %5781 = vmatprep.subr.bf16.mxu0 %v8735_v1  ;;  %v8318_v34 = vld [vmem:[#allocation25 + $0x1c8] sm:$0xff]  }
 0x857   :  { %5983 = vmatprep.subr.bf16.mxu1 %v8735_v1 }
 0x859   :  { %5782 = vmatpush1.bf16.msra.mxu0 %v8298_v21  ;;  %v8319_v21 = vld [vmem:[#allocation25 + $0x238] sm:$0xff]  }
 0x85a   :  { %5984 = vmatpush1.bf16.msra.mxu1 %v8299_v14  ;;  %5783 = vmatprep.subr.bf16.mxu0 %v8735_v1  ;;  %v8320_v14 = vld [vmem:[#allocation25 + $0x1d0] sm:$0xff]  }
 0x85b   :  { %5985 = vmatprep.subr.bf16.mxu1 %v8735_v1 }
 0x85d   :  { %5784 = vmatpush1.bf16.msra.mxu0 %v8300_v35  ;;  %v8321_v35 = vld [vmem:[#allocation25 + $0x240] sm:$0xff]  }
 0x85e   :  { %5986 = vmatpush1.bf16.msra.mxu1 %v8301_v36  ;;  %5785 = vmatprep.subr.bf16.mxu0 %v8735_v1  ;;  %v8322_v36 = vld [vmem:[#allocation25 + $0x1d8] sm:$0xff]  }
 0x85f   :  { %5987 = vmatprep.subr.bf16.mxu1 %v8735_v1 }
 0x861   :  { %5786 = vmatpush1.bf16.msra.mxu0 %v8302_v20  ;;  %v8323_v20 = vld [vmem:[#allocation25 + $0x248] sm:$0xff]  }
 0x862   :  { %5988 = vmatpush1.bf16.msra.mxu1 %v8303_v37  ;;  %5787 = vmatprep.subr.bf16.mxu0 %v8735_v1  ;;  %v8324_v37 = vld [vmem:[#allocation25 + $0x1e0] sm:$0xff]  }
 0x863   :  { %5989 = vmatprep.subr.bf16.mxu1 %v8735_v1 }
 0x865   :  { %5788 = vmatpush1.bf16.msra.mxu0 %v8304_v39  ;;  %v8325_v39 = vld [vmem:[#allocation25 + $0x250] sm:$0xff]  }
 0x866   :  { %5990 = vmatpush1.bf16.msra.mxu1 %v8305_v40  ;;  %5789 = vmatprep.subr.bf16.mxu0 %v8735_v1  ;;  %v8326_v40 = vld [vmem:[#allocation25 + $0x1e8] sm:$0xff]  }
 0x867   :  { %5991 = vmatprep.subr.bf16.mxu1 %v8735_v1 }
 0x869   :  { %5790 = vmatpush1.bf16.msra.mxu0 %v8306_v41  ;;  %v8327_v41 = vld [vmem:[#allocation25 + $0x258] sm:$0xff]  }
 0x86a   :  { %5992 = vmatpush1.bf16.msra.mxu1 %v8307_v43  ;;  %5791 = vmatprep.subr.bf16.mxu0 %v8735_v1  ;;  %v8329_v43 = vld [vmem:[#allocation25 + $0x260] sm:$0xff]  }
 0x86b   :  { %5993 = vmatprep.subr.bf16.mxu1 %v8735_v1 }
 0x86d   :  { %5792 = vmatpush1.bf16.msra.mxu0 %v8308_v50  ;;  %v8332_v50 = vld [vmem:[#allocation25 + $0x200] sm:$0xff]  }
 0x86e   :  { %5994 = vmatpush1.bf16.msra.mxu1 %v8309_v59  ;;  %5793 = vmatprep.subr.bf16.mxu0 %v8735_v1  ;;  %v6031_v59 = vrot.slane %v9336_v61, %v9134_v0 }
 0x86f   :  { %5995 = vmatprep.subr.bf16.mxu1 %v8735_v1 }
 0x870   :  { %v6042_v61 = vpack.c.bf16 %v6031_v59, %v6031_v59 }
 0x871   :  { %5794 = vmatpush1.bf16.msra.mxu0 %v8310_v9  ;;  %v8336_v9 = vld [vmem:[#allocation25 + $0x210] sm:$0xff]  }
 0x872   :  { %5996 = vmatpush1.bf16.msra.mxu1 %v8311_v60  ;;  %5795 = vmatprep.subr.bf16.mxu0 %v8735_v1  ;;  %v6447_v60 = vpack.c.bf16 %v6439_v54, %v6439_v54  ;;  %v6079_v11 = vunpack.c.l.b16 %v6042_v61 }
 0x873   :  { %5997 = vmatprep.subr.bf16.mxu1 %v8735_v1 }
 0x874   :  { %v6484_v6 = vunpack.c.l.b16 %v6447_v60  ;;  %v6081_v8 = vrot.slane %v6079_v11, 7 }
 0x875   :  { %5796 = vmatpush1.bf16.msra.mxu0 %v8312_v15  ;;  %v6281_v15 = vunpack.c.l.b16 %v6244_v56 }
 0x876   :  { %5998 = vmatpush1.bf16.msra.mxu1 %v8313_v2  ;;  %5797 = vmatprep.subr.bf16.mxu0 %v8735_v1  ;;  %v6279_v2 = vunpack.c.l.b16 %v6242_v12  ;;  %v6487_v23 = vrot.slane %v6484_v6, 7 }
 0x877   :  { %5999 = vmatprep.subr.bf16.mxu1 %v8735_v1  ;;  %v6283_v18 = vrot.slane %v6281_v15, 7 }
 0x878   :  { %v6488_v26 = vsel %vm5333_vm5, %v6487_v23, %v6482_v22 }
 0x879   :  { %5798 = vmatpush1.bf16.msra.mxu0 %v8314_v5  ;;  %v6082_v5 = vsel %vm5333_vm5, %v6081_v8, %v6077_v10  ;;  %v6284_v25 = vsel %vm5333_vm5, %v6283_v18, %v6279_v2  ;;  %v6490_v31 = vpack.c.b16 %v6488_v26, %v6488_v26  ;;  %v7360_v18 = vld [vmem:[#allocation26] ss:$0 sm:$0xff] }
 0x87a   :  { %6000 = vmatpush1.bf16.msra.mxu1 %v8315_v28  ;;  %6175 = vmatprep.subr.bf16.mxu0 %v8735_v1  ;;  %v6085_v28 = vpack.c.b16 %v6082_v5, %v6082_v5 }
 0x87b   :  { %6377 = vmatprep.subr.bf16.mxu1 %v8735_v1 }
 0x87c   :  { %5804 = vmatmul.mubr.bf16.vlgmr.msra.gmra.mrb[4].mxu0 %v5681_v30  ;;  %v6287_v30 = vpack.c.b16 %v6284_v25, %v6284_v25 }
 0x87d   :  { %6176 = vmatpush1.bf16.msra.mxu0 %v8316_v58  ;;  %6006 = vmatmul.mubr.bf16.vlgmr.msra.gmra.mrb[4].mxu1 %v5883_v17  ;;  %v8345_v58 = vld [vmem:[#allocation25 + $0x2a8] sm:$0xff]   ;;  %v8346_v17 = vld [vmem:[#allocation25 + $0x2b0] sm:$0xff]  }
 0x87e   :  { %6378 = vmatpush1.bf16.msra.mxu1 %v8317_v33  ;;  %6177 = vmatprep.subr.bf16.mxu0 %v8735_v1  ;;  %v8348_v33 = vld [vmem:[#allocation25 + $0x2c0] sm:$0xff]  }
 0x87f   :  { %6379 = vmatprep.subr.bf16.mxu1 %v8735_v1  ;;  %7329 = vmatprep.mubr.msk.bf16.mxu0 %vm2292_vm6, %v6086_v13  ;;  %v8349_v13 = vld [vmem:[#allocation25 + $0x2c8] sm:$0xff]  }
 0x880   :  { %7344 = vmatprep.mubr.msk.bf16.mxu1 %vm2292_vm6, %v6288_v19  ;;  %v8350_v19 = vld [vmem:[#allocation25 + $0x2d0] sm:$0xff]  }
 0x881   :  { %6178 = vmatpush1.bf16.msra.mxu0 %v8318_v34  ;;  %v8351_v34 = vld [vmem:[#allocation25 + $0x2d8] sm:$0xff]  }
 0x882   :  { %6380 = vmatpush1.bf16.msra.mxu1 %v8319_v21  ;;  %6179 = vmatprep.subr.bf16.mxu0 %v8735_v1  ;;  %v8352_v21 = vld [vmem:[#allocation25 + $0x2e0] sm:$0xff]  }
 0x883   :  { %6381 = vmatprep.subr.bf16.mxu1 %v8735_v1 }
 0x885   :  { %6180 = vmatpush1.bf16.msra.mxu0 %v8320_v14  ;;  %v8353_v14 = vld [vmem:[#allocation25 + $0x2e8] sm:$0xff]  }
 0x886   :  { %6382 = vmatpush1.bf16.msra.mxu1 %v8321_v35  ;;  %6181 = vmatprep.subr.bf16.mxu0 %v8735_v1  ;;  %v6435_v35 = vrot.slane %v9394_v52, %v9134_v0 }
 0x887   :  { %6383 = vmatprep.subr.bf16.mxu1 %v8735_v1 }
 0x889   :  { %6182 = vmatpush1.bf16.msra.mxu0 %v8322_v36  ;;  %v8354_v36 = vld [vmem:[#allocation25 + $0x2f0] sm:$0xff]  }
 0x88a   :  { %6384 = vmatpush1.bf16.msra.mxu1 %v8323_v20  ;;  %6183 = vmatprep.subr.bf16.mxu0 %v8735_v1  ;;  %v6427_v20 = vrot.slane %v9404_v47, %v9134_v0 }
 0x88b   :  { %6385 = vmatprep.subr.bf16.mxu1 %v8735_v1 }
 0x88d   :  { %6184 = vmatpush1.bf16.msra.mxu0 %v8324_v37  ;;  %v6446_v37 = vpack.c.bf16 %v6435_v35, %v6435_v35 }
 0x88e   :  { %6386 = vmatpush1.bf16.msra.mxu1 %v8325_v39  ;;  %6185 = vmatprep.subr.bf16.mxu0 %v8735_v1  ;;  %v8355_v39 = vld [vmem:[#allocation25 + $0x2f8] sm:$0xff]  }
 0x88f   :  { %6387 = vmatprep.subr.bf16.mxu1 %v8735_v1 }
 0x891   :  { %6186 = vmatpush1.bf16.msra.mxu0 %v8326_v40  ;;  %v6444_v40 = vpack.c.bf16 %v6427_v20, %v6427_v20 }
 0x892   :  { %6388 = vmatpush1.bf16.msra.mxu1 %v8327_v41  ;;  %6187 = vmatprep.subr.bf16.mxu0 %v8735_v1  ;;  %v6483_v41 = vunpack.c.l.b16 %v6446_v37 }
 0x893   :  { %6389 = vmatprep.subr.bf16.mxu1 %v8735_v1 }
 0x895   :  { %6188 = vmatpush1.bf16.msra.mxu0 %v8328_v42  ;;  %v8356_v42 = vld [vmem:[#allocation25 + $0x300] sm:$0xff]  }
 0x896   :  { %6390 = vmatpush1.bf16.msra.mxu1 %v8329_v43  ;;  %6189 = vmatprep.subr.bf16.mxu0 %v8735_v1  ;;  %v6481_v43 = vunpack.c.l.b16 %v6444_v40 }
 0x897   :  { %6391 = vmatprep.subr.bf16.mxu1 %v8735_v1 }
 0x899   :  { %6190 = vmatpush1.bf16.msra.mxu0 %v8330_v44  ;;  %v6485_v44 = vrot.slane %v6483_v41, 7 }
 0x89a   :  { %6392 = vmatpush1.bf16.msra.mxu1 %v8331_v46  ;;  %6191 = vmatprep.subr.bf16.mxu0 %v8735_v1  ;;  %v8357_v46 = vld [vmem:[#allocation25 + $0x308] sm:$0xff]  }
 0x89b   :  { %6393 = vmatprep.subr.bf16.mxu1 %v8735_v1 }
 0x89d   :  { %6192 = vmatpush1.bf16.msra.mxu0 %v8332_v50  ;;  %v6486_v50 = vsel %vm5333_vm5, %v6485_v44, %v6481_v43 }
 0x89e   :  { %6394 = vmatpush1.bf16.msra.mxu1 %v8333_v51  ;;  %6193 = vmatprep.subr.bf16.mxu0 %v8735_v1  ;;  %v6489_v0 = vpack.c.b16 %v6486_v50, %v6486_v50 }
 0x89f   :  { %6395 = vmatprep.subr.bf16.mxu1 %v8735_v1 }
 0x8a1   :  { %6194 = vmatpush1.bf16.msra.mxu0 %v8334_v53 }
 0x8a2   :  { %6396 = vmatpush1.bf16.msra.mxu1 %v8335_v49  ;;  %6195 = vmatprep.subr.bf16.mxu0 %v8735_v1 }
 0x8a3   :  { %6397 = vmatprep.subr.bf16.mxu1 %v8735_v1 }
 0x8a5   :  { %6196 = vmatpush1.bf16.msra.mxu0 %v8336_v9 }
 0x8a6   :  { %6398 = vmatpush1.bf16.msra.mxu1 %v8337_v27  ;;  %6197 = vmatprep.subr.bf16.mxu0 %v8735_v1 }
 0x8a7   :  { %6399 = vmatprep.subr.bf16.mxu1 %v8735_v1 }
 0x8a9   :  { %6198 = vmatpush1.bf16.msra.mxu0 %v8338_v62 }
 0x8aa   :  { %6400 = vmatpush1.bf16.msra.mxu1 %v8339_v45  ;;  %6199 = vmatprep.subr.bf16.mxu0 %v8735_v1 }
 0x8ab   :  { %6401 = vmatprep.subr.bf16.mxu1 %v8735_v1 }
 0x8ad   :  { %6200 = vmatpush1.bf16.msra.mxu0 %v8340_v7 }
 0x8ae   :  { %6402 = vmatpush1.bf16.msra.mxu1 %v8341_v4  ;;  %6201 = vmatprep.subr.bf16.mxu0 %v8735_v1 }
 0x8af   :  { %6403 = vmatprep.subr.bf16.mxu1 %v8735_v1 }
 0x8b1   :  { %6202 = vmatpush1.bf16.msra.mxu0 %v8342_v63 }
 0x8b2   :  { %6404 = vmatpush1.bf16.msra.mxu1 %v8343_v24  ;;  %6579 = vmatprep.subr.bf16.mxu0 %v8735_v1 }
 0x8b4   :  { %6208 = vmatmul.mubr.bf16.vlgmr.msra.gmra.mrb[8].mxu0 %v6085_v28 }
 0x8b5   :  { %6580 = vmatpush1.bf16.msra.mxu0 %v8344_v29  ;;  %6410 = vmatmul.mubr.bf16.vlgmr.msra.gmra.mrb[8].mxu1 %v6287_v30 }
 0x8b6   :  { %6581 = vmatprep.subr.bf16.mxu0 %v8735_v1  ;;  %7359 = vmatprep.mubr.msk.bf16.mxu0 %vm2292_vm6, %v6490_v31 }
 0x8b9   :  { %6582 = vmatpush1.bf16.msra.mxu0 %v8345_v58 }
 0x8ba   :  { %6583 = vmatprep.subr.bf16.mxu0 %v8735_v1 }
 0x8bd   :  { %6584 = vmatpush1.bf16.msra.mxu0 %v8346_v17 }
 0x8be   :  { %6585 = vmatprep.subr.bf16.mxu0 %v8735_v1 }
 0x8c1   :  { %6586 = vmatpush1.bf16.msra.mxu0 %v8347_v32 }
 0x8c2   :  { %6587 = vmatprep.subr.bf16.mxu0 %v8735_v1 }
 0x8c5   :  { %6588 = vmatpush1.bf16.msra.mxu0 %v8348_v33 }
 0x8c6   :  { %6589 = vmatprep.subr.bf16.mxu0 %v8735_v1 }
 0x8c9   :  { %6590 = vmatpush1.bf16.msra.mxu0 %v8349_v13 }
 0x8ca   :  { %6591 = vmatprep.subr.bf16.mxu0 %v8735_v1 }
 0x8cd   :  { %6592 = vmatpush1.bf16.msra.mxu0 %v8350_v19 }
 0x8ce   :  { %6593 = vmatprep.subr.bf16.mxu0 %v8735_v1 }
 0x8d1   :  { %6594 = vmatpush1.bf16.msra.mxu0 %v8351_v34 }
 0x8d2   :  { %6595 = vmatprep.subr.bf16.mxu0 %v8735_v1 }
 0x8d5   :  { %6596 = vmatpush1.bf16.msra.mxu0 %v8352_v21 }
 0x8d6   :  { %6597 = vmatprep.subr.bf16.mxu0 %v8735_v1 }
 0x8d9   :  { %6598 = vmatpush1.bf16.msra.mxu0 %v8353_v14 }
 0x8da   :  { %6599 = vmatprep.subr.bf16.mxu0 %v8735_v1 }
 0x8dd   :  { %6600 = vmatpush1.bf16.msra.mxu0 %v8354_v36 }
 0x8de   :  { %6601 = vmatprep.subr.bf16.mxu0 %v8735_v1 }
 0x8e1   :  { %6602 = vmatpush1.bf16.msra.mxu0 %v8355_v39 }
 0x8e2   :  { %6603 = vmatprep.subr.bf16.mxu0 %v8735_v1 }
 0x8e5   :  { %6604 = vmatpush1.bf16.msra.mxu0 %v8356_v42 }
 0x8e6   :  { %6605 = vmatprep.subr.bf16.mxu0 %v8735_v1 }
 0x8e9   :  { %6606 = vmatpush1.bf16.msra.mxu0 %v8357_v46 }
 0x8ec   :  { %6612 = vmatmul.mubr.bf16.vlgmr.msra.gmra.mrb[12].mxu0 %v6489_v0 }
 0x917   :  { %v5462_v51 = vpop.f32.mrb[0].mxu0 }
 0x918   :  { %v5464_v52 = vpop.f32.mrb[1].mxu0  ;;  %v5604_v53 = vpop.f32.mrb[0].mxu1 }
 0x919   :  { %v5605_v59 = vadd.f32 %v5604_v53, %v5462_v51  ;;  %v5465_v49 = vpop.f32.mrb[2].mxu0  ;;  %v5606_v38 = vpop.f32.mrb[1].mxu1 }
 0x91a   :  { %v5466_v54 = vpop.f32.mrb[3].mxu0  ;;  %v5607_v47 = vpop.f32.mrb[2].mxu1 }
 0x91b   :  { %v5608_v9 = vpop.f32.mrb[3].mxu1 }
 0x94f   :  { %v5805_v55 = vpop.f32.mrb[4].mxu0 }
 0x950   :  { %v5811_v61 = vadd.f32 %v5805_v55, %v5605_v59  ;;  %v5807_v27 = vpop.f32.mrb[5].mxu0  ;;  %v6007_v16 = vpop.f32.mrb[4].mxu1 }
 0x951   :  { %v5808_v56 = vpop.f32.mrb[6].mxu0  ;;  %v6009_v57 = vpop.f32.mrb[5].mxu1 }
 0x952   :  { %v6013_v60 = vadd.f32 %v6007_v16, %v5811_v61  ;;  %v5809_v1 = vpop.f32.mrb[7].mxu0  ;;  %v6010_v62 = vpop.f32.mrb[6].mxu1 }
 0x953   :  { %v6011_v3 = vpop.f32.mrb[7].mxu1 }
 0x987   :  { %v6209_v11 = vpop.f32.mrb[8].mxu0 }
 0x988   :  { %v6215_v45 = vadd.f32 %v6209_v11, %v6013_v60  ;;  %v6211_v12 = vpop.f32.mrb[9].mxu0  ;;  %v6411_v15 = vpop.f32.mrb[8].mxu1 }
 0x989   :  { %v6212_v48 = vpop.f32.mrb[10].mxu0  ;;  %v6413_v6 = vpop.f32.mrb[9].mxu1 }
 0x98a   :  { %v6417_v7 = vadd.f32 %v6411_v15, %v6215_v45  ;;  %v6213_v10 = vpop.f32.mrb[11].mxu0  ;;  %v6414_v8 = vpop.f32.mrb[10].mxu1 }
 0x98b   :  { %v6415_v4 = vpop.f32.mrb[11].mxu1 }
 0x9bf   :  { %v6613_v2 = vpop.f32.mrb[12].mxu0 }
 0x9c0   :  { %v6619_v22 = vadd.f32 %v6613_v2, %v6417_v7  ;;  %v6615_v23 = vpop.f32.mrb[13].mxu0 }
 0x9c1   :  { %v6616_v63 = vpop.f32.mrb[14].mxu0 }
 0x9c2   :  { %v6617_v5 = vpop.f32.mrb[15].mxu0  ;;  %v6627_v24 = vadd.f32 %v7360_v18, %v6619_v22 }
 0x9c4   :  { %6628 = vst [vmem:[#allocation28] sm:$0x3] %v6627_v24 }
 0x9c5   :  { %8677 = shalt.err (!%p8674_p5)
}
 0x9c6   :  { %s8678_s16 = scalar_lea.hbm %s9470_s15, 32 }
 0x9c7   :  { %p8679_p6 = scmp.ne.s32.totalorder %s9470_s15, %s8678_s16  ;;  %p8682_p7 = scmp.lt.u32.totalorder %s8678_s16, %s9470_s15 }
 0x9c9   :  { %p8684_p8 = pnand %p8682_p7, %p8679_p6 }
 0x9cb   :  { %8687 = shalt.err (!%p8684_p8)
}
 0x9cc   :  { %6638 = dma.vmem_to_hbm [thread:$0]  %s6636_s20, 32, %s9470_s15, [#allocation7]  }
 0x9cd   :  { %8708 = dma.done.wait [#allocation7], 32  }
 0x9ce   :  { %8709 = vsyncadd [#allocation7], 4294967264 }
 0x9cf   :  { %6642 = vsyncpa [#allocation6], 1 }
 0x9d0   :  { %6643 = vsyncpa [#allocation9], 1 }
 0x9d1   :  { %6644 = vsyncpa [#allocation12], 1 }
 0x9d2   :  { %6645 = vsyncpa [#allocation15], 1 }
 0x9d3   :  { %6646 = vsyncpa [#allocation18], 1 }
 0x9d4   :  { %6647 = vsyncpa [#allocation21], 1 }
 0x9d5   :  { %6648 = vsyncpa [#allocation24], 1 }
 0x9d6   :  { %6649 = vsyncpa [#allocation27], 1 }
 0x9d7   :  { %6650 = vsyncpa [#allocation7], 1 }

</bundles_post_ra>
